<compile_context>
chip_gen: v7x
topology: tpu7x:2x2x1
jax: 0.10.0
libtpu: 0.0.40
codegen_flags: <defaults>
</compile_context>

<pallas_src>
import functools

import jax
import jax.numpy as jnp
from jax.experimental import pallas as pl
from jax.experimental.pallas import tpu as pltpu


def _round_up(x, m):
    return ((x + m - 1) // m) * m


# ---------------------------------------------------------------------------
# Fused kernel: depthwise3x3 -> pointwise1x1 (MXU) -> LeakyReLU -> BN affine
# ---------------------------------------------------------------------------
def _sepconv_leaky_bn_kernel(x_ref, wdw_ref, wpw_ref, scale_ref, shift_ref,
                             o_ref, *, th, w, slope):
    """One (batch, row-tile) step of SeparableConv2d + LeakyReLU + BN(eval)."""
    t = pl.program_id(1)

    # Haloed row window of the spatially pre-padded slab (resident in VMEM,
    # constant block index along the row-tile axis => no re-DMA within a batch).
    xt = x_ref[0, pl.ds(t * th, th + 2), :, :].astype(jnp.float32)  # (th+2, W+2, Cin)
    cin = xt.shape[-1]

    # depthwise 3x3 (VPU): 9 shifted multiply-accumulates; no HBM im2col.
    acc = jnp.zeros((th, w, cin), jnp.float32)
    for k in range(9):
        dh, dwi = divmod(k, 3)
        acc = acc + xt[dh:dh + th, dwi:dwi + w, :] * wdw_ref[k]     # wdw_ref[k]: (1,1,Cin)

    # pointwise 1x1 as a GEMM on the MXU: bf16 operands, f32 accumulation.
    lhs = acc.reshape(th * w, cin).astype(jnp.bfloat16)
    y = jnp.dot(lhs, wpw_ref[...], preferred_element_type=jnp.float32)  # (th*w, Coutp)

    # Fused epilogue: LeakyReLU then eval-mode BatchNorm affine.
    y = jnp.where(y > 0, y, slope * y)
    y = y * scale_ref[...] + shift_ref[...]
    o_ref[0] = y.reshape(th, w, -1).astype(o_ref.dtype)


def _sepconv_leaky_bn(x_nhwc, wdw9, wpw, scale, shift, *, out_dtype,
                      row_tile=None, slope=0.01):
    """Apply one fused SeparableConv2d + LeakyReLU + BN(eval) unit.

    x_nhwc: (N, H, W, Cin)         activation (f32 or bf16)
    wdw9:   (9, 1, 1, Cin) f32     depthwise taps in (dh, dw) order
    wpw:    (Cin, Coutp)  bf16     pointwise weights, Coutp padded to 128
    scale/shift: (1, Coutp) f32    folded BN affine (zeros on padded channels)
    """
    N, H, W, Cin = x_nhwc.shape
    coutp = wpw.shape[1]

    if row_tile is None:
        # Big-ish row tiles => GEMM M around 512 rows when the image allows it
        # (fewer grid steps, less per-step overhead), capped by the image.
        row_tile = min(H, max(8, 512 // max(W, 1)))
    th = row_tile
    n_t = pl.cdiv(H, th)
    hp = n_t * th

    # Spatial zero-pad: 1-row/col halo plus bottom pad up to a tile multiple.
    xp = jnp.pad(x_nhwc, ((0, 0), (1, hp - H + 1), (1, 1), (0, 0)))
    hslab, wp = hp + 2, W + 2

    flops = 2 * N * hp * W * Cin * (9 + coutp)
    out_bytes = N * hp * W * coutp * (2 if out_dtype == jnp.bfloat16 else 4)
    bytes_accessed = int(xp.size) * xp.dtype.itemsize + int(wpw.size) * 2 + out_bytes

    kernel = functools.partial(_sepconv_leaky_bn_kernel, th=th, w=W, slope=slope)
    out = pl.pallas_call(
        kernel,
        out_shape=jax.ShapeDtypeStruct((N, hp, W, coutp), out_dtype),
        grid_spec=pltpu.PrefetchScalarGridSpec(
            num_scalar_prefetch=0,
            grid=(N, n_t),
            in_specs=[
                # Full padded slab per batch image; block index constant along
                # the row-tile axis so it stays resident (sliced with pl.ds).
                # NOTE: for very large H*W*Cin slabs, shrink row_tile / tile W
                # and raise vmem_limit_bytes (v7x has 64 MiB VMEM).
                pl.BlockSpec((1, hslab, wp, Cin), lambda n, t: (n, 0, 0, 0)),
                pl.BlockSpec((9, 1, 1, Cin), lambda n, t: (0, 0, 0, 0)),
                pl.BlockSpec((Cin, coutp), lambda n, t: (0, 0)),
                pl.BlockSpec((1, coutp), lambda n, t: (0, 0)),
                pl.BlockSpec((1, coutp), lambda n, t: (0, 0)),
            ],
            out_specs=pl.BlockSpec((1, th, W, coutp), lambda n, t: (n, t, 0, 0)),
        ),
        compiler_params=pltpu.CompilerParams(
            dimension_semantics=("parallel", "parallel")),
        cost_estimate=pl.CostEstimate(flops=flops, transcendentals=0,
                                      bytes_accessed=bytes_accessed),
    )(xp, wdw9, wpw, scale, shift)
    return out[:, :H]


# ---------------------------------------------------------------------------
# Weight packing (PyTorch layouts -> kernel layouts, BN folded, lane-padded)
# ---------------------------------------------------------------------------
def _pack_sepconv_unit(w_dw, w_pw, gamma, beta, mean, var, *, cin_pad, coutp,
                       eps=1e-5):
    """w_dw: (C,1,3,3) depthwise; w_pw: (Cout,Cin,1,1) pointwise (both bias-free)."""
    c = w_dw.shape[0]
    wdw9 = jnp.transpose(w_dw[:, 0], (1, 2, 0)).reshape(9, 1, 1, c)      # (9,1,1,C)
    wdw9 = jnp.pad(wdw9, ((0, 0), (0, 0), (0, 0), (0, cin_pad - c)))
    wdw9 = wdw9.astype(jnp.float32)

    cout, cin = w_pw.shape[0], w_pw.shape[1]
    wpw = jnp.transpose(w_pw[:, :, 0, 0])                                # (Cin, Cout)
    wpw = jnp.pad(wpw, ((0, cin_pad - cin), (0, coutp - cout))).astype(jnp.bfloat16)

    scale = gamma / jnp.sqrt(var + eps)
    shift = beta - mean * scale
    scale = jnp.pad(scale, (0, coutp - cout)).reshape(1, coutp).astype(jnp.float32)
    shift = jnp.pad(shift, (0, coutp - cout)).reshape(1, coutp).astype(jnp.float32)
    return wdw9, wpw, scale, shift


# ---------------------------------------------------------------------------
# Forward pass (semantics of DoubleSepConv_v2.forward, inference mode)
# ---------------------------------------------------------------------------
def double_sep_conv_v2_forward(params, x_nhwc, row_tile=None):
    N, H, W, Cin = x_nhwc.shape
    Cout = params["pw1_w"].shape[0]
    cin_p = _round_up(Cin, 8)          # keep GEMM K >= 8 lanes-friendly
    coutp = _round_up(Cout, 128)       # lane-dense GEMM N / output channels

    if cin_p != Cin:
        x_nhwc = jnp.pad(x_nhwc, ((0, 0), (0, 0), (0, 0), (0, cin_p - Cin)))

    wdw1, wpw1, s1, sh1 = _pack_sepconv_unit(
        params["dw1_w"], params["pw1_w"], params["bn1_g"], params["bn1_b"],
        params["bn1_m"], params["bn1_v"], cin_pad=cin_p, coutp=coutp)
    wdw2, wpw2, s2, sh2 = _pack_sepconv_unit(
        params["dw2_w"], params["pw2_w"], params["bn2_g"], params["bn2_b"],
        params["bn2_m"], params["bn2_v"], cin_pad=coutp, coutp=coutp)

    # unit 1: SepConv(Cin->Cout) -> Dropout(id) -> LeakyReLU -> BN ; bf16 out
    h = _sepconv_leaky_bn(x_nhwc, wdw1, wpw1, s1, sh1,
                          out_dtype=jnp.bfloat16, row_tile=row_tile)
    # unit 2: SepConv(Cout->Cout) -> Dropout(id) -> LeakyReLU -> BN ; f32 out
    y = _sepconv_leaky_bn(h, wdw2, wpw2, s2, sh2,
                          out_dtype=jnp.float32, row_tile=row_tile)
    return y[..., :Cout]


# ---------------------------------------------------------------------------
# Pure-JAX reference (lax convs, f32, HIGHEST precision) for a sanity check
# ---------------------------------------------------------------------------
def ref_forward(params, x_nhwc, eps=1e-5, slope=0.01):
    def sepconv(x, w_dw, w_pw):
        c = x.shape[-1]
        dw_hwio = jnp.transpose(w_dw, (2, 3, 1, 0))          # (3,3,1,C)
        y = jax.lax.conv_general_dilated(
            x, dw_hwio, (1, 1), ((1, 1), (1, 1)),
            dimension_numbers=("NHWC", "HWIO", "NHWC"),
            feature_group_count=c, precision=jax.lax.Precision.HIGHEST)
        pw_hwio = jnp.transpose(w_pw, (2, 3, 1, 0))          # (1,1,Cin,Cout)
        return jax.lax.conv_general_dilated(
            y, pw_hwio, (1, 1), ((0, 0), (0, 0)),
            dimension_numbers=("NHWC", "HWIO", "NHWC"),
            precision=jax.lax.Precision.HIGHEST)

    def bn(x, g, b, m, v):
        return g * (x - m) / jnp.sqrt(v + eps) + b

    h = sepconv(x_nhwc, params["dw1_w"], params["pw1_w"])
    h = jnp.where(h > 0, h, slope * h)
    h = bn(h, params["bn1_g"], params["bn1_b"], params["bn1_m"], params["bn1_v"])
    h = sepconv(h, params["dw2_w"], params["pw2_w"])
    h = jnp.where(h > 0, h, slope * h)
    h = bn(h, params["bn2_g"], params["bn2_b"], params["bn2_m"], params["bn2_v"])
    return h


# ---------------------------------------------------------------------------
# Deterministic parameter init (shapes from DoubleSepConv_v2.__init__)
# ---------------------------------------------------------------------------
def init_params(key, cin, cout):
    ks = jax.random.split(key, 12)
    n = lambda k, shape, s=0.1: s * jax.random.normal(k, shape, jnp.float32)
    return {
        "dw1_w": n(ks[0], (cin, 1, 3, 3)),      # depthwise Conv2d, groups=cin, bias=False
        "pw1_w": n(ks[1], (cout, cin, 1, 1)),   # pointwise Conv2d, bias=False
        "bn1_g": 1.0 + n(ks[2], (cout,)),
        "bn1_b": n(ks[3], (cout,)),
        "bn1_m": n(ks[4], (cout,)),
        "bn1_v": 1.0 + 0.1 * jax.random.uniform(ks[5], (cout,), jnp.float32),
        "dw2_w": n(ks[6], (cout, 1, 3, 3)),
        "pw2_w": n(ks[7], (cout, cout, 1, 1)),
        "bn2_g": 1.0 + n(ks[8], (cout,)),
        "bn2_b": n(ks[9], (cout,)),
        "bn2_m": n(ks[10], (cout,)),
        "bn2_v": 1.0 + 0.1 * jax.random.uniform(ks[11], (cout,), jnp.float32),
    }


if __name__ == "__main__":
    key = jax.random.PRNGKey(0)
    k_x, k_p = jax.random.split(key, 2)

    N, Cin, Cout, H, W = 2, 4, 8, 16, 16        # small shapes; drop_r irrelevant in eval
    x_nchw = jax.random.normal(k_x, (N, Cin, H, W), jnp.float32)
    params = init_params(k_p, Cin, Cout)

    # NCHW (PyTorch) -> NHWC (kernel layout)
    x_nhwc = jnp.transpose(x_nchw, (0, 2, 3, 1))

    fwd = jax.jit(double_sep_conv_v2_forward)
    out_nhwc = fwd(params, x_nhwc)
    out_nchw = jnp.transpose(out_nhwc, (0, 3, 1, 2))
    jax.block_until_ready(out_nchw)
    assert out_nchw.shape == (N, Cout, H, W), out_nchw.shape

    # sanity check against a pure-JAX lax-conv reference (f32, HIGHEST)
    ref_nhwc = ref_forward(params, x_nhwc)
    max_diff = float(jnp.max(jnp.abs(out_nhwc - ref_nhwc)))
    assert max_diff < 2e-2, f"max diff vs reference: {max_diff}"

    print("KERNEL_OK")
</pallas_src>

<mosaic_0001>
module attributes {stable_mosaic.version = 11 : i64} {
  func.func @_sepconv_leaky_bn_kernel(%arg0: i32, %arg1: i32, %arg2: memref<1x18x18x8xf32, #tpu.memory_space<vmem>>, %arg3: memref<9x1x1x8xf32, #tpu.memory_space<vmem>>, %arg4: memref<8x128xbf16, #tpu.memory_space<vmem>>, %arg5: memref<1x128xf32, #tpu.memory_space<vmem>>, %arg6: memref<1x128xf32, #tpu.memory_space<vmem>>, %arg7: memref<1x16x16x128xbf16, #tpu.memory_space<vmem>>) attributes {dimension_semantics = [#tpu.dimension_semantics<parallel>, #tpu.dimension_semantics<parallel>], iteration_bounds = array<i64: 2, 1>, scalar_prefetch = 0 : i64, scratch_operands = 0 : i64, tpu.core_type = #tpu.core_type<tc>, window_params = [{transform_indices = @transform_0, window_bounds = array<i64: 1, 18, 18, 8>}, {pipeline_mode = #tpu.pipeline_mode<synchronous>, transform_indices = @transform_1, window_bounds = array<i64: 9, 1, 1, 8>}, {pipeline_mode = #tpu.pipeline_mode<synchronous>, transform_indices = @transform_2, window_bounds = array<i64: 8, 128>}, {pipeline_mode = #tpu.pipeline_mode<synchronous>, transform_indices = @transform_3, window_bounds = array<i64: 1, 128>}, {pipeline_mode = #tpu.pipeline_mode<synchronous>, transform_indices = @transform_4, window_bounds = array<i64: 1, 128>}, {transform_indices = @transform_5, window_bounds = array<i64: 1, 16, 16, 128>}]} {
    %c16_i32 = arith.constant 16 : i32
    %0 = arith.muli %arg1, %c16_i32 : i32
    %c0 = arith.constant 0 : index
    %1 = arith.index_cast %0 : i32 to index
    %c0_0 = arith.constant 0 : index
    %c0_1 = arith.constant 0 : index
    %2 = vector.load %arg2[%c0, %1, %c0_0, %c0_1] : memref<1x18x18x8xf32, #tpu.memory_space<vmem>>, vector<1x18x18x8xf32>
    %3 = vector.shape_cast %2 : vector<1x18x18x8xf32> to vector<18x18x8xf32>
    %cst = arith.constant 0.000000e+00 : f32
    %4 = vector.broadcast %cst : f32 to vector<16x16x8xf32>
    %5 = vector.extract_strided_slice %3 {offsets = [0, 0, 0], sizes = [16, 16, 8], strides = [1, 1, 1]} : vector<18x18x8xf32> to vector<16x16x8xf32>
    %c0_2 = arith.constant 0 : index
    %c0_3 = arith.constant 0 : index
    %c0_4 = arith.constant 0 : index
    %c0_5 = arith.constant 0 : index
    %6 = vector.load %arg3[%c0_2, %c0_3, %c0_4, %c0_5] : memref<9x1x1x8xf32, #tpu.memory_space<vmem>>, vector<1x1x1x8xf32>
    %7 = vector.shape_cast %6 : vector<1x1x1x8xf32> to vector<1x1x8xf32>
    %8 = vector.broadcast %7 : vector<1x1x8xf32> to vector<16x16x8xf32>
    %9 = arith.mulf %5, %8 : vector<16x16x8xf32>
    %10 = arith.addf %4, %9 : vector<16x16x8xf32>
    %11 = vector.extract_strided_slice %3 {offsets = [0, 1, 0], sizes = [16, 16, 8], strides = [1, 1, 1]} : vector<18x18x8xf32> to vector<16x16x8xf32>
    %c1 = arith.constant 1 : index
    %c0_6 = arith.constant 0 : index
    %c0_7 = arith.constant 0 : index
    %c0_8 = arith.constant 0 : index
    %12 = vector.load %arg3[%c1, %c0_6, %c0_7, %c0_8] : memref<9x1x1x8xf32, #tpu.memory_space<vmem>>, vector<1x1x1x8xf32>
    %13 = vector.shape_cast %12 : vector<1x1x1x8xf32> to vector<1x1x8xf32>
    %14 = vector.broadcast %13 : vector<1x1x8xf32> to vector<16x16x8xf32>
    %15 = arith.mulf %11, %14 : vector<16x16x8xf32>
    %16 = arith.addf %10, %15 : vector<16x16x8xf32>
    %17 = vector.extract_strided_slice %3 {offsets = [0, 2, 0], sizes = [16, 16, 8], strides = [1, 1, 1]} : vector<18x18x8xf32> to vector<16x16x8xf32>
    %c2 = arith.constant 2 : index
    %c0_9 = arith.constant 0 : index
    %c0_10 = arith.constant 0 : index
    %c0_11 = arith.constant 0 : index
    %18 = vector.load %arg3[%c2, %c0_9, %c0_10, %c0_11] : memref<9x1x1x8xf32, #tpu.memory_space<vmem>>, vector<1x1x1x8xf32>
    %19 = vector.shape_cast %18 : vector<1x1x1x8xf32> to vector<1x1x8xf32>
    %20 = vector.broadcast %19 : vector<1x1x8xf32> to vector<16x16x8xf32>
    %21 = arith.mulf %17, %20 : vector<16x16x8xf32>
    %22 = arith.addf %16, %21 : vector<16x16x8xf32>
    %23 = vector.extract_strided_slice %3 {offsets = [1, 0, 0], sizes = [16, 16, 8], strides = [1, 1, 1]} : vector<18x18x8xf32> to vector<16x16x8xf32>
    %c3 = arith.constant 3 : index
    %c0_12 = arith.constant 0 : index
    %c0_13 = arith.constant 0 : index
    %c0_14 = arith.constant 0 : index
    %24 = vector.load %arg3[%c3, %c0_12, %c0_13, %c0_14] : memref<9x1x1x8xf32, #tpu.memory_space<vmem>>, vector<1x1x1x8xf32>
    %25 = vector.shape_cast %24 : vector<1x1x1x8xf32> to vector<1x1x8xf32>
    %26 = vector.broadcast %25 : vector<1x1x8xf32> to vector<16x16x8xf32>
    %27 = arith.mulf %23, %26 : vector<16x16x8xf32>
    %28 = arith.addf %22, %27 : vector<16x16x8xf32>
    %29 = vector.extract_strided_slice %3 {offsets = [1, 1, 0], sizes = [16, 16, 8], strides = [1, 1, 1]} : vector<18x18x8xf32> to vector<16x16x8xf32>
    %c4 = arith.constant 4 : index
    %c0_15 = arith.constant 0 : index
    %c0_16 = arith.constant 0 : index
    %c0_17 = arith.constant 0 : index
    %30 = vector.load %arg3[%c4, %c0_15, %c0_16, %c0_17] : memref<9x1x1x8xf32, #tpu.memory_space<vmem>>, vector<1x1x1x8xf32>
    %31 = vector.shape_cast %30 : vector<1x1x1x8xf32> to vector<1x1x8xf32>
    %32 = vector.broadcast %31 : vector<1x1x8xf32> to vector<16x16x8xf32>
    %33 = arith.mulf %29, %32 : vector<16x16x8xf32>
    %34 = arith.addf %28, %33 : vector<16x16x8xf32>
    %35 = vector.extract_strided_slice %3 {offsets = [1, 2, 0], sizes = [16, 16, 8], strides = [1, 1, 1]} : vector<18x18x8xf32> to vector<16x16x8xf32>
    %c5 = arith.constant 5 : index
    %c0_18 = arith.constant 0 : index
    %c0_19 = arith.constant 0 : index
    %c0_20 = arith.constant 0 : index
    %36 = vector.load %arg3[%c5, %c0_18, %c0_19, %c0_20] : memref<9x1x1x8xf32, #tpu.memory_space<vmem>>, vector<1x1x1x8xf32>
    %37 = vector.shape_cast %36 : vector<1x1x1x8xf32> to vector<1x1x8xf32>
    %38 = vector.broadcast %37 : vector<1x1x8xf32> to vector<16x16x8xf32>
    %39 = arith.mulf %35, %38 : vector<16x16x8xf32>
    %40 = arith.addf %34, %39 : vector<16x16x8xf32>
    %41 = vector.extract_strided_slice %3 {offsets = [2, 0, 0], sizes = [16, 16, 8], strides = [1, 1, 1]} : vector<18x18x8xf32> to vector<16x16x8xf32>
    %c6 = arith.constant 6 : index
    %c0_21 = arith.constant 0 : index
    %c0_22 = arith.constant 0 : index
    %c0_23 = arith.constant 0 : index
    %42 = vector.load %arg3[%c6, %c0_21, %c0_22, %c0_23] : memref<9x1x1x8xf32, #tpu.memory_space<vmem>>, vector<1x1x1x8xf32>
    %43 = vector.shape_cast %42 : vector<1x1x1x8xf32> to vector<1x1x8xf32>
    %44 = vector.broadcast %43 : vector<1x1x8xf32> to vector<16x16x8xf32>
    %45 = arith.mulf %41, %44 : vector<16x16x8xf32>
    %46 = arith.addf %40, %45 : vector<16x16x8xf32>
    %47 = vector.extract_strided_slice %3 {offsets = [2, 1, 0], sizes = [16, 16, 8], strides = [1, 1, 1]} : vector<18x18x8xf32> to vector<16x16x8xf32>
    %c7 = arith.constant 7 : index
    %c0_24 = arith.constant 0 : index
    %c0_25 = arith.constant 0 : index
    %c0_26 = arith.constant 0 : index
    %48 = vector.load %arg3[%c7, %c0_24, %c0_25, %c0_26] : memref<9x1x1x8xf32, #tpu.memory_space<vmem>>, vector<1x1x1x8xf32>
    %49 = vector.shape_cast %48 : vector<1x1x1x8xf32> to vector<1x1x8xf32>
    %50 = vector.broadcast %49 : vector<1x1x8xf32> to vector<16x16x8xf32>
    %51 = arith.mulf %47, %50 : vector<16x16x8xf32>
    %52 = arith.addf %46, %51 : vector<16x16x8xf32>
    %53 = vector.extract_strided_slice %3 {offsets = [2, 2, 0], sizes = [16, 16, 8], strides = [1, 1, 1]} : vector<18x18x8xf32> to vector<16x16x8xf32>
    %c8 = arith.constant 8 : index
    %c0_27 = arith.constant 0 : index
    %c0_28 = arith.constant 0 : index
    %c0_29 = arith.constant 0 : index
    %54 = vector.load %arg3[%c8, %c0_27, %c0_28, %c0_29] : memref<9x1x1x8xf32, #tpu.memory_space<vmem>>, vector<1x1x1x8xf32>
    %55 = vector.shape_cast %54 : vector<1x1x1x8xf32> to vector<1x1x8xf32>
    %56 = vector.broadcast %55 : vector<1x1x8xf32> to vector<16x16x8xf32>
    %57 = arith.mulf %53, %56 : vector<16x16x8xf32>
    %58 = arith.addf %52, %57 : vector<16x16x8xf32>
    %59 = vector.shape_cast %58 : vector<16x16x8xf32> to vector<256x8xf32>
    %60 = arith.truncf %59 : vector<256x8xf32> to vector<256x8xbf16>
    %c0_30 = arith.constant 0 : index
    %c0_31 = arith.constant 0 : index
    %61 = vector.load %arg4[%c0_30, %c0_31] : memref<8x128xbf16, #tpu.memory_space<vmem>>, vector<8x128xbf16>
    %cst_32 = arith.constant dense<0.000000e+00> : vector<256x128xf32>
    %62 = tpu.matmul %60, %61, %cst_32 {dimension_numbers = #tpu.dot_dimension_numbers<[1], [0], [0], [1], [0, 0, 1, 1], [], []>} : vector<256x8xbf16>, vector<8x128xbf16>, vector<256x128xf32> -> vector<256x128xf32>
    %cst_33 = arith.constant 0.000000e+00 : f32
    %63 = vector.broadcast %cst_33 : f32 to vector<256x128xf32>
    %64 = arith.cmpf ogt, %62, %63 : vector<256x128xf32>
    %cst_34 = arith.constant 0.00999999977 : f32
    %65 = vector.broadcast %cst_34 : f32 to vector<256x128xf32>
    %66 = arith.mulf %65, %62 : vector<256x128xf32>
    %67 = arith.select %64, %62, %66 : vector<256x128xi1>, vector<256x128xf32>
    %c0_35 = arith.constant 0 : index
    %c0_36 = arith.constant 0 : index
    %68 = vector.load %arg5[%c0_35, %c0_36] : memref<1x128xf32, #tpu.memory_space<vmem>>, vector<1x128xf32>
    %69 = vector.broadcast %68 : vector<1x128xf32> to vector<256x128xf32>
    %70 = arith.mulf %67, %69 : vector<256x128xf32>
    %c0_37 = arith.constant 0 : index
    %c0_38 = arith.constant 0 : index
    %71 = vector.load %arg6[%c0_37, %c0_38] : memref<1x128xf32, #tpu.memory_space<vmem>>, vector<1x128xf32>
    %72 = vector.broadcast %71 : vector<1x128xf32> to vector<256x128xf32>
    %73 = arith.addf %70, %72 : vector<256x128xf32>
    %74 = vector.shape_cast %73 : vector<256x128xf32> to vector<16x16x128xf32>
    %75 = arith.truncf %74 : vector<16x16x128xf32> to vector<16x16x128xbf16>
    %c0_39 = arith.constant 0 : index
    %c0_40 = arith.constant 0 : index
    %c0_41 = arith.constant 0 : index
    %c0_42 = arith.constant 0 : index
    %76 = vector.load %arg7[%c0_39, %c0_40, %c0_41, %c0_42] : memref<1x16x16x128xbf16, #tpu.memory_space<vmem>>, vector<1x16x16x128xbf16>
    %77 = vector.shape_cast %76 : vector<1x16x16x128xbf16> to vector<16x16x128xbf16>
    %78 = vector.shape_cast %75 : vector<16x16x128xbf16> to vector<1x16x16x128xbf16>
    tpu.vector_store %arg7[%c0_39, %c0_40, %c0_41, %c0_42], %78 {strides = array<i32>} : memref<1x16x16x128xbf16, #tpu.memory_space<vmem>>, vector<1x16x16x128xbf16>,
    return
  }
  func.func @transform_0(%arg0: i32, %arg1: i32) -> (i32, i32, i32, i32) {
    %c0_i32 = arith.constant 0 : i32
    %c0_i32_0 = arith.constant 0 : i32
    %c0_i32_1 = arith.constant 0 : i32
    %c0_i32_2 = arith.constant 0 : i32
    return %arg0, %c0_i32, %c0_i32_0, %c0_i32_1 : i32, i32, i32, i32
  }
  func.func @transform_1(%arg0: i32, %arg1: i32) -> (i32, i32, i32, i32) {
    %c0_i32 = arith.constant 0 : i32
    %c0_i32_0 = arith.constant 0 : i32
    %c0_i32_1 = arith.constant 0 : i32
    %c0_i32_2 = arith.constant 0 : i32
    %c0_i32_3 = arith.constant 0 : i32
    return %c0_i32, %c0_i32_0, %c0_i32_1, %c0_i32_2 : i32, i32, i32, i32
  }
  func.func @transform_2(%arg0: i32, %arg1: i32) -> (i32, i32) {
    %c0_i32 = arith.constant 0 : i32
    %c0_i32_0 = arith.constant 0 : i32
    %c0_i32_1 = arith.constant 0 : i32
    return %c0_i32, %c0_i32_0 : i32, i32
  }
  func.func @transform_3(%arg0: i32, %arg1: i32) -> (i32, i32) {
    %c0_i32 = arith.constant 0 : i32
    %c0_i32_0 = arith.constant 0 : i32
    %c0_i32_1 = arith.constant 0 : i32
    return %c0_i32, %c0_i32_0 : i32, i32
  }
  func.func @transform_4(%arg0: i32, %arg1: i32) -> (i32, i32) {
    %c0_i32 = arith.constant 0 : i32
    %c0_i32_0 = arith.constant 0 : i32
    %c0_i32_1 = arith.constant 0 : i32
    return %c0_i32, %c0_i32_0 : i32, i32
  }
  func.func @transform_5(%arg0: i32, %arg1: i32) -> (i32, i32, i32, i32) {
    %c0_i32 = arith.constant 0 : i32
    %c0_i32_0 = arith.constant 0 : i32
    %c0_i32_1 = arith.constant 0 : i32
    return %arg0, %arg1, %c0_i32, %c0_i32_0 : i32, i32, i32, i32
  }
}

module attributes {stable_mosaic.version = 11 : i64} {
  func.func @_sepconv_leaky_bn_kernel(%arg0: i32, %arg1: i32, %arg2: memref<1x18x18x128xbf16, #tpu.memory_space<vmem>>, %arg3: memref<9x1x1x128xf32, #tpu.memory_space<vmem>>, %arg4: memref<128x128xbf16, #tpu.memory_space<vmem>>, %arg5: memref<1x128xf32, #tpu.memory_space<vmem>>, %arg6: memref<1x128xf32, #tpu.memory_space<vmem>>, %arg7: memref<1x16x16x128xf32, #tpu.memory_space<vmem>>) attributes {dimension_semantics = [#tpu.dimension_semantics<parallel>, #tpu.dimension_semantics<parallel>], iteration_bounds = array<i64: 2, 1>, scalar_prefetch = 0 : i64, scratch_operands = 0 : i64, tpu.core_type = #tpu.core_type<tc>, window_params = [{transform_indices = @transform_0, window_bounds = array<i64: 1, 18, 18, 128>}, {pipeline_mode = #tpu.pipeline_mode<synchronous>, transform_indices = @transform_1, window_bounds = array<i64: 9, 1, 1, 128>}, {pipeline_mode = #tpu.pipeline_mode<synchronous>, transform_indices = @transform_2, window_bounds = array<i64: 128, 128>}, {pipeline_mode = #tpu.pipeline_mode<synchronous>, transform_indices = @transform_3, window_bounds = array<i64: 1, 128>}, {pipeline_mode = #tpu.pipeline_mode<synchronous>, transform_indices = @transform_4, window_bounds = array<i64: 1, 128>}, {transform_indices = @transform_5, window_bounds = array<i64: 1, 16, 16, 128>}]} {
    %c16_i32 = arith.constant 16 : i32
    %0 = arith.muli %arg1, %c16_i32 : i32
    %c0 = arith.constant 0 : index
    %1 = arith.index_cast %0 : i32 to index
    %c0_0 = arith.constant 0 : index
    %c0_1 = arith.constant 0 : index
    %2 = vector.load %arg2[%c0, %1, %c0_0, %c0_1] : memref<1x18x18x128xbf16, #tpu.memory_space<vmem>>, vector<1x18x18x128xbf16>
    %3 = vector.shape_cast %2 : vector<1x18x18x128xbf16> to vector<18x18x128xbf16>
    %4 = arith.extf %3 : vector<18x18x128xbf16> to vector<18x18x128xf32>
    %cst = arith.constant 0.000000e+00 : f32
    %5 = vector.broadcast %cst : f32 to vector<16x16x128xf32>
    %6 = vector.extract_strided_slice %4 {offsets = [0, 0, 0], sizes = [16, 16, 128], strides = [1, 1, 1]} : vector<18x18x128xf32> to vector<16x16x128xf32>
    %c0_2 = arith.constant 0 : index
    %c0_3 = arith.constant 0 : index
    %c0_4 = arith.constant 0 : index
    %c0_5 = arith.constant 0 : index
    %7 = vector.load %arg3[%c0_2, %c0_3, %c0_4, %c0_5] : memref<9x1x1x128xf32, #tpu.memory_space<vmem>>, vector<1x1x1x128xf32>
    %8 = vector.shape_cast %7 : vector<1x1x1x128xf32> to vector<1x1x128xf32>
    %9 = vector.broadcast %8 : vector<1x1x128xf32> to vector<16x16x128xf32>
    %10 = arith.mulf %6, %9 : vector<16x16x128xf32>
    %11 = arith.addf %5, %10 : vector<16x16x128xf32>
    %12 = vector.extract_strided_slice %4 {offsets = [0, 1, 0], sizes = [16, 16, 128], strides = [1, 1, 1]} : vector<18x18x128xf32> to vector<16x16x128xf32>
    %c1 = arith.constant 1 : index
    %c0_6 = arith.constant 0 : index
    %c0_7 = arith.constant 0 : index
    %c0_8 = arith.constant 0 : index
    %13 = vector.load %arg3[%c1, %c0_6, %c0_7, %c0_8] : memref<9x1x1x128xf32, #tpu.memory_space<vmem>>, vector<1x1x1x128xf32>
    %14 = vector.shape_cast %13 : vector<1x1x1x128xf32> to vector<1x1x128xf32>
    %15 = vector.broadcast %14 : vector<1x1x128xf32> to vector<16x16x128xf32>
    %16 = arith.mulf %12, %15 : vector<16x16x128xf32>
    %17 = arith.addf %11, %16 : vector<16x16x128xf32>
    %18 = vector.extract_strided_slice %4 {offsets = [0, 2, 0], sizes = [16, 16, 128], strides = [1, 1, 1]} : vector<18x18x128xf32> to vector<16x16x128xf32>
    %c2 = arith.constant 2 : index
    %c0_9 = arith.constant 0 : index
    %c0_10 = arith.constant 0 : index
    %c0_11 = arith.constant 0 : index
    %19 = vector.load %arg3[%c2, %c0_9, %c0_10, %c0_11] : memref<9x1x1x128xf32, #tpu.memory_space<vmem>>, vector<1x1x1x128xf32>
    %20 = vector.shape_cast %19 : vector<1x1x1x128xf32> to vector<1x1x128xf32>
    %21 = vector.broadcast %20 : vector<1x1x128xf32> to vector<16x16x128xf32>
    %22 = arith.mulf %18, %21 : vector<16x16x128xf32>
    %23 = arith.addf %17, %22 : vector<16x16x128xf32>
    %24 = vector.extract_strided_slice %4 {offsets = [1, 0, 0], sizes = [16, 16, 128], strides = [1, 1, 1]} : vector<18x18x128xf32> to vector<16x16x128xf32>
    %c3 = arith.constant 3 : index
    %c0_12 = arith.constant 0 : index
    %c0_13 = arith.constant 0 : index
    %c0_14 = arith.constant 0 : index
    %25 = vector.load %arg3[%c3, %c0_12, %c0_13, %c0_14] : memref<9x1x1x128xf32, #tpu.memory_space<vmem>>, vector<1x1x1x128xf32>
    %26 = vector.shape_cast %25 : vector<1x1x1x128xf32> to vector<1x1x128xf32>
    %27 = vector.broadcast %26 : vector<1x1x128xf32> to vector<16x16x128xf32>
    %28 = arith.mulf %24, %27 : vector<16x16x128xf32>
    %29 = arith.addf %23, %28 : vector<16x16x128xf32>
    %30 = vector.extract_strided_slice %4 {offsets = [1, 1, 0], sizes = [16, 16, 128], strides = [1, 1, 1]} : vector<18x18x128xf32> to vector<16x16x128xf32>
    %c4 = arith.constant 4 : index
    %c0_15 = arith.constant 0 : index
    %c0_16 = arith.constant 0 : index
    %c0_17 = arith.constant 0 : index
    %31 = vector.load %arg3[%c4, %c0_15, %c0_16, %c0_17] : memref<9x1x1x128xf32, #tpu.memory_space<vmem>>, vector<1x1x1x128xf32>
    %32 = vector.shape_cast %31 : vector<1x1x1x128xf32> to vector<1x1x128xf32>
    %33 = vector.broadcast %32 : vector<1x1x128xf32> to vector<16x16x128xf32>
    %34 = arith.mulf %30, %33 : vector<16x16x128xf32>
    %35 = arith.addf %29, %34 : vector<16x16x128xf32>
    %36 = vector.extract_strided_slice %4 {offsets = [1, 2, 0], sizes = [16, 16, 128], strides = [1, 1, 1]} : vector<18x18x128xf32> to vector<16x16x128xf32>
    %c5 = arith.constant 5 : index
    %c0_18 = arith.constant 0 : index
    %c0_19 = arith.constant 0 : index
    %c0_20 = arith.constant 0 : index
    %37 = vector.load %arg3[%c5, %c0_18, %c0_19, %c0_20] : memref<9x1x1x128xf32, #tpu.memory_space<vmem>>, vector<1x1x1x128xf32>
    %38 = vector.shape_cast %37 : vector<1x1x1x128xf32> to vector<1x1x128xf32>
    %39 = vector.broadcast %38 : vector<1x1x128xf32> to vector<16x16x128xf32>
    %40 = arith.mulf %36, %39 : vector<16x16x128xf32>
    %41 = arith.addf %35, %40 : vector<16x16x128xf32>
    %42 = vector.extract_strided_slice %4 {offsets = [2, 0, 0], sizes = [16, 16, 128], strides = [1, 1, 1]} : vector<18x18x128xf32> to vector<16x16x128xf32>
    %c6 = arith.constant 6 : index
    %c0_21 = arith.constant 0 : index
    %c0_22 = arith.constant 0 : index
    %c0_23 = arith.constant 0 : index
    %43 = vector.load %arg3[%c6, %c0_21, %c0_22, %c0_23] : memref<9x1x1x128xf32, #tpu.memory_space<vmem>>, vector<1x1x1x128xf32>
    %44 = vector.shape_cast %43 : vector<1x1x1x128xf32> to vector<1x1x128xf32>
    %45 = vector.broadcast %44 : vector<1x1x128xf32> to vector<16x16x128xf32>
    %46 = arith.mulf %42, %45 : vector<16x16x128xf32>
    %47 = arith.addf %41, %46 : vector<16x16x128xf32>
    %48 = vector.extract_strided_slice %4 {offsets = [2, 1, 0], sizes = [16, 16, 128], strides = [1, 1, 1]} : vector<18x18x128xf32> to vector<16x16x128xf32>
    %c7 = arith.constant 7 : index
    %c0_24 = arith.constant 0 : index
    %c0_25 = arith.constant 0 : index
    %c0_26 = arith.constant 0 : index
    %49 = vector.load %arg3[%c7, %c0_24, %c0_25, %c0_26] : memref<9x1x1x128xf32, #tpu.memory_space<vmem>>, vector<1x1x1x128xf32>
    %50 = vector.shape_cast %49 : vector<1x1x1x128xf32> to vector<1x1x128xf32>
    %51 = vector.broadcast %50 : vector<1x1x128xf32> to vector<16x16x128xf32>
    %52 = arith.mulf %48, %51 : vector<16x16x128xf32>
    %53 = arith.addf %47, %52 : vector<16x16x128xf32>
    %54 = vector.extract_strided_slice %4 {offsets = [2, 2, 0], sizes = [16, 16, 128], strides = [1, 1, 1]} : vector<18x18x128xf32> to vector<16x16x128xf32>
    %c8 = arith.constant 8 : index
    %c0_27 = arith.constant 0 : index
    %c0_28 = arith.constant 0 : index
    %c0_29 = arith.constant 0 : index
    %55 = vector.load %arg3[%c8, %c0_27, %c0_28, %c0_29] : memref<9x1x1x128xf32, #tpu.memory_space<vmem>>, vector<1x1x1x128xf32>
    %56 = vector.shape_cast %55 : vector<1x1x1x128xf32> to vector<1x1x128xf32>
    %57 = vector.broadcast %56 : vector<1x1x128xf32> to vector<16x16x128xf32>
    %58 = arith.mulf %54, %57 : vector<16x16x128xf32>
    %59 = arith.addf %53, %58 : vector<16x16x128xf32>
    %60 = vector.shape_cast %59 : vector<16x16x128xf32> to vector<256x128xf32>
    %61 = arith.truncf %60 : vector<256x128xf32> to vector<256x128xbf16>
    %c0_30 = arith.constant 0 : index
    %c0_31 = arith.constant 0 : index
    %62 = vector.load %arg4[%c0_30, %c0_31] : memref<128x128xbf16, #tpu.memory_space<vmem>>, vector<128x128xbf16>
    %cst_32 = arith.constant dense<0.000000e+00> : vector<256x128xf32>
    %63 = tpu.matmul %61, %62, %cst_32 {dimension_numbers = #tpu.dot_dimension_numbers<[1], [0], [0], [1], [0, 0, 1, 1], [], []>} : vector<256x128xbf16>, vector<128x128xbf16>, vector<256x128xf32> -> vector<256x128xf32>
    %cst_33 = arith.constant 0.000000e+00 : f32
    %64 = vector.broadcast %cst_33 : f32 to vector<256x128xf32>
    %65 = arith.cmpf ogt, %63, %64 : vector<256x128xf32>
    %cst_34 = arith.constant 0.00999999977 : f32
    %66 = vector.broadcast %cst_34 : f32 to vector<256x128xf32>
    %67 = arith.mulf %66, %63 : vector<256x128xf32>
    %68 = arith.select %65, %63, %67 : vector<256x128xi1>, vector<256x128xf32>
    %c0_35 = arith.constant 0 : index
    %c0_36 = arith.constant 0 : index
    %69 = vector.load %arg5[%c0_35, %c0_36] : memref<1x128xf32, #tpu.memory_space<vmem>>, vector<1x128xf32>
    %70 = vector.broadcast %69 : vector<1x128xf32> to vector<256x128xf32>
    %71 = arith.mulf %68, %70 : vector<256x128xf32>
    %c0_37 = arith.constant 0 : index
    %c0_38 = arith.constant 0 : index
    %72 = vector.load %arg6[%c0_37, %c0_38] : memref<1x128xf32, #tpu.memory_space<vmem>>, vector<1x128xf32>
    %73 = vector.broadcast %72 : vector<1x128xf32> to vector<256x128xf32>
    %74 = arith.addf %71, %73 : vector<256x128xf32>
    %75 = vector.shape_cast %74 : vector<256x128xf32> to vector<16x16x128xf32>
    %c0_39 = arith.constant 0 : index
    %c0_40 = arith.constant 0 : index
    %c0_41 = arith.constant 0 : index
    %c0_42 = arith.constant 0 : index
    %76 = vector.load %arg7[%c0_39, %c0_40, %c0_41, %c0_42] : memref<1x16x16x128xf32, #tpu.memory_space<vmem>>, vector<1x16x16x128xf32>
    %77 = vector.shape_cast %76 : vector<1x16x16x128xf32> to vector<16x16x128xf32>
    %78 = vector.shape_cast %75 : vector<16x16x128xf32> to vector<1x16x16x128xf32>
    tpu.vector_store %arg7[%c0_39, %c0_40, %c0_41, %c0_42], %78 {strides = array<i32>} : memref<1x16x16x128xf32, #tpu.memory_space<vmem>>, vector<1x16x16x128xf32>,
    return
  }
  func.func @transform_0(%arg0: i32, %arg1: i32) -> (i32, i32, i32, i32) {
    %c0_i32 = arith.constant 0 : i32
    %c0_i32_0 = arith.constant 0 : i32
    %c0_i32_1 = arith.constant 0 : i32
    %c0_i32_2 = arith.constant 0 : i32
    return %arg0, %c0_i32, %c0_i32_0, %c0_i32_1 : i32, i32, i32, i32
  }
  func.func @transform_1(%arg0: i32, %arg1: i32) -> (i32, i32, i32, i32) {
    %c0_i32 = arith.constant 0 : i32
    %c0_i32_0 = arith.constant 0 : i32
    %c0_i32_1 = arith.constant 0 : i32
    %c0_i32_2 = arith.constant 0 : i32
    %c0_i32_3 = arith.constant 0 : i32
    return %c0_i32, %c0_i32_0, %c0_i32_1, %c0_i32_2 : i32, i32, i32, i32
  }
  func.func @transform_2(%arg0: i32, %arg1: i32) -> (i32, i32) {
    %c0_i32 = arith.constant 0 : i32
    %c0_i32_0 = arith.constant 0 : i32
    %c0_i32_1 = arith.constant 0 : i32
    return %c0_i32, %c0_i32_0 : i32, i32
  }
  func.func @transform_3(%arg0: i32, %arg1: i32) -> (i32, i32) {
    %c0_i32 = arith.constant 0 : i32
    %c0_i32_0 = arith.constant 0 : i32
    %c0_i32_1 = arith.constant 0 : i32
    return %c0_i32, %c0_i32_0 : i32, i32
  }
  func.func @transform_4(%arg0: i32, %arg1: i32) -> (i32, i32) {
    %c0_i32 = arith.constant 0 : i32
    %c0_i32_0 = arith.constant 0 : i32
    %c0_i32_1 = arith.constant 0 : i32
    return %c0_i32, %c0_i32_0 : i32, i32
  }
  func.func @transform_5(%arg0: i32, %arg1: i32) -> (i32, i32, i32, i32) {
    %c0_i32 = arith.constant 0 : i32
    %c0_i32_0 = arith.constant 0 : i32
    %c0_i32_1 = arith.constant 0 : i32
    return %arg0, %arg1, %c0_i32, %c0_i32_0 : i32, i32, i32, i32
  }
}

</mosaic_0001>

<bundles_post_ra>
// kernel: double_sep_conv_v2_forward.3
= control target key start
LH: loop header
LB: loop body
LE: loop exit
PB: predicated region body
PF: predicated region fallthrough
CT: control target
= control target key end

     0   :  { %s2879_s18 = smov 0   ;;  %s2881_s19 = smov 0   ;;  %s4306_s0 = inlined_call_operand.vmem [shape: bf16[2,18,18,128], index: 0, kind: input, shape index: {}]   ;;  %s4307_s1 = inlined_call_operand.vmem [shape: f32[9,1,1,128], index: 1, kind: input, shape index: {}]   ;;  %s4308_s2 = inlined_call_operand.vmem [shape: bf16[128,128], index: 2, kind: input, shape index: {}]   ;;  %s4309_s3 = inlined_call_operand.vmem [shape: f32[1,128], index: 3, kind: input, shape index: {}]   ;;  %s4310_s4 = inlined_call_operand.vmem [shape: f32[1,128], index: 4, kind: input, shape index: {}]   ;;  %s4311_s5 = inlined_call_operand.vmem [shape: f32[2,16,16,128], index: 5, kind: output, shape index: {}]  }
   0x1   :  { %s2883_s20 = smov 0  }
   0x2 LB: > { %s27_s21 = sadd.s32 1, %s2843_s19  ;;  %p2608_p0 = scmp.ge.s32.totalorder %s2847_s20, 1  ;;  %s2847_s20 = sphi %s2883_s20, %s15_s20   ;;  %s2843_s19 = sphi %s2881_s19, %s4313_s19   ;;  %s2839_s18 = sphi %s2879_s18, %s4312_s18  }
   0x3   : > { %p29_p1 = scmp.ge.s32.totalorder %s27_s21, 2  ;;  %p201_p2 = scmp.lt.s32.totalorder %s2847_s20, 3 }
   0x5   : > { %s4315_s21 = smov (%p29_p1, %s27_s21), 0  ;;  %p202_p3 = pnand %p2608_p0, %p201_p2 }
   0x6   : > { %v2799_v0 = vld [vmem:[%s4308_s2] sm:$0xff] (!%p202_p3)   ;;  %p234_p4 = scmp.lt.s32.totalorder (!%p202_p3), %s2839_s18, 1  ;;  %v2800_v1 = vld [vmem:[%s4308_s2 + $0x8] sm:$0xff] (!%p202_p3)   ;;  %v2801_v2 = vld [vmem:[%s4308_s2 + $0x10] sm:$0xff] (!%p202_p3)   ;;  %vm538_vm0 = vcmask (!%p202_p3), 1046528   ;;  %vm787_vm1 = vcmask (!%p202_p3), 1045504  }
   0x7   : > { %205 = sbr.rel (%p202_p3) target bundleno = 545 (0x221), region = 40  ;;  %2710 = vmatprep.subr.bf16.mxu0 (!%p202_p3), %v2799_v0  ;;  %2758 = vmatprep.subr.bf16.mxu1 (!%p202_p3), %v2799_v0  ;;  %v2802_v3 = vld [vmem:[%s4308_s2 + $0x18] sm:$0xff] (!%p202_p3)   ;;  %v2934_v17 = vld [vmem:[%s4307_s1] ss:$0 sm:$0xff] (!%p202_p3)  ;;  %v2939_v18 = vld [vmem:[%s4307_s1 + $0x1] ss:$0 sm:$0xff] (!%p202_p3) }
   0x8   : > { %2711 = vmatpush3.bf16.msra.mxu0 (!%p202_p3), %v2799_v0  ;;  %2766 = vmatpush3.bf16.msra.mxu1 (!%p202_p3), %v2799_v0  ;;  %v2944_v19 = vld [vmem:[%s4307_s1 + $0x2] ss:$0 sm:$0xff] (!%p202_p3)  ;;  %v2954_v24 = vld [vmem:[%s4307_s1 + $0x3] ss:$0 sm:$0xff] (!%p202_p3)  ;;  %v2967_v30 = vld [vmem:[%s4307_s1 + $0x4] ss:$0 sm:$0xff] (!%p202_p3) }
   0x9   : > { %2712 = vmatprep.subr.bf16.mxu0 (!%p202_p3), %v2800_v1  ;;  %2759 = vmatprep.subr.bf16.mxu1 (!%p202_p3), %v2800_v1  ;;  %v2803_v25 = vld [vmem:[%s4308_s2 + $0x20] sm:$0xff] (!%p202_p3)   ;;  %v2804_v45 = vld [vmem:[%s4308_s2 + $0x28] sm:$0xff] (!%p202_p3)   ;;  %v2805_v0 = vld [vmem:[%s4308_s2 + $0x30] sm:$0xff] (!%p202_p3)  }
   0xa   : > { %v2983_v44 = vld [vmem:[%s4307_s1 + $0x5] ss:$0 sm:$0xff] (!%p202_p3)  ;;  %v3001_v58 = vld [vmem:[%s4307_s1 + $0x6] ss:$0 sm:$0xff] (!%p202_p3)  ;;  %v3008_v62 = vld [vmem:[%s4307_s1 + $0x7] ss:$0 sm:$0xff] (!%p202_p3) }
   0xc   : > { %2713 = vmatpush3.bf16.msra.mxu0 (!%p202_p3), %v2800_v1  ;;  %2767 = vmatpush3.bf16.msra.mxu1 (!%p202_p3), %v2800_v1 }
   0xd   : > { %2714 = vmatprep.subr.bf16.mxu0 (!%p202_p3), %v2801_v2  ;;  %2760 = vmatprep.subr.bf16.mxu1 (!%p202_p3), %v2801_v2 }
   0xe   : > { %s4317_s18 = smov (!%p234_p4, %s2839_s18), 1 }
   0xf   : > { %s2774_s28 = smul.u32 216, %s4317_s18  ;;  %s2641_s12 = sshll.u32 %s4317_s18, 8 }
  0x10   : > { %2715 = vmatpush3.bf16.msra.mxu0 %v2801_v2  ;;  %2768 = vmatpush3.bf16.msra.mxu1 %v2801_v2  ;;  %s4192_s16 = scalar_lea.vmem %s4311_s5, %s2641_s12 }
  0x11   : > { %s2912_s6 = scalar_lea.vmem %s4306_s0, %s2774_s28  ;;  %2716 = vmatprep.subr.bf16.mxu0 %v2802_v3  ;;  %2761 = vmatprep.subr.bf16.mxu1 %v2802_v3 }
  0x12   : > { %v2643_v4 = vld [vmem:[%s2912_s6] sm:$0xff]   ;;  %v257_v5 = vld [vmem:[%s2912_s6 + $0x8] sm:$0x1]  ;;  %v258_v6 = vld [vmem:[%s2912_s6 + $0xc] sm:$0xff]  }
  0x13   : > { %v2644_v7 = vunpack.c.l.bf16 %v2643_v4  ;;  %v2645_v8 = vunpack.c.h.bf16 %v2643_v4  ;;  %v260_v9 = vld [vmem:[%s2912_s6 + $0x14] sm:$0x1]  ;;  %v2678_v10 = vld [vmem:[%s2912_s6 + $0x18] sm:$0xff]   ;;  %v263_v11 = vld [vmem:[%s2912_s6 + $0x20] sm:$0x1]  ;;  %v311_v12 = vunpack.c.l.bf16 %v257_v5  ;;  %v2927_v15 = vunpack.c.l.bf16 %v258_v6 }
  0x14   : > { %v2923_v13 = vunpack.c.l.bf16 %v2678_v10  ;;  %v2925_v14 = vunpack.c.h.bf16 %v2678_v10  ;;  %v2929_v16 = vunpack.c.h.bf16 %v258_v6  ;;  %v2946_v20 = vunpack.c.l.bf16 %v260_v9  ;;  %v2681_v35 = vld [vmem:[%s2912_s6 + $0x60] sm:$0xff]   ;;  %2717 = vmatpush3.bf16.msra.mxu0 %v2802_v3  ;;  %2769 = vmatpush3.bf16.msra.mxu1 %v2802_v3  ;;  %v2682_v5 = vld [vmem:[%s2912_s6 + $0x78] sm:$0xff]  }
  0x15   : > { %v370_v21 = vmul.f32 %v2644_v7, %v2934_v17  ;;  %v371_v22 = vmul.f32 %v2645_v8, %v2934_v17  ;;  %v442_v23 = vmul.f32 %v2644_v7, %v2939_v18  ;;  %v2959_v26 = vunpack.c.l.bf16 %v263_v11  ;;  %2718 = vmatprep.subr.bf16.mxu0 %v2803_v25  ;;  %2762 = vmatprep.subr.bf16.mxu1 %v2803_v25 }
  0x16   : > { %v443_v27 = vmul.f32 %v2645_v8, %v2939_v18  ;;  %v444_v28 = vmul.f32 %v2939_v18, %v311_v12  ;;  %v691_v29 = vmul.f32 %v2644_v7, %v2944_v19  ;;  %v692_v32 = vmul.f32 %v2645_v8, %v2944_v19 }
  0x17   : > { %v539_v31 = vrot.slane %v442_v23, 1  ;;  %v693_v33 = vmul.f32 %v2944_v19, %v311_v12  ;;  %v940_v34 = vmul.f32 %v2954_v24, %v2927_v15  ;;  %v941_v39 = vmul.f32 %v2954_v24, %v2929_v16 }
  0x18   : > { %v540_v36 = vrot.slane %v443_v27, 1  ;;  %v542_v37 = vrot.slane %v444_v28, 1  ;;  %v788_v38 = vrot.slane %v691_v29, 2  ;;  %v789_v40 = vrot.slane %v692_v32, 2  ;;  %2719 = vmatpush3.bf16.msra.mxu0 %v2803_v25  ;;  %2770 = vmatpush3.bf16.msra.mxu1 %v2803_v25  ;;  %v2806_v29 = vld [vmem:[%s4308_s2 + $0x38] sm:$0xff]  }
  0x19   : > { %v791_v41 = vrot.slane %v693_v33, 2  ;;  %v1012_v42 = vmul.f32 %v2967_v30, %v2927_v15  ;;  %v1013_v43 = vmul.f32 %v2967_v30, %v2929_v16  ;;  %v1014_v48 = vmul.f32 %v2967_v30, %v2946_v20  ;;  %2720 = vmatprep.subr.bf16.mxu0 %v2804_v45  ;;  %2763 = vmatprep.subr.bf16.mxu1 %v2804_v45 }
  0x1a   : > { %v541_v46 = vsel %vm538_vm0, %v539_v31, %v540_v36  ;;  %v543_v47 = vsel %vm538_vm0, %v540_v36, %v542_v37  ;;  %v2992_v49 = vunpack.c.l.bf16 %v2681_v35  ;;  %v790_v52 = vsel %vm787_vm1, %v788_v38, %v789_v40 }
  0x1b   : > { %v651_v50 = vadd.f32 %v541_v46, %v370_v21  ;;  %v652_v51 = vadd.f32 %v543_v47, %v371_v22  ;;  %v792_v53 = vsel %vm787_vm1, %v789_v40, %v791_v41  ;;  %v1108_v54 = vrot.slane %v1012_v42, 1  ;;  %v3031_v22 = vld [vmem:[%s4307_s1 + $0x8] ss:$0 sm:$0xff]  ;;  %v282_v40 = vld [vmem:[%s2912_s6 + $0x6c] sm:$0xff]  }
  0x1c   : > { %v1109_v55 = vrot.slane %v1013_v43, 1  ;;  %v1111_v56 = vrot.slane %v1014_v48, 1  ;;  %v1260_v57 = vmul.f32 %v2983_v44, %v2927_v15  ;;  %v1261_v61 = vmul.f32 %v2983_v44, %v2929_v16  ;;  %2721 = vmatpush3.bf16.msra.mxu0 %v2804_v45  ;;  %2771 = vmatpush3.bf16.msra.mxu1 %v2804_v45 }
  0x1d   : > { %v900_v59 = vadd.f32 %v790_v52, %v651_v50  ;;  %v901_v60 = vadd.f32 %v792_v53, %v652_v51  ;;  %v3010_v63 = vunpack.c.h.bf16 %v2681_v35  ;;  %v1262_v3 = vmul.f32 %v2983_v44, %v2946_v20  ;;  %2722 = vmatprep.subr.bf16.mxu0 %v2805_v0  ;;  %2764 = vmatprep.subr.bf16.mxu1 %v2805_v0  ;;  %v284_v51 = vld [vmem:[%s2912_s6 + $0x74] sm:$0x1]  ;;  %v287_v52 = vld [vmem:[%s2912_s6 + $0x80] sm:$0x1] }
  0x1e   : > { %v1110_v1 = vsel %vm538_vm0, %v1108_v54, %v1109_v55  ;;  %v1112_v2 = vsel %vm538_vm0, %v1109_v55, %v1111_v56  ;;  %v1356_v4 = vrot.slane %v1260_v57, 2  ;;  %v1357_v8 = vrot.slane %v1261_v61, 2  ;;  %v3061_v57 = vld [vmem:[%s2912_s6 + $0x24] sm:$0xff]  }
  0x1f   : > { %v972_v6 = vadd.f32 %v940_v34, %v900_v59  ;;  %v973_v7 = vadd.f32 %v941_v39, %v901_v60  ;;  %v1508_v9 = vmul.f32 %v2923_v13, %v3001_v58  ;;  %v1359_v10 = vrot.slane %v1262_v3, 2  ;;  %v281_v39 = vld [vmem:[%s2912_s6 + $0x68] sm:$0x1] }
  0x20   : > { %v1509_v11 = vmul.f32 %v2925_v14, %v3001_v58  ;;  %v1580_v12 = vmul.f32 %v2923_v13, %v3008_v62  ;;  %v1581_v21 = vmul.f32 %v2925_v14, %v3008_v62  ;;  %v1358_v27 = vsel %vm787_vm1, %v1356_v4, %v1357_v8  ;;  %2723 = vmatpush3.bf16.msra.mxu0 %v2805_v0 }
  0x21   : > { %v1220_v23 = vadd.f32 %v1110_v1, %v972_v6  ;;  %v1221_v25 = vadd.f32 %v1112_v2, %v973_v7  ;;  %v3034_v28 = vunpack.c.l.bf16 %v2682_v5  ;;  %v1360_v31 = vsel %vm787_vm1, %v1357_v8, %v1359_v10  ;;  %2772 = vmatpush3.bf16.msra.mxu1 %v2805_v0  ;;  %2724 = vmatprep.subr.bf16.mxu0 %v2806_v29 }
  0x22   : > { %v1582_v32 = vmul.f32 %v3008_v62, %v2959_v26  ;;  %v1676_v33 = vrot.slane %v1580_v12, 1  ;;  %v1677_v34 = vrot.slane %v1581_v21, 1  ;;  %v1828_v37 = vmul.f32 %v2923_v13, %v3031_v22  ;;  %2765 = vmatprep.subr.bf16.mxu1 %v2806_v29 }
  0x23   : > { %v1468_v35 = vadd.f32 %v1358_v27, %v1220_v23  ;;  %v1469_v36 = vadd.f32 %v1360_v31, %v1221_v25  ;;  %v1829_v38 = vmul.f32 %v2925_v14, %v3031_v22  ;;  %v1830_v43 = vmul.f32 %v3031_v22, %v2959_v26 }
  0x24   : > { %v1678_v41 = vsel %vm538_vm0, %v1676_v33, %v1677_v34  ;;  %v1679_v42 = vrot.slane %v1582_v32, 1  ;;  %v3051_v45 = vunpack.c.h.bf16 %v2682_v5  ;;  %v1924_v48 = vrot.slane %v1828_v37, 2  ;;  %2725 = vmatpush3.bf16.msra.mxu0 %v2806_v29 }
  0x25   : > { %v1540_v46 = vadd.f32 %v1508_v9, %v1468_v35  ;;  %v1541_v47 = vadd.f32 %v1509_v11, %v1469_v36  ;;  %v1925_v50 = vrot.slane %v1829_v38, 2  ;;  %v1927_v54 = vrot.slane %v1830_v43, 2  ;;  %2773 = vmatpush3.bf16.msra.mxu1 %v2806_v29 }
  0x26   : > { %v1680_v53 = vsel %vm538_vm0, %v1677_v34, %v1679_v42  ;;  %v3056_v55 = vunpack.c.l.bf16 %v281_v39  ;;  %v3058_v56 = vunpack.c.l.bf16 %v282_v40  ;;  %v3064_v0 = vunpack.c.h.bf16 %v282_v40 }
  0x27   : > { %v1788_v59 = vadd.f32 %v1678_v41, %v1540_v46  ;;  %v1789_v60 = vadd.f32 %v1680_v53, %v1541_v47  ;;  %v1926_v61 = vsel %vm787_vm1, %v1924_v48, %v1925_v50  ;;  %v1928_v1 = vsel %vm787_vm1, %v1925_v50, %v1927_v54 }
  0x28   : > { %v3067_v2 = vunpack.c.l.bf16 %v284_v51  ;;  %v3069_v3 = vunpack.c.l.bf16 %v287_v52  ;;  %v386_v4 = vmul.f32 %v2992_v49, %v2934_v17  ;;  %v387_v7 = vmul.f32 %v3010_v63, %v2934_v17 }
  0x29   : > { %v2036_v5 = vadd.f32 %v1926_v61, %v1788_v59  ;;  %v2037_v6 = vadd.f32 %v1928_v1, %v1789_v60  ;;  %v3076_v8 = vunpack.c.l.bf16 %v3061_v57  ;;  %v466_v9 = vmul.f32 %v2992_v49, %v2939_v18 }
  0x2a   : > { %v467_v10 = vmul.f32 %v3010_v63, %v2939_v18  ;;  %v468_v11 = vmul.f32 %v2939_v18, %v3056_v55  ;;  %v715_v12 = vmul.f32 %v2992_v49, %v2944_v19  ;;  %v716_v23 = vmul.f32 %v3010_v63, %v2944_v19 }
  0x2b   : > { %v2068_v21 = vpack.c.bf16 %v2037_v6, %v2036_v5  ;;  %v717_v25 = vmul.f32 %v2944_v19, %v3056_v55  ;;  %v956_v27 = vmul.f32 %v2954_v24, %v3058_v56  ;;  %v579_v29 = vrot.slane %v466_v9, 1 }
  0x2c   : > { %v580_v31 = vrot.slane %v467_v10, 1  ;;  %v582_v32 = vrot.slane %v468_v11, 1  ;;  %v828_v33 = vrot.slane %v715_v12, 2  ;;  %v829_v34 = vrot.slane %v716_v23, 2 }
  0x2d   : > { %2726 = vmatprep.mubr.bf16.mxu0 %v2068_v21  ;;  %v831_v35 = vrot.slane %v717_v25, 2  ;;  %v957_v36 = vmul.f32 %v2954_v24, %v3064_v0  ;;  %v1036_v37 = vmul.f32 %v2967_v30, %v3058_v56  ;;  %v1037_v40 = vmul.f32 %v2967_v30, %v3064_v0 }
  0x2e   : > { %v581_v38 = vsel %vm538_vm0, %v579_v29, %v580_v31  ;;  %v583_v39 = vsel %vm538_vm0, %v580_v31, %v582_v32  ;;  %v1038_v41 = vmul.f32 %v2967_v30, %v3067_v2  ;;  %v830_v46 = vsel %vm787_vm1, %v828_v33, %v829_v34 }
  0x2f   : > { %v667_v42 = vadd.f32 %v581_v38, %v386_v4  ;;  %v668_v43 = vadd.f32 %v583_v39, %v387_v7  ;;  %v832_v47 = vsel %vm787_vm1, %v829_v34, %v831_v35  ;;  %v1148_v48 = vrot.slane %v1036_v37, 1 }
  0x30   : > { %v1149_v50 = vrot.slane %v1037_v40, 1  ;;  %v1151_v51 = vrot.slane %v1038_v41, 1  ;;  %v1284_v52 = vmul.f32 %v2983_v44, %v3058_v56  ;;  %v1285_v59 = vmul.f32 %v2983_v44, %v3064_v0  ;;  %v266_v40 = vld [vmem:[%s2912_s6 + $0x2c] sm:$0x1] }
  0x31   : > { %v916_v53 = vadd.f32 %v830_v46, %v667_v42  ;;  %v917_v54 = vadd.f32 %v832_v47, %v668_v43  ;;  %v1286_v60 = vmul.f32 %v2983_v44, %v3067_v2  ;;  %v1524_v5 = vmul.f32 %v3034_v28, %v3001_v58 }
  0x32   : > { %v1150_v61 = vsel %vm538_vm0, %v1148_v48, %v1149_v50  ;;  %v1152_v1 = vsel %vm538_vm0, %v1149_v50, %v1151_v51  ;;  %v1396_v4 = vrot.slane %v1284_v52, 2  ;;  %v1397_v9 = vrot.slane %v1285_v59, 2 }
  0x33   : > { %v988_v6 = vadd.f32 %v956_v27, %v916_v53  ;;  %v989_v7 = vadd.f32 %v957_v36, %v917_v54  ;;  %v1399_v10 = vrot.slane %v1286_v60, 2  ;;  %v1525_v11 = vmul.f32 %v3051_v45, %v3001_v58 }
  0x34   : > { %v1604_v12 = vmul.f32 %v3034_v28, %v3008_v62  ;;  %v1605_v21 = vmul.f32 %v3051_v45, %v3008_v62  ;;  %v1606_v23 = vmul.f32 %v3008_v62, %v3069_v3  ;;  %v1398_v27 = vsel %vm787_vm1, %v1396_v4, %v1397_v9 }
  0x35   : > { %v1236_v25 = vadd.f32 %v1150_v61, %v988_v6  ;;  %v1237_v29 = vadd.f32 %v1152_v1, %v989_v7  ;;  %v1400_v31 = vsel %vm787_vm1, %v1397_v9, %v1399_v10  ;;  %v1852_v35 = vmul.f32 %v3034_v28, %v3031_v22 }
  0x36   : > { %v1716_v32 = vrot.slane %v1604_v12, 1  ;;  %v1717_v33 = vrot.slane %v1605_v21, 1  ;;  %v1719_v34 = vrot.slane %v1606_v23, 1  ;;  %v1853_v38 = vmul.f32 %v3051_v45, %v3031_v22 }
  0x37   : > { %v1484_v36 = vadd.f32 %v1398_v27, %v1236_v25  ;;  %v1485_v37 = vadd.f32 %v1400_v31, %v1237_v29  ;;  %v1854_v39 = vmul.f32 %v3031_v22, %v3069_v3  ;;  %v1964_v43 = vrot.slane %v1852_v35, 2 }
  0x38   : > { %v1718_v41 = vsel %vm538_vm0, %v1716_v32, %v1717_v33  ;;  %v1720_v42 = vsel %vm538_vm0, %v1717_v33, %v1719_v34  ;;  %v3134_v46 = vunpack.c.h.bf16 %v3061_v57  ;;  %v1965_v50 = vrot.slane %v1853_v38, 2 }
  0x39   : > { %v1556_v47 = vadd.f32 %v1524_v5, %v1484_v36  ;;  %v1557_v48 = vadd.f32 %v1525_v11, %v1485_v37  ;;  %v1967_v51 = vrot.slane %v1854_v39, 2  ;;  %v3136_v52 = vunpack.c.l.bf16 %v266_v40 }
  0x3a   : > { %v372_v53 = vmul.f32 %v2934_v17, %v2927_v15  ;;  %v373_v54 = vmul.f32 %v2934_v17, %v2929_v16  ;;  %v445_v59 = vmul.f32 %v2939_v18, %v2927_v15  ;;  %v1966_v57 = vsel %vm787_vm1, %v1964_v43, %v1965_v50 }
  0x3b   : > { %v1804_v60 = vadd.f32 %v1718_v41, %v1556_v47  ;;  %v1805_v61 = vadd.f32 %v1720_v42, %v1557_v48  ;;  %v1968_v1 = vsel %vm787_vm1, %v1965_v50, %v1967_v51  ;;  %v446_v4 = vmul.f32 %v2939_v18, %v2929_v16 }
  0x3c   : > { %v447_v5 = vmul.f32 %v2939_v18, %v2946_v20  ;;  %v544_v6 = vrot.slane %v445_v59, 1  ;;  %v694_v7 = vmul.f32 %v2944_v19, %v2927_v15  ;;  %v695_v11 = vmul.f32 %v2944_v19, %v2929_v16 }
  0x3d   : > { %v2052_v9 = vadd.f32 %v1966_v57, %v1804_v60  ;;  %v2053_v10 = vadd.f32 %v1968_v1, %v1805_v61  ;;  %v696_v12 = vmul.f32 %v2944_v19, %v2946_v20  ;;  %v545_v21 = vrot.slane %v446_v4, 1 }
  0x3e   : > { %v547_v23 = vrot.slane %v447_v5, 1  ;;  %v793_v25 = vrot.slane %v694_v7, 2  ;;  %v942_v29 = vmul.f32 %v2923_v13, %v2954_v24  ;;  %v794_v31 = vrot.slane %v695_v11, 2 }
  0x3f   : > { %v2076_v27 = vpack.c.bf16 %v2053_v10, %v2052_v9  ;;  %v796_v32 = vrot.slane %v696_v12, 2  ;;  %v943_v15 = vmul.f32 %v2925_v14, %v2954_v24  ;;  %v546_v33 = vsel %vm538_vm0, %v544_v6, %v545_v21 }
  0x40   : > { %v548_v34 = vsel %vm538_vm0, %v545_v21, %v547_v23  ;;  %v1015_v16 = vmul.f32 %v2923_v13, %v2967_v30  ;;  %v1016_v20 = vmul.f32 %v2925_v14, %v2967_v30  ;;  %v653_v35 = vadd.f32 %v546_v33, %v372_v53  ;;  %v288_v21 = vld [vmem:[%s2912_s6 + $0x84] sm:$0xff]  }
  0x41   : > { %2742 = vmatprep.mubr.bf16.mxu1 %v2076_v27  ;;  %v654_v36 = vadd.f32 %v548_v34, %v373_v54  ;;  %v795_v37 = vsel %vm787_vm1, %v793_v25, %v794_v31  ;;  %v797_v38 = vsel %vm787_vm1, %v794_v31, %v796_v32  ;;  %v1017_v39 = vmul.f32 %v2967_v30, %v2959_v26  ;;  %v290_v34 = vld [vmem:[%s2912_s6 + $0x8c] sm:$0x1] }
  0x42   : > { %v1113_v40 = vrot.slane %v1015_v16, 1  ;;  %v1114_v41 = vrot.slane %v1016_v20, 1  ;;  %v1263_v42 = vmul.f32 %v2923_v13, %v2983_v44  ;;  %v902_v43 = vadd.f32 %v795_v37, %v653_v35 }
  0x43   : > { %v903_v47 = vadd.f32 %v797_v38, %v654_v36  ;;  %v1264_v48 = vmul.f32 %v2925_v14, %v2983_v44  ;;  %v1265_v50 = vmul.f32 %v2983_v44, %v2959_v26  ;;  %v1116_v53 = vrot.slane %v1017_v39, 1 }
  0x44   : > { %v1115_v51 = vsel %vm538_vm0, %v1113_v40, %v1114_v41  ;;  %v1361_v54 = vrot.slane %v1263_v42, 2  ;;  %v1510_v59 = vmul.f32 %v3001_v58, %v3076_v8  ;;  %v974_v60 = vadd.f32 %v942_v29, %v902_v43 }
  0x45   : > { %v975_v61 = vadd.f32 %v943_v15, %v903_v47  ;;  %v1362_v57 = vrot.slane %v1264_v48, 2  ;;  %v1364_v1 = vrot.slane %v1265_v50, 2  ;;  %v1117_v4 = vsel %vm538_vm0, %v1114_v41, %v1116_v53 }
  0x46   : > { %v1511_v5 = vmul.f32 %v3001_v58, %v3134_v46  ;;  %v1583_v6 = vmul.f32 %v3008_v62, %v3076_v8  ;;  %v1584_v7 = vmul.f32 %v3008_v62, %v3134_v46  ;;  %v1222_v9 = vadd.f32 %v1115_v51, %v974_v60 }
  0x47   : > { %v1223_v10 = vadd.f32 %v1117_v4, %v975_v61  ;;  %v1363_v11 = vsel %vm787_vm1, %v1361_v54, %v1362_v57  ;;  %v1365_v12 = vsel %vm787_vm1, %v1362_v57, %v1364_v1  ;;  %v1585_v23 = vmul.f32 %v3008_v62, %v3136_v52 }
  0x48   : > { %v1681_v25 = vrot.slane %v1583_v6, 1  ;;  %v1682_v29 = vrot.slane %v1584_v7, 1  ;;  %v1831_v27 = vmul.f32 %v3031_v22, %v3076_v8  ;;  %v1470_v31 = vadd.f32 %v1363_v11, %v1222_v9 }
  0x49   : > { %v1471_v32 = vadd.f32 %v1365_v12, %v1223_v10  ;;  %v1832_v15 = vmul.f32 %v3031_v22, %v3134_v46  ;;  %v1833_v33 = vmul.f32 %v3031_v22, %v3136_v52  ;;  %v1684_v20 = vrot.slane %v1585_v23, 1 }
  0x4a   : > { %v1683_v16 = vsel %vm538_vm0, %v1681_v25, %v1682_v29  ;;  %v1929_v35 = vrot.slane %v1831_v27, 2  ;;  %v3199_v36 = vunpack.c.l.bf16 %v288_v21  ;;  %v1542_v37 = vadd.f32 %v1510_v59, %v1470_v31 }
  0x4b   : > { %v1543_v38 = vadd.f32 %v1511_v5, %v1471_v32  ;;  %v1930_v39 = vrot.slane %v1832_v15, 2  ;;  %v1932_v40 = vrot.slane %v1833_v33, 2  ;;  %v1685_v41 = vsel %vm538_vm0, %v1682_v29, %v1684_v20 }
  0x4c   : > { %v3202_v42 = vunpack.c.h.bf16 %v288_v21  ;;  %v3204_v43 = vunpack.c.l.bf16 %v290_v34  ;;  %v388_v47 = vmul.f32 %v2934_v17, %v3058_v56  ;;  %v1790_v48 = vadd.f32 %v1683_v16, %v1542_v37 }
  0x4d   : > { %v1791_v50 = vadd.f32 %v1685_v41, %v1543_v38  ;;  %v1931_v51 = vsel %vm787_vm1, %v1929_v35, %v1930_v39  ;;  %v1933_v53 = vsel %vm787_vm1, %v1930_v39, %v1932_v40  ;;  %v389_v54 = vmul.f32 %v2934_v17, %v3064_v0 }
  0x4e   : > { %v469_v59 = vmul.f32 %v2939_v18, %v3058_v56  ;;  %v470_v60 = vmul.f32 %v2939_v18, %v3064_v0  ;;  %v471_v61 = vmul.f32 %v2939_v18, %v3067_v2  ;;  %v2038_v57 = vadd.f32 %v1931_v51, %v1790_v48 }
  0x4f   : > { %v2039_v1 = vadd.f32 %v1933_v53, %v1791_v50  ;;  %v718_v4 = vmul.f32 %v2944_v19, %v3058_v56  ;;  %v719_v5 = vmul.f32 %v2944_v19, %v3064_v0  ;;  %v720_v10 = vmul.f32 %v2944_v19, %v3067_v2 }
  0x50   : > { %v584_v6 = vrot.slane %v469_v59, 1  ;;  %v585_v7 = vrot.slane %v470_v60, 1  ;;  %v587_v9 = vrot.slane %v471_v61, 1  ;;  %v958_v23 = vmul.f32 %v3034_v28, %v2954_v24 }
  0x51   : > { %v2069_v11 = vpack.c.bf16 %v2039_v1, %v2038_v57  ;;  %v833_v12 = vrot.slane %v718_v4, 2  ;;  %v834_v21 = vrot.slane %v719_v5, 2  ;;  %v836_v27 = vrot.slane %v720_v10, 2 }
  0x52   : > { %v586_v25 = vsel %vm538_vm0, %v584_v6, %v585_v7  ;;  %v588_v29 = vsel %vm538_vm0, %v585_v7, %v587_v9  ;;  %v959_v31 = vmul.f32 %v3051_v45, %v2954_v24  ;;  %v1039_v34 = vmul.f32 %v3034_v28, %v2967_v30 }
  0x53   : > { %2727 = vmatmul.mubr.bf16.vlgmr.msra.gmra.mrb[0].mxu0 %v2069_v11  ;;  %v669_v32 = vadd.f32 %v586_v25, %v388_v47  ;;  %v670_v15 = vadd.f32 %v588_v29, %v389_v54  ;;  %v835_v33 = vsel %vm787_vm1, %v833_v12, %v834_v21  ;;  %v837_v16 = vsel %vm787_vm1, %v834_v21, %v836_v27 }
  0x54   : > { %v1040_v20 = vmul.f32 %v3051_v45, %v2967_v30  ;;  %v1041_v35 = vmul.f32 %v2967_v30, %v3069_v3  ;;  %v1287_v37 = vmul.f32 %v3034_v28, %v2983_v44  ;;  %v1153_v40 = vrot.slane %v1039_v34, 1 }
  0x55   : > { %v918_v38 = vadd.f32 %v835_v33, %v669_v32  ;;  %v919_v39 = vadd.f32 %v837_v16, %v670_v15  ;;  %v1288_v41 = vmul.f32 %v3051_v45, %v2983_v44  ;;  %v1289_v50 = vmul.f32 %v2983_v44, %v3069_v3  ;;  %v269_v16 = vld [vmem:[%s2912_s6 + $0x38] sm:$0x1] }
  0x56   : > { %v1154_v47 = vrot.slane %v1040_v20, 1  ;;  %v1156_v48 = vrot.slane %v1041_v35, 1  ;;  %v1401_v51 = vrot.slane %v1287_v37, 2  ;;  %v1526_v60 = vmul.f32 %v3001_v58, %v3199_v36 }
  0x57   : > { %v990_v53 = vadd.f32 %v958_v23, %v918_v38  ;;  %v991_v54 = vadd.f32 %v959_v31, %v919_v39  ;;  %v1402_v59 = vrot.slane %v1288_v41, 2  ;;  %v1404_v1 = vrot.slane %v1289_v50, 2  ;;  %v2679_v23 = vld [vmem:[%s2912_s6 + $0x30] sm:$0xff]  }
  0x58   : > { %v1155_v61 = vsel %vm538_vm0, %v1153_v40, %v1154_v47  ;;  %v1157_v57 = vsel %vm538_vm0, %v1154_v47, %v1156_v48  ;;  %v1527_v4 = vmul.f32 %v3001_v58, %v3202_v42  ;;  %v1607_v9 = vmul.f32 %v3008_v62, %v3199_v36 }
  0x59   : > { %v1238_v5 = vadd.f32 %v1155_v61, %v990_v53  ;;  %v1239_v6 = vadd.f32 %v1157_v57, %v991_v54  ;;  %v1403_v7 = vsel %vm787_vm1, %v1401_v51, %v1402_v59  ;;  %v1405_v10 = vsel %vm787_vm1, %v1402_v59, %v1404_v1 }
  0x5a   : > { %v1608_v11 = vmul.f32 %v3008_v62, %v3202_v42  ;;  %v1609_v12 = vmul.f32 %v3008_v62, %v3204_v43  ;;  %v1855_v21 = vmul.f32 %v3031_v22, %v3199_v36  ;;  %v1721_v27 = vrot.slane %v1607_v9, 1 }
  0x5b   : > { %v1486_v25 = vadd.f32 %v1403_v7, %v1238_v5  ;;  %v1487_v29 = vadd.f32 %v1405_v10, %v1239_v6  ;;  %v1856_v31 = vmul.f32 %v3031_v22, %v3202_v42  ;;  %v1857_v33 = vmul.f32 %v3031_v22, %v3204_v43 }
  0x5c   : > { %v1722_v32 = vrot.slane %v1608_v11, 1  ;;  %v1724_v15 = vrot.slane %v1609_v12, 1  ;;  %v1969_v34 = vrot.slane %v1855_v21, 2  ;;  %v3266_v38 = vunpack.c.l.bf16 %v2679_v23 }
  0x5d   : > { %v1558_v20 = vadd.f32 %v1526_v60, %v1486_v25  ;;  %v1559_v35 = vadd.f32 %v1527_v4, %v1487_v29  ;;  %v1970_v37 = vrot.slane %v1856_v31, 2  ;;  %v1972_v41 = vrot.slane %v1857_v33, 2 }
  0x5e   : > { %v1723_v39 = vsel %vm538_vm0, %v1721_v27, %v1722_v32  ;;  %v1725_v40 = vsel %vm538_vm0, %v1722_v32, %v1724_v15  ;;  %v3270_v47 = vunpack.c.h.bf16 %v2679_v23  ;;  %v3273_v53 = vunpack.c.l.bf16 %v269_v16 }
  0x5f   : > { %v1806_v48 = vadd.f32 %v1723_v39, %v1558_v20  ;;  %v1807_v50 = vadd.f32 %v1725_v40, %v1559_v35  ;;  %v1971_v51 = vsel %vm787_vm1, %v1969_v34, %v1970_v37  ;;  %v1973_v54 = vsel %vm787_vm1, %v1970_v37, %v1972_v41 }
  0x60   : > { %v374_v59 = vmul.f32 %v2923_v13, %v2934_v17  ;;  %v375_v60 = vmul.f32 %v2925_v14, %v2934_v17  ;;  %v448_v61 = vmul.f32 %v2923_v13, %v2939_v18  ;;  %v449_v4 = vmul.f32 %v2925_v14, %v2939_v18 }
  0x61   : > { %v2054_v57 = vadd.f32 %v1971_v51, %v1806_v48  ;;  %v2055_v1 = vadd.f32 %v1973_v54, %v1807_v50  ;;  %v450_v5 = vmul.f32 %v2939_v18, %v2959_v26  ;;  %v697_v7 = vmul.f32 %v2923_v13, %v2944_v19 }
  0x62   : > { %v549_v6 = vrot.slane %v448_v61, 1  ;;  %v698_v9 = vmul.f32 %v2925_v14, %v2944_v19  ;;  %v699_v10 = vmul.f32 %v2944_v19, %v2959_v26  ;;  %v550_v12 = vrot.slane %v449_v4, 1 }
  0x63   : > { %v2077_v11 = vpack.c.bf16 %v2055_v1, %v2054_v57  ;;  %v552_v21 = vrot.slane %v450_v5, 1  ;;  %v944_v23 = vmul.f32 %v2954_v24, %v3076_v8  ;;  %v798_v25 = vrot.slane %v697_v7, 2 }
  0x64   : > { %v799_v29 = vrot.slane %v698_v9, 2  ;;  %v801_v27 = vrot.slane %v699_v10, 2  ;;  %v945_v31 = vmul.f32 %v2954_v24, %v3134_v46  ;;  %v551_v13 = vsel %vm538_vm0, %v549_v6, %v550_v12 }
  0x65   : > { %2743 = vmatmul.mubr.bf16.vlgmr.msra.gmra.mrb[0].mxu1 %v2077_v11  ;;  %v553_v14 = vsel %vm538_vm0, %v550_v12, %v552_v21  ;;  %v1018_v26 = vmul.f32 %v2967_v30, %v3076_v8  ;;  %v1019_v32 = vmul.f32 %v2967_v30, %v3134_v46  ;;  %v655_v15 = vadd.f32 %v551_v13, %v374_v59 }
  0x66   : > { %v656_v33 = vadd.f32 %v553_v14, %v375_v60  ;;  %v800_v34 = vsel %vm787_vm1, %v798_v25, %v799_v29  ;;  %v802_v16 = vsel %vm787_vm1, %v799_v29, %v801_v27  ;;  %v1020_v20 = vmul.f32 %v2967_v30, %v3136_v52 }
  0x67   : > { %v1118_v35 = vrot.slane %v1018_v26, 1  ;;  %v1119_v37 = vrot.slane %v1019_v32, 1  ;;  %v1266_v39 = vmul.f32 %v2983_v44, %v3076_v8  ;;  %v904_v40 = vadd.f32 %v800_v34, %v655_v15  ;;  %v293_v15 = vld [vmem:[%s2912_s6 + $0x98] sm:$0x1] }
  0x68   : > { %v905_v41 = vadd.f32 %v802_v16, %v656_v33  ;;  %v1267_v48 = vmul.f32 %v2983_v44, %v3134_v46  ;;  %v1268_v50 = vmul.f32 %v2983_v44, %v3136_v52  ;;  %v1121_v54 = vrot.slane %v1020_v20, 1 }
  0x69   : > { %v1120_v51 = vsel %vm538_vm0, %v1118_v35, %v1119_v37  ;;  %v1366_v59 = vrot.slane %v1266_v39, 2  ;;  %v1512_v60 = vmul.f32 %v3266_v38, %v3001_v58  ;;  %v976_v61 = vadd.f32 %v944_v23, %v904_v40  ;;  %v2683_v23 = vld [vmem:[%s2912_s6 + $0x90] sm:$0xff]  }
  0x6a   : > { %v977_v57 = vadd.f32 %v945_v31, %v905_v41  ;;  %v1367_v1 = vrot.slane %v1267_v48, 2  ;;  %v1369_v4 = vrot.slane %v1268_v50, 2  ;;  %v1122_v5 = vsel %vm538_vm0, %v1119_v37, %v1121_v54 }
  0x6b   : > { %v1513_v6 = vmul.f32 %v3270_v47, %v3001_v58  ;;  %v1586_v7 = vmul.f32 %v3266_v38, %v3008_v62  ;;  %v1587_v9 = vmul.f32 %v3270_v47, %v3008_v62  ;;  %v1224_v10 = vadd.f32 %v1120_v51, %v976_v61 }
  0x6c   : > { %v1225_v11 = vadd.f32 %v1122_v5, %v977_v57  ;;  %v1368_v12 = vsel %vm787_vm1, %v1366_v59, %v1367_v1  ;;  %v1370_v21 = vsel %vm787_vm1, %v1367_v1, %v1369_v4  ;;  %v1588_v25 = vmul.f32 %v3008_v62, %v3273_v53 }
  0x6d   : > { %v1686_v29 = vrot.slane %v1586_v7, 1  ;;  %v1687_v27 = vrot.slane %v1587_v9, 1  ;;  %v1834_v31 = vmul.f32 %v3266_v38, %v3031_v22  ;;  %v1472_v13 = vadd.f32 %v1368_v12, %v1224_v10 }
  0x6e   : > { %v1473_v14 = vadd.f32 %v1370_v21, %v1225_v11  ;;  %v1835_v26 = vmul.f32 %v3270_v47, %v3031_v22  ;;  %v1836_v32 = vmul.f32 %v3031_v22, %v3273_v53  ;;  %v1689_v34 = vrot.slane %v1588_v25, 1 }
  0x6f   : > { %v1688_v33 = vsel %vm538_vm0, %v1686_v29, %v1687_v27  ;;  %v1934_v16 = vrot.slane %v1834_v31, 2  ;;  %v3335_v20 = vunpack.c.l.bf16 %v2683_v23  ;;  %v1544_v35 = vadd.f32 %v1512_v60, %v1472_v13 }
  0x70   : > { %v1545_v37 = vadd.f32 %v1513_v6, %v1473_v14  ;;  %v1935_v39 = vrot.slane %v1835_v26, 2  ;;  %v1937_v40 = vrot.slane %v1836_v32, 2  ;;  %v1690_v41 = vsel %vm538_vm0, %v1687_v27, %v1689_v34 }
  0x71   : > { %v3338_v48 = vunpack.c.h.bf16 %v2683_v23  ;;  %v3340_v50 = vunpack.c.l.bf16 %v293_v15  ;;  %v390_v51 = vmul.f32 %v3034_v28, %v2934_v17  ;;  %v1792_v54 = vadd.f32 %v1688_v33, %v1544_v35 }
  0x72   : > { %v1793_v59 = vadd.f32 %v1690_v41, %v1545_v37  ;;  %v1936_v61 = vsel %vm787_vm1, %v1934_v16, %v1935_v39  ;;  %v1938_v57 = vsel %vm787_vm1, %v1935_v39, %v1937_v40  ;;  %v391_v60 = vmul.f32 %v3051_v45, %v2934_v17 }
  0x73   : > { %v472_v1 = vmul.f32 %v3034_v28, %v2939_v18  ;;  %v473_v4 = vmul.f32 %v3051_v45, %v2939_v18  ;;  %v474_v5 = vmul.f32 %v2939_v18, %v3069_v3  ;;  %v2040_v6 = vadd.f32 %v1936_v61, %v1792_v54 }
  0x74   : > { %v2041_v7 = vadd.f32 %v1938_v57, %v1793_v59  ;;  %v721_v9 = vmul.f32 %v3034_v28, %v2944_v19  ;;  %v722_v10 = vmul.f32 %v3051_v45, %v2944_v19  ;;  %v723_v23 = vmul.f32 %v2944_v19, %v3069_v3 }
  0x75   : > { %v589_v11 = vrot.slane %v472_v1, 1  ;;  %v590_v12 = vrot.slane %v473_v4, 1  ;;  %v592_v21 = vrot.slane %v474_v5, 1  ;;  %v960_v31 = vmul.f32 %v2954_v24, %v3199_v36 }
  0x76   : > { %v2070_v25 = vpack.c.bf16 %v2041_v7, %v2040_v6  ;;  %v838_v29 = vrot.slane %v721_v9, 2  ;;  %v839_v27 = vrot.slane %v722_v10, 2  ;;  %v841_v28 = vrot.slane %v723_v23, 2 }
  0x77   : > { %v591_v13 = vsel %vm538_vm0, %v589_v11, %v590_v12  ;;  %v593_v14 = vsel %vm538_vm0, %v590_v12, %v592_v21  ;;  %v961_v45 = vmul.f32 %v2954_v24, %v3202_v42  ;;  %v1042_v3 = vmul.f32 %v2967_v30, %v3199_v36 }
  0x78   : > { %2730 = vmatprep.mubr.bf16.mxu0 %v2070_v25  ;;  %v671_v26 = vadd.f32 %v591_v13, %v390_v51  ;;  %v672_v32 = vadd.f32 %v593_v14, %v391_v60  ;;  %v840_v15 = vsel %vm787_vm1, %v838_v29, %v839_v27  ;;  %v842_v33 = vsel %vm787_vm1, %v839_v27, %v841_v28 }
  0x79   : > { %v1043_v34 = vmul.f32 %v2967_v30, %v3202_v42  ;;  %v1044_v16 = vmul.f32 %v2967_v30, %v3204_v43  ;;  %v1290_v35 = vmul.f32 %v2983_v44, %v3199_v36  ;;  %v1158_v40 = vrot.slane %v1042_v3, 1 }
  0x7a   : > { %v920_v37 = vadd.f32 %v840_v15, %v671_v26  ;;  %v921_v39 = vadd.f32 %v842_v33, %v672_v32  ;;  %v1291_v41 = vmul.f32 %v2983_v44, %v3202_v42  ;;  %v1292_v59 = vmul.f32 %v2983_v44, %v3204_v43  ;;  %v272_v33 = vld [vmem:[%s2912_s6 + $0x44] sm:$0x1] }
  0x7b   : > { %v1159_v51 = vrot.slane %v1043_v34, 1  ;;  %v1161_v54 = vrot.slane %v1044_v16, 1  ;;  %v1406_v61 = vrot.slane %v1290_v35, 2  ;;  %v1528_v4 = vmul.f32 %v3335_v20, %v3001_v58 }
  0x7c   : > { %v992_v57 = vadd.f32 %v960_v31, %v920_v37  ;;  %v993_v60 = vadd.f32 %v961_v45, %v921_v39  ;;  %v1407_v1 = vrot.slane %v1291_v41, 2  ;;  %v1409_v7 = vrot.slane %v1292_v59, 2  ;;  %v270_v31 = vld [vmem:[%s2912_s6 + $0x3c] sm:$0xff]  }
  0x7d   : > { %v1160_v5 = vsel %vm538_vm0, %v1158_v40, %v1159_v51  ;;  %v1162_v6 = vsel %vm538_vm0, %v1159_v51, %v1161_v54  ;;  %v1529_v9 = vmul.f32 %v3338_v48, %v3001_v58  ;;  %v1610_v21 = vmul.f32 %v3335_v20, %v3008_v62 }
  0x7e   : > { %v1240_v10 = vadd.f32 %v1160_v5, %v992_v57  ;;  %v1241_v11 = vadd.f32 %v1162_v6, %v993_v60  ;;  %v1408_v12 = vsel %vm787_vm1, %v1406_v61, %v1407_v1  ;;  %v1410_v23 = vsel %vm787_vm1, %v1407_v1, %v1409_v7 }
  0x7f   : > { %v1611_v25 = vmul.f32 %v3338_v48, %v3008_v62  ;;  %v1612_v29 = vmul.f32 %v3008_v62, %v3340_v50  ;;  %v1858_v27 = vmul.f32 %v3335_v20, %v3031_v22  ;;  %v1726_v28 = vrot.slane %v1610_v21, 1  ;;  %v3427_v21 = vld [vmem:[%s4307_s1 + $0x2] ss:$0 sm:$0xff] }
  0x80   : > { %v1488_v13 = vadd.f32 %v1408_v12, %v1240_v10  ;;  %v1489_v14 = vadd.f32 %v1410_v23, %v1241_v11  ;;  %v1859_v45 = vmul.f32 %v3338_v48, %v3031_v22  ;;  %v1860_v15 = vmul.f32 %v3031_v22, %v3340_v50 }
  0x81   : > { %v1727_v26 = vrot.slane %v1611_v25, 1  ;;  %v1729_v32 = vrot.slane %v1612_v29, 1  ;;  %v1974_v3 = vrot.slane %v1858_v27, 2  ;;  %v3402_v37 = vunpack.c.l.bf16 %v270_v31 }
  0x82   : > { %v1560_v34 = vadd.f32 %v1528_v4, %v1488_v13  ;;  %v1561_v16 = vadd.f32 %v1529_v9, %v1489_v14  ;;  %v1975_v35 = vrot.slane %v1859_v45, 2  ;;  %v1977_v41 = vrot.slane %v1860_v15, 2 }
  0x83   : > { %v1728_v39 = vsel %vm538_vm0, %v1726_v28, %v1727_v26  ;;  %v1730_v40 = vsel %vm538_vm0, %v1727_v26, %v1729_v32  ;;  %v3406_v51 = vunpack.c.h.bf16 %v270_v31  ;;  %v3409_v57 = vunpack.c.l.bf16 %v272_v33 }
  0x84   : > { %v1808_v54 = vadd.f32 %v1728_v39, %v1560_v34  ;;  %v1809_v59 = vadd.f32 %v1730_v40, %v1561_v16  ;;  %v1976_v61 = vsel %vm787_vm1, %v1974_v3, %v1975_v35  ;;  %v1978_v60 = vsel %vm787_vm1, %v1975_v35, %v1977_v41  ;;  %v3453_v3 = vld [vmem:[%s4307_s1 + $0x4] ss:$0 sm:$0xff] }
  0x85   : > { %v376_v1 = vmul.f32 %v2934_v17, %v3076_v8  ;;  %v377_v4 = vmul.f32 %v2934_v17, %v3134_v46  ;;  %v451_v5 = vmul.f32 %v2939_v18, %v3076_v8  ;;  %v452_v9 = vmul.f32 %v2939_v18, %v3134_v46 }
  0x86   : > { %v2056_v6 = vadd.f32 %v1976_v61, %v1808_v54  ;;  %v2057_v7 = vadd.f32 %v1978_v60, %v1809_v59  ;;  %v453_v10 = vmul.f32 %v2939_v18, %v3136_v52  ;;  %v700_v12 = vmul.f32 %v2944_v19, %v3076_v8  ;;  %v3438_v8 = vld [vmem:[%s4307_s1 + $0x3] ss:$0 sm:$0xff] }
  0x87   : > { %v554_v11 = vrot.slane %v451_v5, 1  ;;  %v701_v17 = vmul.f32 %v3427_v21, %v3134_v46  ;;  %v702_v23 = vmul.f32 %v3427_v21, %v3136_v52  ;;  %v555_v29 = vrot.slane %v452_v9, 1 }
  0x88   : > { %v2078_v25 = vpack.c.bf16 %v2057_v7, %v2056_v6  ;;  %v557_v27 = vrot.slane %v453_v10, 1  ;;  %v946_v18 = vmul.f32 %v3266_v38, %v2954_v24  ;;  %v803_v31 = vrot.slane %v700_v12, 2 }
  0x89   : > { %v804_v13 = vrot.slane %v701_v17, 2  ;;  %v806_v19 = vrot.slane %v702_v23, 2  ;;  %v947_v46 = vmul.f32 %v3438_v8, %v3270_v47  ;;  %v556_v52 = vsel %vm538_vm0, %v554_v11, %v555_v29 }
  0x8a   : > { %2746 = vmatprep.mubr.bf16.mxu1 %v2078_v25  ;;  %v558_v14 = vsel %vm538_vm0, %v555_v29, %v557_v27  ;;  %v1021_v28 = vmul.f32 %v3266_v38, %v2967_v30  ;;  %v1022_v24 = vmul.f32 %v3270_v47, %v2967_v30  ;;  %v657_v45 = vadd.f32 %v556_v52, %v376_v1  ;;  %v294_v25 = vld [vmem:[%s2912_s6 + $0x9c] sm:$0xff]   ;;  %v296_v52 = vld [vmem:[%s2912_s6 + $0xa4] sm:$0x1] }
  0x8b   : > { %v658_v26 = vadd.f32 %v558_v14, %v377_v4  ;;  %v805_v32 = vsel %vm787_vm1, %v803_v31, %v804_v13  ;;  %v807_v15 = vsel %vm787_vm1, %v804_v13, %v806_v19  ;;  %v1023_v33 = vmul.f32 %v3453_v3, %v3273_v53 }
  0x8c   : > { %v1123_v34 = vrot.slane %v1021_v28, 1  ;;  %v1124_v16 = vrot.slane %v1022_v24, 1  ;;  %v1269_v35 = vmul.f32 %v3266_v38, %v2983_v44  ;;  %v906_v30 = vadd.f32 %v805_v32, %v657_v45 }
  0x8d   : > { %v907_v39 = vadd.f32 %v807_v15, %v658_v26  ;;  %v1270_v40 = vmul.f32 %v3270_v47, %v2983_v44  ;;  %v1271_v41 = vmul.f32 %v2983_v44, %v3273_v53  ;;  %v1126_v59 = vrot.slane %v1023_v33, 1 }
  0x8e   : > { %v1125_v54 = vsel %vm538_vm0, %v1123_v34, %v1124_v16  ;;  %v1371_v61 = vrot.slane %v1269_v35, 2  ;;  %v1514_v60 = vmul.f32 %v3001_v58, %v3402_v37  ;;  %v978_v1 = vadd.f32 %v946_v18, %v906_v30 }
  0x8f   : > { %v979_v4 = vadd.f32 %v947_v46, %v907_v39  ;;  %v1372_v5 = vrot.slane %v1270_v40, 2  ;;  %v1374_v6 = vrot.slane %v1271_v41, 2  ;;  %v1127_v7 = vsel %vm538_vm0, %v1124_v16, %v1126_v59  ;;  %v3507_v59 = vld [vmem:[%s4307_s1 + $0x1] ss:$0 sm:$0xff] }
  0x90   : > { %v1515_v9 = vmul.f32 %v3001_v58, %v3406_v51  ;;  %v1589_v44 = vmul.f32 %v3008_v62, %v3402_v37  ;;  %v1590_v10 = vmul.f32 %v3008_v62, %v3406_v51  ;;  %v1226_v11 = vadd.f32 %v1125_v54, %v978_v1 }
  0x91   : > { %v1227_v12 = vadd.f32 %v1127_v7, %v979_v4  ;;  %v1373_v17 = vsel %vm787_vm1, %v1371_v61, %v1372_v5  ;;  %v1375_v23 = vsel %vm787_vm1, %v1372_v5, %v1374_v6  ;;  %v1591_v29 = vmul.f32 %v3008_v62, %v3409_v57 }
  0x92   : > { %v1691_v27 = vrot.slane %v1589_v44, 1  ;;  %v1692_v18 = vrot.slane %v1590_v10, 1  ;;  %v1837_v58 = vmul.f32 %v3031_v22, %v3402_v37  ;;  %v1474_v31 = vadd.f32 %v1373_v17, %v1226_v11 }
  0x93   : > { %v1475_v13 = vadd.f32 %v1375_v23, %v1227_v12  ;;  %v1838_v19 = vmul.f32 %v3031_v22, %v3406_v51  ;;  %v1839_v46 = vmul.f32 %v3031_v22, %v3409_v57  ;;  %v1694_v28 = vrot.slane %v1591_v29, 1  ;;  %v3496_v22 = vld [vmem:[%s4307_s1] ss:$0 sm:$0xff] }
  0x94   : > { %v1693_v14 = vsel %vm538_vm0, %v1691_v27, %v1692_v18  ;;  %v1939_v24 = vrot.slane %v1837_v58, 2  ;;  %v3486_v45 = vunpack.c.l.bf16 %v294_v25  ;;  %v1546_v62 = vadd.f32 %v1514_v60, %v1474_v31 }
  0x95   : > { %v1547_v26 = vadd.f32 %v1515_v9, %v1475_v13  ;;  %v1940_v32 = vrot.slane %v1838_v19, 2  ;;  %v1942_v15 = vrot.slane %v1839_v46, 2  ;;  %v1695_v33 = vsel %vm538_vm0, %v1692_v18, %v1694_v28 }
  0x96   : > { %v3489_v34 = vunpack.c.h.bf16 %v294_v25  ;;  %v3491_v16 = vunpack.c.l.bf16 %v296_v52  ;;  %v392_v35 = vmul.f32 %v3496_v22, %v3199_v36  ;;  %v1794_v30 = vadd.f32 %v1693_v14, %v1546_v62  ;;  %v3538_v52 = vld [vmem:[%s4307_s1 + $0x5] ss:$0 sm:$0xff] }
  0x97   : > { %v1795_v39 = vadd.f32 %v1695_v33, %v1547_v26  ;;  %v1941_v40 = vsel %vm787_vm1, %v1939_v24, %v1940_v32  ;;  %v1943_v41 = vsel %vm787_vm1, %v1940_v32, %v1942_v15  ;;  %v393_v54 = vmul.f32 %v3496_v22, %v3202_v42 }
  0x98   : > { %v475_v61 = vmul.f32 %v3507_v59, %v3199_v36  ;;  %v476_v60 = vmul.f32 %v3507_v59, %v3202_v42  ;;  %v477_v1 = vmul.f32 %v3507_v59, %v3204_v43  ;;  %v2042_v4 = vadd.f32 %v1941_v40, %v1794_v30 }
  0x99   : > { %v2043_v5 = vadd.f32 %v1943_v41, %v1795_v39  ;;  %v724_v6 = vmul.f32 %v3427_v21, %v3199_v36  ;;  %v725_v7 = vmul.f32 %v3427_v21, %v3202_v42  ;;  %v726_v11 = vmul.f32 %v3427_v21, %v3204_v43  ;;  %v3549_v41 = vld [vmem:[%s4307_s1 + $0x6] ss:$0 sm:$0xff] }
  0x9a   : > { %v594_v9 = vrot.slane %v475_v61, 1  ;;  %v595_v44 = vrot.slane %v476_v60, 1  ;;  %v597_v10 = vrot.slane %v477_v1, 1  ;;  %v962_v25 = vmul.f32 %v3438_v8, %v3335_v20 }
  0x9b   : > { %v2071_v12 = vpack.c.bf16 %v2043_v5, %v2042_v4  ;;  %v843_v17 = vrot.slane %v724_v6, 2  ;;  %v844_v23 = vrot.slane %v725_v7, 2  ;;  %v846_v36 = vrot.slane %v726_v11, 2 }
  0x9c   : > { %v596_v29 = vsel %vm538_vm0, %v594_v9, %v595_v44  ;;  %v598_v27 = vsel %vm538_vm0, %v595_v44, %v597_v10  ;;  %v963_v42 = vmul.f32 %v3438_v8, %v3338_v48  ;;  %v1045_v43 = vmul.f32 %v3453_v3, %v3335_v20  ;;  %v3561_v9 = vld [vmem:[%s4307_s1 + $0x7] ss:$0 sm:$0xff] }
  0x9d   : > { %2731 = vmatmul.mubr.bf16.gmra.mrb[4].mxu0 %v2071_v12  ;;  %v673_v18 = vadd.f32 %v596_v29, %v392_v35  ;;  %v674_v58 = vadd.f32 %v598_v27, %v393_v54  ;;  %v845_v31 = vsel %vm787_vm1, %v843_v17, %v844_v23  ;;  %v847_v13 = vsel %vm787_vm1, %v844_v23, %v846_v36  ;;  %v3573_v17 = vld [vmem:[%s4307_s1 + $0x8] ss:$0 sm:$0xff] }
  0x9e   : > { %v1046_v19 = vmul.f32 %v3453_v3, %v3338_v48  ;;  %v1047_v46 = vmul.f32 %v3453_v3, %v3340_v50  ;;  %v1293_v14 = vmul.f32 %v3538_v52, %v3335_v20  ;;  %v1163_v62 = vrot.slane %v1045_v43, 1 }
  0x9f   : > { %v922_v28 = vadd.f32 %v845_v31, %v673_v18  ;;  %v923_v24 = vadd.f32 %v847_v13, %v674_v58  ;;  %v1294_v26 = vmul.f32 %v3538_v52, %v3338_v48  ;;  %v1295_v33 = vmul.f32 %v3538_v52, %v3340_v50  ;;  %v275_v13 = vld [vmem:[%s2912_s6 + $0x50] sm:$0x1] }
  0xa0   : > { %v1164_v32 = vrot.slane %v1046_v19, 1  ;;  %v1166_v15 = vrot.slane %v1047_v46, 1  ;;  %v1411_v35 = vrot.slane %v1293_v14, 2  ;;  %v1530_v54 = vmul.f32 %v3549_v41, %v3486_v45 }
  0xa1   : > { %v994_v30 = vadd.f32 %v962_v25, %v922_v28  ;;  %v995_v39 = vadd.f32 %v963_v42, %v923_v24  ;;  %v1412_v40 = vrot.slane %v1294_v26, 2  ;;  %v1414_v1 = vrot.slane %v1295_v33, 2  ;;  %v2680_v25 = vld [vmem:[%s2912_s6 + $0x48] sm:$0xff]  }
  0xa2   : > { %v1165_v61 = vsel %vm538_vm0, %v1163_v62, %v1164_v32  ;;  %v1167_v60 = vsel %vm538_vm0, %v1164_v32, %v1166_v15  ;;  %v1531_v4 = vmul.f32 %v3549_v41, %v3489_v34  ;;  %v1613_v44 = vmul.f32 %v3561_v9, %v3486_v45 }
  0xa3   : > { %v1242_v5 = vadd.f32 %v1165_v61, %v994_v30  ;;  %v1243_v6 = vadd.f32 %v1167_v60, %v995_v39  ;;  %v1413_v7 = vsel %vm787_vm1, %v1411_v35, %v1412_v40  ;;  %v1415_v10 = vsel %vm787_vm1, %v1412_v40, %v1414_v1 }
  0xa4   : > { %v1614_v11 = vmul.f32 %v3561_v9, %v3489_v34  ;;  %v1615_v12 = vmul.f32 %v3561_v9, %v3491_v16  ;;  %v1861_v23 = vmul.f32 %v3573_v17, %v3486_v45  ;;  %v1731_v36 = vrot.slane %v1613_v44, 1 }
  0xa5   : > { %v1490_v29 = vadd.f32 %v1413_v7, %v1242_v5  ;;  %v1491_v27 = vadd.f32 %v1415_v10, %v1243_v6  ;;  %v1862_v42 = vmul.f32 %v3573_v17, %v3489_v34  ;;  %v1863_v31 = vmul.f32 %v3573_v17, %v3491_v16 }
  0xa6   : > { %v1732_v18 = vrot.slane %v1614_v11, 1  ;;  %v1734_v58 = vrot.slane %v1615_v12, 1  ;;  %v1979_v43 = vrot.slane %v1861_v23, 2  ;;  %v3583_v28 = vunpack.c.l.bf16 %v2680_v25 }
  0xa7   : > { %v1562_v19 = vadd.f32 %v1530_v54, %v1490_v29  ;;  %v1563_v46 = vadd.f32 %v1531_v4, %v1491_v27  ;;  %v1980_v14 = vrot.slane %v1862_v42, 2  ;;  %v1982_v26 = vrot.slane %v1863_v31, 2 }
  0xa8   : > { %v1733_v24 = vsel %vm538_vm0, %v1731_v36, %v1732_v18  ;;  %v1735_v62 = vsel %vm538_vm0, %v1732_v18, %v1734_v58  ;;  %v3587_v32 = vunpack.c.h.bf16 %v2680_v25  ;;  %v3590_v30 = vunpack.c.l.bf16 %v275_v13 }
  0xa9   : > { %v1810_v15 = vadd.f32 %v1733_v24, %v1562_v19  ;;  %v1811_v33 = vadd.f32 %v1735_v62, %v1563_v46  ;;  %v1981_v35 = vsel %vm787_vm1, %v1979_v43, %v1980_v14  ;;  %v1983_v39 = vsel %vm787_vm1, %v1980_v14, %v1982_v26 }
  0xaa   : > { %v378_v40 = vmul.f32 %v3496_v22, %v3266_v38  ;;  %v379_v54 = vmul.f32 %v3496_v22, %v3270_v47  ;;  %v454_v61 = vmul.f32 %v3507_v59, %v3266_v38  ;;  %v455_v4 = vmul.f32 %v3507_v59, %v3270_v47 }
  0xab   : > { %v2058_v60 = vadd.f32 %v1981_v35, %v1810_v15  ;;  %v2059_v1 = vadd.f32 %v1983_v39, %v1811_v33  ;;  %v456_v5 = vmul.f32 %v3507_v59, %v3273_v53  ;;  %v703_v7 = vmul.f32 %v3427_v21, %v3266_v38 }
  0xac   : > { %v559_v6 = vrot.slane %v454_v61, 1  ;;  %v704_v44 = vmul.f32 %v3427_v21, %v3270_v47  ;;  %v705_v10 = vmul.f32 %v3427_v21, %v3273_v53  ;;  %v560_v12 = vrot.slane %v455_v4, 1 }
  0xad   : > { %v2079_v11 = vpack.c.bf16 %v2059_v1, %v2058_v60  ;;  %v562_v23 = vrot.slane %v456_v5, 1  ;;  %v948_v25 = vmul.f32 %v3438_v8, %v3402_v37  ;;  %v808_v29 = vrot.slane %v703_v7, 2 }
  0xae   : > { %v809_v27 = vrot.slane %v704_v44, 2  ;;  %v811_v36 = vrot.slane %v705_v10, 2  ;;  %v949_v42 = vmul.f32 %v3438_v8, %v3406_v51  ;;  %v561_v38 = vsel %vm538_vm0, %v559_v6, %v560_v12 }
  0xaf   : > { %2747 = vmatmul.mubr.bf16.gmra.mrb[4].mxu1 %v2079_v11  ;;  %v563_v47 = vsel %vm538_vm0, %v560_v12, %v562_v23  ;;  %v1024_v53 = vmul.f32 %v3453_v3, %v3402_v37  ;;  %v1025_v18 = vmul.f32 %v3453_v3, %v3406_v51  ;;  %v659_v58 = vadd.f32 %v561_v38, %v378_v40 }
  0xb0   : > { %v660_v31 = vadd.f32 %v563_v47, %v379_v54  ;;  %v810_v43 = vsel %vm787_vm1, %v808_v29, %v809_v27  ;;  %v812_v13 = vsel %vm787_vm1, %v809_v27, %v811_v36  ;;  %v1026_v19 = vmul.f32 %v3453_v3, %v3409_v57 }
  0xb1   : > { %v1128_v46 = vrot.slane %v1024_v53, 1  ;;  %v1129_v14 = vrot.slane %v1025_v18, 1  ;;  %v1272_v24 = vmul.f32 %v3538_v52, %v3402_v37  ;;  %v908_v62 = vadd.f32 %v810_v43, %v659_v58  ;;  %v299_v58 = vld [vmem:[%s2912_s6 + $0xb0] sm:$0x1] }
  0xb2   : > { %v909_v26 = vadd.f32 %v812_v13, %v660_v31  ;;  %v1273_v15 = vmul.f32 %v3538_v52, %v3406_v51  ;;  %v1274_v33 = vmul.f32 %v3538_v52, %v3409_v57  ;;  %v1131_v39 = vrot.slane %v1026_v19, 1 }
  0xb3   : > { %v1130_v35 = vsel %vm538_vm0, %v1128_v46, %v1129_v14  ;;  %v1376_v40 = vrot.slane %v1272_v24, 2  ;;  %v1516_v54 = vmul.f32 %v3549_v41, %v3583_v28  ;;  %v980_v61 = vadd.f32 %v948_v25, %v908_v62  ;;  %v2684_v25 = vld [vmem:[%s2912_s6 + $0xa8] sm:$0xff]  }
  0xb4   : > { %v981_v60 = vadd.f32 %v949_v42, %v909_v26  ;;  %v1377_v1 = vrot.slane %v1273_v15, 2  ;;  %v1379_v4 = vrot.slane %v1274_v33, 2  ;;  %v1132_v5 = vsel %vm538_vm0, %v1129_v14, %v1131_v39 }
  0xb5   : > { %v1517_v6 = vmul.f32 %v3549_v41, %v3587_v32  ;;  %v1592_v7 = vmul.f32 %v3561_v9, %v3583_v28  ;;  %v1593_v44 = vmul.f32 %v3561_v9, %v3587_v32  ;;  %v1228_v10 = vadd.f32 %v1130_v35, %v980_v61 }
  0xb6   : > { %v1229_v11 = vadd.f32 %v1132_v5, %v981_v60  ;;  %v1378_v12 = vsel %vm787_vm1, %v1376_v40, %v1377_v1  ;;  %v1380_v23 = vsel %vm787_vm1, %v1377_v1, %v1379_v4  ;;  %v1594_v29 = vmul.f32 %v3561_v9, %v3590_v30 }
  0xb7   : > { %v1696_v27 = vrot.slane %v1592_v7, 1  ;;  %v1697_v36 = vrot.slane %v1593_v44, 1  ;;  %v1840_v42 = vmul.f32 %v3573_v17, %v3583_v28  ;;  %v1476_v38 = vadd.f32 %v1378_v12, %v1228_v10 }
  0xb8   : > { %v1477_v47 = vadd.f32 %v1380_v23, %v1229_v11  ;;  %v1841_v53 = vmul.f32 %v3573_v17, %v3587_v32  ;;  %v1842_v18 = vmul.f32 %v3573_v17, %v3590_v30  ;;  %v1699_v43 = vrot.slane %v1594_v29, 1 }
  0xb9   : > { %v1698_v31 = vsel %vm538_vm0, %v1696_v27, %v1697_v36  ;;  %v1944_v13 = vrot.slane %v1840_v42, 2  ;;  %v3652_v19 = vunpack.c.l.bf16 %v2684_v25  ;;  %v1548_v46 = vadd.f32 %v1516_v54, %v1476_v38 }
  0xba   : > { %v1549_v14 = vadd.f32 %v1517_v6, %v1477_v47  ;;  %v1945_v24 = vrot.slane %v1841_v53, 2  ;;  %v1947_v62 = vrot.slane %v1842_v18, 2  ;;  %v1700_v26 = vsel %vm538_vm0, %v1697_v36, %v1699_v43 }
  0xbb   : > { %v3655_v15 = vunpack.c.h.bf16 %v2684_v25  ;;  %v3657_v33 = vunpack.c.l.bf16 %v299_v58  ;;  %v394_v35 = vmul.f32 %v3496_v22, %v3335_v20  ;;  %v1796_v39 = vadd.f32 %v1698_v31, %v1548_v46 }
  0xbc   : > { %v1797_v40 = vadd.f32 %v1700_v26, %v1549_v14  ;;  %v1946_v61 = vsel %vm787_vm1, %v1944_v13, %v1945_v24  ;;  %v1948_v60 = vsel %vm787_vm1, %v1945_v24, %v1947_v62  ;;  %v395_v54 = vmul.f32 %v3496_v22, %v3338_v48 }
  0xbd   : > { %v478_v1 = vmul.f32 %v3507_v59, %v3335_v20  ;;  %v479_v4 = vmul.f32 %v3507_v59, %v3338_v48  ;;  %v480_v5 = vmul.f32 %v3507_v59, %v3340_v50  ;;  %v2044_v6 = vadd.f32 %v1946_v61, %v1796_v39 }
  0xbe   : > { %v2045_v7 = vadd.f32 %v1948_v60, %v1797_v40  ;;  %v727_v44 = vmul.f32 %v3427_v21, %v3335_v20  ;;  %v728_v10 = vmul.f32 %v3427_v21, %v3338_v48  ;;  %v729_v25 = vmul.f32 %v3427_v21, %v3340_v50 }
  0xbf   : > { %v599_v11 = vrot.slane %v478_v1, 1  ;;  %v600_v12 = vrot.slane %v479_v4, 1  ;;  %v602_v23 = vrot.slane %v480_v5, 1  ;;  %v964_v42 = vmul.f32 %v3438_v8, %v3486_v45 }
  0xc0   : > { %v2072_v29 = vpack.c.bf16 %v2045_v7, %v2044_v6  ;;  %v848_v27 = vrot.slane %v727_v44, 2  ;;  %v849_v36 = vrot.slane %v728_v10, 2  ;;  %v851_v20 = vrot.slane %v729_v25, 2 }
  0xc1   : > { %v601_v38 = vsel %vm538_vm0, %v599_v11, %v600_v12  ;;  %v603_v47 = vsel %vm538_vm0, %v600_v12, %v602_v23  ;;  %v965_v48 = vmul.f32 %v3438_v8, %v3489_v34  ;;  %v1048_v50 = vmul.f32 %v3453_v3, %v3486_v45 }
  0xc2   : > { %2734 = vmatprep.mubr.bf16.mxu0 %v2072_v29  ;;  %v675_v53 = vadd.f32 %v601_v38, %v394_v35  ;;  %v676_v18 = vadd.f32 %v603_v47, %v395_v54  ;;  %v850_v58 = vsel %vm787_vm1, %v848_v27, %v849_v36  ;;  %v852_v31 = vsel %vm787_vm1, %v849_v36, %v851_v20 }
  0xc3   : > { %v1049_v43 = vmul.f32 %v3453_v3, %v3489_v34  ;;  %v1050_v13 = vmul.f32 %v3453_v3, %v3491_v16  ;;  %v1296_v46 = vmul.f32 %v3538_v52, %v3486_v45  ;;  %v1168_v62 = vrot.slane %v1048_v50, 1 }
  0xc4   : > { %v924_v14 = vadd.f32 %v850_v58, %v675_v53  ;;  %v925_v24 = vadd.f32 %v852_v31, %v676_v18  ;;  %v1297_v26 = vmul.f32 %v3538_v52, %v3489_v34  ;;  %v1298_v40 = vmul.f32 %v3538_v52, %v3491_v16  ;;  %v278_v31 = vld [vmem:[%s2912_s6 + $0x5c] sm:$0x1] }
  0xc5   : > { %v1169_v35 = vrot.slane %v1049_v43, 1  ;;  %v1171_v39 = vrot.slane %v1050_v13, 1  ;;  %v1416_v61 = vrot.slane %v1296_v46, 2  ;;  %v1532_v4 = vmul.f32 %v3549_v41, %v3652_v19 }
  0xc6   : > { %v996_v60 = vadd.f32 %v964_v42, %v924_v14  ;;  %v997_v54 = vadd.f32 %v965_v48, %v925_v24  ;;  %v1417_v1 = vrot.slane %v1297_v26, 2  ;;  %v1419_v7 = vrot.slane %v1298_v40, 2  ;;  %v276_v42 = vld [vmem:[%s2912_s6 + $0x54] sm:$0xff]  }
  0xc7   : > { %v1170_v5 = vsel %vm538_vm0, %v1168_v62, %v1169_v35  ;;  %v1172_v6 = vsel %vm538_vm0, %v1169_v35, %v1171_v39  ;;  %v1533_v44 = vmul.f32 %v3549_v41, %v3655_v15  ;;  %v1616_v23 = vmul.f32 %v3561_v9, %v3652_v19 }
  0xc8   : > { %v1244_v10 = vadd.f32 %v1170_v5, %v996_v60  ;;  %v1245_v11 = vadd.f32 %v1172_v6, %v997_v54  ;;  %v1418_v12 = vsel %vm787_vm1, %v1416_v61, %v1417_v1  ;;  %v1420_v25 = vsel %vm787_vm1, %v1417_v1, %v1419_v7 }
  0xc9   : > { %v1617_v29 = vmul.f32 %v3561_v9, %v3655_v15  ;;  %v1618_v27 = vmul.f32 %v3561_v9, %v3657_v33  ;;  %v1864_v36 = vmul.f32 %v3573_v17, %v3652_v19  ;;  %v1736_v20 = vrot.slane %v1616_v23, 1 }
  0xca   : > { %v1492_v38 = vadd.f32 %v1418_v12, %v1244_v10  ;;  %v1493_v47 = vadd.f32 %v1420_v25, %v1245_v11  ;;  %v1865_v48 = vmul.f32 %v3573_v17, %v3655_v15  ;;  %v1866_v58 = vmul.f32 %v3573_v17, %v3657_v33 }
  0xcb   : > { %v1737_v53 = vrot.slane %v1617_v29, 1  ;;  %v1739_v18 = vrot.slane %v1618_v27, 1  ;;  %v1984_v50 = vrot.slane %v1864_v36, 2  ;;  %v3719_v14 = vunpack.c.l.bf16 %v276_v42 }
  0xcc   : > { %v1564_v43 = vadd.f32 %v1532_v4, %v1492_v38  ;;  %v1565_v13 = vadd.f32 %v1533_v44, %v1493_v47  ;;  %v1985_v46 = vrot.slane %v1865_v48, 2  ;;  %v1987_v26 = vrot.slane %v1866_v58, 2 }
  0xcd   : > { %v1738_v24 = vsel %vm538_vm0, %v1736_v20, %v1737_v53  ;;  %v1740_v62 = vsel %vm538_vm0, %v1737_v53, %v1739_v18  ;;  %v3723_v35 = vunpack.c.h.bf16 %v276_v42  ;;  %v3726_v60 = vunpack.c.l.bf16 %v278_v31 }
  0xce   : > { %v1812_v39 = vadd.f32 %v1738_v24, %v1564_v43  ;;  %v1813_v40 = vadd.f32 %v1740_v62, %v1565_v13  ;;  %v1986_v61 = vsel %vm787_vm1, %v1984_v50, %v1985_v46  ;;  %v1988_v54 = vsel %vm787_vm1, %v1985_v46, %v1987_v26 }
  0xcf   : > { %v380_v1 = vmul.f32 %v3496_v22, %v3402_v37  ;;  %v381_v4 = vmul.f32 %v3496_v22, %v3406_v51  ;;  %v457_v5 = vmul.f32 %v3507_v59, %v3402_v37  ;;  %v458_v44 = vmul.f32 %v3507_v59, %v3406_v51 }
  0xd0   : > { %v2060_v6 = vadd.f32 %v1986_v61, %v1812_v39  ;;  %v2061_v7 = vadd.f32 %v1988_v54, %v1813_v40  ;;  %v459_v10 = vmul.f32 %v3507_v59, %v3409_v57  ;;  %v706_v12 = vmul.f32 %v3427_v21, %v3402_v37 }
  0xd1   : > { %v564_v11 = vrot.slane %v457_v5, 1  ;;  %v707_v23 = vmul.f32 %v3427_v21, %v3406_v51  ;;  %v708_v25 = vmul.f32 %v3427_v21, %v3409_v57  ;;  %v565_v27 = vrot.slane %v458_v44, 1 }
  0xd2   : > { %v2080_v29 = vpack.c.bf16 %v2061_v7, %v2060_v6  ;;  %v567_v36 = vrot.slane %v459_v10, 1  ;;  %v950_v42 = vmul.f32 %v3438_v8, %v3583_v28  ;;  %v813_v38 = vrot.slane %v706_v12, 2 }
  0xd3   : > { %v814_v47 = vrot.slane %v707_v23, 2  ;;  %v816_v20 = vrot.slane %v708_v25, 2  ;;  %v951_v48 = vmul.f32 %v3438_v8, %v3587_v32  ;;  %v566_v37 = vsel %vm538_vm0, %v564_v11, %v565_v27 }
  0xd4   : > { %2750 = vmatprep.mubr.bf16.mxu1 %v2080_v29  ;;  %v568_v51 = vsel %vm538_vm0, %v565_v27, %v567_v36  ;;  %v1027_v57 = vmul.f32 %v3453_v3, %v3583_v28  ;;  %v1028_v53 = vmul.f32 %v3453_v3, %v3587_v32  ;;  %v661_v18 = vadd.f32 %v566_v37, %v380_v1 }
  0xd5   : > { %v662_v58 = vadd.f32 %v568_v51, %v381_v4  ;;  %v815_v50 = vsel %vm787_vm1, %v813_v38, %v814_v47  ;;  %v817_v31 = vsel %vm787_vm1, %v814_v47, %v816_v20  ;;  %v1029_v43 = vmul.f32 %v3453_v3, %v3590_v30 }
  0xd6   : > { %v1133_v13 = vrot.slane %v1027_v57, 1  ;;  %v1134_v46 = vrot.slane %v1028_v53, 1  ;;  %v1275_v24 = vmul.f32 %v3538_v52, %v3583_v28  ;;  %v910_v62 = vadd.f32 %v815_v50, %v661_v18  ;;  %v302_v18 = vld [vmem:[%s2912_s6 + $0xbc] sm:$0x1] }
  0xd7   : > { %v911_v26 = vadd.f32 %v817_v31, %v662_v58  ;;  %v1276_v39 = vmul.f32 %v3538_v52, %v3587_v32  ;;  %v1277_v40 = vmul.f32 %v3538_v52, %v3590_v30  ;;  %v1136_v54 = vrot.slane %v1029_v43, 1 }
  0xd8   : > { %v1135_v61 = vsel %vm538_vm0, %v1133_v13, %v1134_v46  ;;  %v1381_v1 = vrot.slane %v1275_v24, 2  ;;  %v1518_v4 = vmul.f32 %v3549_v41, %v3719_v14  ;;  %v982_v5 = vadd.f32 %v950_v42, %v910_v62  ;;  %v300_v42 = vld [vmem:[%s2912_s6 + $0xb4] sm:$0xff]  }
  0xd9   : > { %v983_v6 = vadd.f32 %v951_v48, %v911_v26  ;;  %v1382_v7 = vrot.slane %v1276_v39, 2  ;;  %v1384_v44 = vrot.slane %v1277_v40, 2  ;;  %v1137_v10 = vsel %vm538_vm0, %v1134_v46, %v1136_v54 }
  0xda   : > { %v1519_v11 = vmul.f32 %v3549_v41, %v3723_v35  ;;  %v1595_v12 = vmul.f32 %v3561_v9, %v3719_v14  ;;  %v1596_v23 = vmul.f32 %v3561_v9, %v3723_v35  ;;  %v1230_v25 = vadd.f32 %v1135_v61, %v982_v5 }
  0xdb   : > { %v1231_v29 = vadd.f32 %v1137_v10, %v983_v6  ;;  %v1383_v27 = vsel %vm787_vm1, %v1381_v1, %v1382_v7  ;;  %v1385_v36 = vsel %vm787_vm1, %v1382_v7, %v1384_v44  ;;  %v1597_v38 = vmul.f32 %v3561_v9, %v3726_v60 }
  0xdc   : > { %v1701_v47 = vrot.slane %v1595_v12, 1  ;;  %v1702_v20 = vrot.slane %v1596_v23, 1  ;;  %v1843_v48 = vmul.f32 %v3573_v17, %v3719_v14  ;;  %v1478_v37 = vadd.f32 %v1383_v27, %v1230_v25 }
  0xdd   : > { %v1479_v51 = vadd.f32 %v1385_v36, %v1231_v29  ;;  %v1844_v57 = vmul.f32 %v3573_v17, %v3723_v35  ;;  %v1845_v53 = vmul.f32 %v3573_v17, %v3726_v60  ;;  %v1704_v50 = vrot.slane %v1597_v38, 1 }
  0xde   : > { %v1703_v58 = vsel %vm538_vm0, %v1701_v47, %v1702_v20  ;;  %v1949_v31 = vrot.slane %v1843_v48, 2  ;;  %v3788_v43 = vunpack.c.l.bf16 %v300_v42  ;;  %v1550_v13 = vadd.f32 %v1518_v4, %v1478_v37 }
  0xdf   : > { %v1551_v46 = vadd.f32 %v1519_v11, %v1479_v51  ;;  %v1950_v24 = vrot.slane %v1844_v57, 2  ;;  %v1952_v62 = vrot.slane %v1845_v53, 2  ;;  %v1705_v26 = vsel %vm538_vm0, %v1702_v20, %v1704_v50 }
  0xe0   : > { %v3791_v39 = vunpack.c.h.bf16 %v300_v42  ;;  %v3793_v40 = vunpack.c.l.bf16 %v302_v18  ;;  %v396_v61 = vmul.f32 %v3496_v22, %v3486_v45  ;;  %v1798_v54 = vadd.f32 %v1703_v58, %v1550_v13 }
  0xe1   : > { %v1799_v1 = vadd.f32 %v1705_v26, %v1551_v46  ;;  %v1951_v5 = vsel %vm787_vm1, %v1949_v31, %v1950_v24  ;;  %v1953_v6 = vsel %vm787_vm1, %v1950_v24, %v1952_v62  ;;  %v397_v4 = vmul.f32 %v3496_v22, %v3489_v34 }
  0xe2   : > { %v481_v7 = vmul.f32 %v3507_v59, %v3486_v45  ;;  %v482_v44 = vmul.f32 %v3507_v59, %v3489_v34  ;;  %v483_v10 = vmul.f32 %v3507_v59, %v3491_v16  ;;  %v2046_v11 = vadd.f32 %v1951_v5, %v1798_v54 }
  0xe3   : > { %v2047_v12 = vadd.f32 %v1953_v6, %v1799_v1  ;;  %v730_v23 = vmul.f32 %v3427_v21, %v3486_v45  ;;  %v731_v25 = vmul.f32 %v3427_v21, %v3489_v34  ;;  %v732_v42 = vmul.f32 %v3427_v21, %v3491_v16 }
  0xe4   : > { %v604_v29 = vrot.slane %v481_v7, 1  ;;  %v605_v27 = vrot.slane %v482_v44, 1  ;;  %v607_v36 = vrot.slane %v483_v10, 1  ;;  %v966_v48 = vmul.f32 %v3438_v8, %v3652_v19 }
  0xe5   : > { %v2073_v38 = vpack.c.bf16 %v2047_v12, %v2046_v11  ;;  %v853_v47 = vrot.slane %v730_v23, 2  ;;  %v854_v20 = vrot.slane %v731_v25, 2  ;;  %v856_v45 = vrot.slane %v732_v42, 2 }
  0xe6   : > { %v606_v37 = vsel %vm538_vm0, %v604_v29, %v605_v27  ;;  %v608_v51 = vsel %vm538_vm0, %v605_v27, %v607_v36  ;;  %v967_v34 = vmul.f32 %v3438_v8, %v3655_v15  ;;  %v1051_v16 = vmul.f32 %v3453_v3, %v3652_v19 }
  0xe7   : > { %2735 = vmatmul.mubr.bf16.gmra.mrb[8].mxu0 %v2073_v38  ;;  %v677_v57 = vadd.f32 %v606_v37, %v396_v61  ;;  %v678_v53 = vadd.f32 %v608_v51, %v397_v4  ;;  %v855_v18 = vsel %vm787_vm1, %v853_v47, %v854_v20  ;;  %v857_v58 = vsel %vm787_vm1, %v854_v20, %v856_v45 }
  0xe8   : > { %v1052_v50 = vmul.f32 %v3453_v3, %v3655_v15  ;;  %v1053_v31 = vmul.f32 %v3453_v3, %v3657_v33  ;;  %v1299_v13 = vmul.f32 %v3538_v52, %v3652_v19  ;;  %v1173_v62 = vrot.slane %v1051_v16, 1 }
  0xe9   : > { %v926_v46 = vadd.f32 %v855_v18, %v677_v57  ;;  %v927_v24 = vadd.f32 %v857_v58, %v678_v53  ;;  %v1300_v26 = vmul.f32 %v3538_v52, %v3655_v15  ;;  %v1301_v1 = vmul.f32 %v3538_v52, %v3657_v33 }
  0xea   : > { %v1174_v61 = vrot.slane %v1052_v50, 1  ;;  %v1176_v54 = vrot.slane %v1053_v31, 1  ;;  %v1421_v5 = vrot.slane %v1299_v13, 2  ;;  %v1534_v44 = vmul.f32 %v3549_v41, %v3788_v43 }
  0xeb   : > { %v998_v6 = vadd.f32 %v966_v48, %v926_v46  ;;  %v999_v4 = vadd.f32 %v967_v34, %v927_v24  ;;  %v1422_v7 = vrot.slane %v1300_v26, 2  ;;  %v1424_v12 = vrot.slane %v1301_v1, 2 }
  0xec   : > { %v1175_v10 = vsel %vm538_vm0, %v1173_v62, %v1174_v61  ;;  %v1177_v11 = vsel %vm538_vm0, %v1174_v61, %v1176_v54  ;;  %v1535_v23 = vmul.f32 %v3549_v41, %v3791_v39  ;;  %v1619_v36 = vmul.f32 %v3561_v9, %v3788_v43 }
  0xed   : > { %v1246_v25 = vadd.f32 %v1175_v10, %v998_v6  ;;  %v1247_v29 = vadd.f32 %v1177_v11, %v999_v4  ;;  %v1423_v27 = vsel %vm787_vm1, %v1421_v5, %v1422_v7  ;;  %v1425_v42 = vsel %vm787_vm1, %v1422_v7, %v1424_v12 }
  0xee   : > { %v1620_v38 = vmul.f32 %v3561_v9, %v3791_v39  ;;  %v1621_v47 = vmul.f32 %v3561_v9, %v3793_v40  ;;  %v1867_v20 = vmul.f32 %v3573_v17, %v3788_v43  ;;  %v1741_v51 = vrot.slane %v1619_v36, 1 }
  0xef   : > { %v1494_v48 = vadd.f32 %v1423_v27, %v1246_v25  ;;  %v1495_v37 = vadd.f32 %v1425_v42, %v1247_v29  ;;  %v1868_v45 = vmul.f32 %v3573_v17, %v3791_v39  ;;  %v1869_v53 = vmul.f32 %v3573_v17, %v3793_v40 }
  0xf0   : > { %v1742_v34 = vrot.slane %v1620_v38, 1  ;;  %v1744_v57 = vrot.slane %v1621_v47, 1  ;;  %v1989_v18 = vrot.slane %v1867_v20, 2  ;;  %v382_v31 = vmul.f32 %v3496_v22, %v3583_v28 }
  0xf1   : > { %v1566_v16 = vadd.f32 %v1534_v44, %v1494_v48  ;;  %v1567_v58 = vadd.f32 %v1535_v23, %v1495_v37  ;;  %v1990_v50 = vrot.slane %v1868_v45, 2  ;;  %v1992_v24 = vrot.slane %v1869_v53, 2 }
  0xf2   : > { %v1743_v13 = vsel %vm538_vm0, %v1741_v51, %v1742_v34  ;;  %v1745_v46 = vsel %vm538_vm0, %v1742_v34, %v1744_v57  ;;  %v383_v62 = vmul.f32 %v3496_v22, %v3587_v32  ;;  %v460_v1 = vmul.f32 %v3507_v59, %v3583_v28 }
  0xf3   : > { %v1814_v26 = vadd.f32 %v1743_v13, %v1566_v16  ;;  %v1815_v61 = vadd.f32 %v1745_v46, %v1567_v58  ;;  %v1991_v54 = vsel %vm787_vm1, %v1989_v18, %v1990_v50  ;;  %v1993_v5 = vsel %vm787_vm1, %v1990_v50, %v1992_v24 }
  0xf4   : > { %v461_v6 = vmul.f32 %v3507_v59, %v3587_v32  ;;  %v462_v4 = vmul.f32 %v3507_v59, %v3590_v30  ;;  %v709_v7 = vmul.f32 %v3427_v21, %v3583_v28  ;;  %v569_v11 = vrot.slane %v460_v1, 1 }
  0xf5   : > { %v2062_v44 = vadd.f32 %v1991_v54, %v1814_v26  ;;  %v2063_v10 = vadd.f32 %v1993_v5, %v1815_v61  ;;  %v710_v12 = vmul.f32 %v3427_v21, %v3587_v32  ;;  %v711_v29 = vmul.f32 %v3427_v21, %v3590_v30 }
  0xf6   : > { %v570_v23 = vrot.slane %v461_v6, 1  ;;  %v572_v25 = vrot.slane %v462_v4, 1  ;;  %v818_v27 = vrot.slane %v709_v7, 2  ;;  %v952_v38 = vmul.f32 %v3438_v8, %v3719_v14 }
  0xf7   : > { %v2081_v36 = vpack.c.bf16 %v2063_v10, %v2062_v44  ;;  %v819_v42 = vrot.slane %v710_v12, 2  ;;  %v953_v28 = vmul.f32 %v3438_v8, %v3723_v35  ;;  %v821_v48 = vrot.slane %v711_v29, 2  ;;  %v2685_v10 = vld [vmem:[%s2912_s6 + $0xc0] sm:$0xff]  }
  0xf8   : > { %v571_v47 = vsel %vm538_vm0, %v569_v11, %v570_v23  ;;  %v573_v20 = vsel %vm538_vm0, %v570_v23, %v572_v25  ;;  %v1030_v32 = vmul.f32 %v3453_v3, %v3719_v14  ;;  %v1031_v51 = vmul.f32 %v3453_v3, %v3723_v35 }
  0xf9   : > { %2751 = vmatmul.mubr.bf16.gmra.mrb[8].mxu1 %v2081_v36  ;;  %v663_v37 = vadd.f32 %v571_v47, %v382_v31  ;;  %v664_v21 = vadd.f32 %v573_v20, %v383_v62  ;;  %v820_v30 = vsel %vm787_vm1, %v818_v27, %v819_v42  ;;  %v822_v45 = vsel %vm787_vm1, %v819_v42, %v821_v48 }
  0xfa   : > { %v1032_v8 = vmul.f32 %v3453_v3, %v3726_v60  ;;  %v1138_v34 = vrot.slane %v1030_v32, 1  ;;  %v1278_v57 = vmul.f32 %v3538_v52, %v3719_v14  ;;  %v1139_v16 = vrot.slane %v1031_v51, 1 }
  0xfb   : > { %v912_v53 = vadd.f32 %v820_v30, %v663_v37  ;;  %v913_v18 = vadd.f32 %v822_v45, %v664_v21  ;;  %v1279_v58 = vmul.f32 %v3538_v52, %v3723_v35  ;;  %v1280_v31 = vmul.f32 %v3538_v52, %v3726_v60 }
  0xfc   : > { %v1141_v50 = vrot.slane %v1032_v8, 1  ;;  %v1386_v13 = vrot.slane %v1278_v57, 2  ;;  %v1520_v46 = vmul.f32 %v3549_v41, %v2992_v49  ;;  %v1140_v62 = vsel %vm538_vm0, %v1138_v34, %v1139_v16 }
  0xfd   : > { %v984_v3 = vadd.f32 %v952_v38, %v912_v53  ;;  %v985_v24 = vadd.f32 %v953_v28, %v913_v18  ;;  %v1387_v26 = vrot.slane %v1279_v58, 2  ;;  %v1389_v54 = vrot.slane %v1280_v31, 2  ;;  %v305_v38 = vld [vmem:[%s2912_s6 + $0xc8] sm:$0x1] }
  0xfe   : > { %v1142_v61 = vsel %vm538_vm0, %v1139_v16, %v1141_v50  ;;  %v1521_v1 = vmul.f32 %v3549_v41, %v3010_v63  ;;  %v1598_v5 = vmul.f32 %v3561_v9, %v2992_v49  ;;  %v1599_v44 = vmul.f32 %v3561_v9, %v3010_v63 }
  0xff   : > { %v1232_v6 = vadd.f32 %v1140_v62, %v984_v3  ;;  %v1233_v4 = vadd.f32 %v1142_v61, %v985_v24  ;;  %v1388_v7 = vsel %vm787_vm1, %v1386_v13, %v1387_v26  ;;  %v1390_v11 = vsel %vm787_vm1, %v1387_v26, %v1389_v54  ;;  %v3938_v62 = vld [vmem:[%s4307_s1 + $0x2] ss:$0 sm:$0xff] }
 0x100   : > { %v1600_v12 = vmul.f32 %v3561_v9, %v3056_v55  ;;  %v1706_v23 = vrot.slane %v1598_v5, 1  ;;  %v1846_v25 = vmul.f32 %v3573_v17, %v2992_v49  ;;  %v1707_v36 = vrot.slane %v1599_v44, 1 }
 0x101   : > { %v1480_v29 = vadd.f32 %v1388_v7, %v1232_v6  ;;  %v1481_v27 = vadd.f32 %v1390_v11, %v1233_v4  ;;  %v1847_v42 = vmul.f32 %v3573_v17, %v3010_v63  ;;  %v1848_v47 = vmul.f32 %v3573_v17, %v3056_v55 }
 0x102   : > { %v1709_v28 = vrot.slane %v1600_v12, 1  ;;  %v1954_v20 = vrot.slane %v1846_v25, 2  ;;  %v3915_v48 = vunpack.c.l.bf16 %v2685_v10  ;;  %v1708_v21 = vsel %vm538_vm0, %v1706_v23, %v1707_v36  ;;  %v3960_v12 = vld [vmem:[%s4307_s1 + $0x4] ss:$0 sm:$0xff] }
 0x103   : > { %v1552_v32 = vadd.f32 %v1520_v46, %v1480_v29  ;;  %v1553_v37 = vadd.f32 %v1521_v1, %v1481_v27  ;;  %v1955_v30 = vrot.slane %v1847_v42, 2  ;;  %v1957_v45 = vrot.slane %v1848_v47, 2 }
 0x104   : > { %v1710_v51 = vsel %vm538_vm0, %v1707_v36, %v1709_v28  ;;  %v3919_v8 = vunpack.c.h.bf16 %v2685_v10  ;;  %v3921_v34 = vunpack.c.l.bf16 %v305_v38  ;;  %v398_v16 = vmul.f32 %v3496_v22, %v3652_v19 }
 0x105   : > { %v1800_v57 = vadd.f32 %v1708_v21, %v1552_v32  ;;  %v1801_v53 = vadd.f32 %v1710_v51, %v1553_v37  ;;  %v1956_v18 = vsel %vm787_vm1, %v1954_v20, %v1955_v30  ;;  %v1958_v58 = vsel %vm787_vm1, %v1955_v30, %v1957_v45 }
 0x106   : > { %v399_v50 = vmul.f32 %v3496_v22, %v3655_v15  ;;  %v484_v31 = vmul.f32 %v3507_v59, %v3652_v19  ;;  %v485_v13 = vmul.f32 %v3507_v59, %v3655_v15  ;;  %v486_v24 = vmul.f32 %v3507_v59, %v3657_v33  ;;  %v3949_v59 = vld [vmem:[%s4307_s1 + $0x3] ss:$0 sm:$0xff] }
 0x107   : > { %v2048_v46 = vadd.f32 %v1956_v18, %v1800_v57  ;;  %v2049_v3 = vadd.f32 %v1958_v58, %v1801_v53  ;;  %v733_v26 = vmul.f32 %v3938_v62, %v3652_v19  ;;  %v734_v54 = vmul.f32 %v3938_v62, %v3655_v15 }
 0x108   : > { %v609_v22 = vrot.slane %v484_v31, 1  ;;  %v610_v61 = vrot.slane %v485_v13, 1  ;;  %v735_v1 = vmul.f32 %v3938_v62, %v3657_v33  ;;  %v612_v6 = vrot.slane %v486_v24, 1 }
 0x109   : > { %v2074_v5 = vpack.c.bf16 %v2049_v3, %v2048_v46  ;;  %v858_v4 = vrot.slane %v733_v26, 2  ;;  %v968_v7 = vmul.f32 %v3949_v59, %v3788_v43  ;;  %v859_v44 = vrot.slane %v734_v54, 2 }
 0x10a   : > { %v611_v19 = vsel %vm538_vm0, %v609_v22, %v610_v61  ;;  %v861_v10 = vrot.slane %v735_v1, 2  ;;  %v969_v15 = vmul.f32 %v3949_v59, %v3791_v39  ;;  %v613_v33 = vsel %vm538_vm0, %v610_v61, %v612_v6 }
 0x10b   : > { %2738 = vmatprep.mubr.bf16.mxu0 %v2074_v5  ;;  %v679_v11 = vadd.f32 %v611_v19, %v398_v16  ;;  %v1054_v23 = vmul.f32 %v3960_v12, %v3788_v43  ;;  %v1055_v25 = vmul.f32 %v3960_v12, %v3791_v39  ;;  %v680_v29 = vadd.f32 %v613_v33, %v399_v50 }
 0x10c   : > { %v860_v27 = vsel %vm787_vm1, %v858_v4, %v859_v44  ;;  %v862_v36 = vsel %vm787_vm1, %v859_v44, %v861_v10  ;;  %v1056_v42 = vmul.f32 %v3960_v12, %v3793_v40  ;;  %v1302_v20 = vmul.f32 %v3538_v52, %v3788_v43 }
 0x10d   : > { %v928_v38 = vadd.f32 %v860_v27, %v679_v11  ;;  %v1178_v28 = vrot.slane %v1054_v23, 1  ;;  %v1179_v47 = vrot.slane %v1055_v25, 1  ;;  %v929_v32 = vadd.f32 %v862_v36, %v680_v29  ;;  %v4010_v27 = vld [vmem:[%s4307_s1 + $0x1] ss:$0 sm:$0xff] }
 0x10e   : > { %v1181_v37 = vrot.slane %v1056_v42, 1  ;;  %v1303_v21 = vmul.f32 %v3538_v52, %v3791_v39  ;;  %v1304_v30 = vmul.f32 %v3538_v52, %v3793_v40  ;;  %v1426_v57 = vrot.slane %v1302_v20, 2 }
 0x10f   : > { %v1000_v51 = vadd.f32 %v968_v7, %v928_v38  ;;  %v1180_v45 = vsel %vm538_vm0, %v1178_v28, %v1179_v47  ;;  %v1536_v53 = vmul.f32 %v3549_v41, %v3915_v48  ;;  %v1001_v18 = vadd.f32 %v969_v15, %v929_v32 }
 0x110   : > { %v1182_v16 = vsel %vm538_vm0, %v1179_v47, %v1181_v37  ;;  %v1427_v58 = vrot.slane %v1303_v21, 2  ;;  %v1429_v50 = vrot.slane %v1304_v30, 2  ;;  %v1537_v13 = vmul.f32 %v3549_v41, %v3919_v8 }
 0x111   : > { %v1248_v31 = vadd.f32 %v1180_v45, %v1000_v51  ;;  %v1622_v46 = vmul.f32 %v3561_v9, %v3915_v48  ;;  %v1623_v52 = vmul.f32 %v3561_v9, %v3919_v8  ;;  %v1249_v3 = vadd.f32 %v1182_v16, %v1001_v18 }
 0x112   : > { %v1428_v24 = vsel %vm787_vm1, %v1426_v57, %v1427_v58  ;;  %v1430_v26 = vsel %vm787_vm1, %v1427_v58, %v1429_v50  ;;  %v1624_v22 = vmul.f32 %v3561_v9, %v3921_v34  ;;  %v1870_v41 = vmul.f32 %v3573_v17, %v3915_v48  ;;  %v4000_v9 = vld [vmem:[%s4307_s1] ss:$0 sm:$0xff] }
 0x113   : > { %v1496_v61 = vadd.f32 %v1428_v24, %v1248_v31  ;;  %v1746_v54 = vrot.slane %v1622_v46, 1  ;;  %v1747_v1 = vrot.slane %v1623_v52, 1  ;;  %v1497_v5 = vadd.f32 %v1430_v26, %v1249_v3 }
 0x114   : > { %v1749_v6 = vrot.slane %v1624_v22, 1  ;;  %v1871_v4 = vmul.f32 %v3573_v17, %v3919_v8  ;;  %v1872_v7 = vmul.f32 %v3573_v17, %v3921_v34  ;;  %v1994_v10 = vrot.slane %v1870_v41, 2  ;;  %v4042_v22 = vld [vmem:[%s4307_s1 + $0x5] ss:$0 sm:$0xff] }
 0x115   : > { %v1568_v19 = vadd.f32 %v1536_v53, %v1496_v61  ;;  %v1748_v44 = vsel %vm538_vm0, %v1746_v54, %v1747_v1  ;;  %v384_v15 = vmul.f32 %v4000_v9, %v3719_v14  ;;  %v1569_v33 = vadd.f32 %v1537_v13, %v1497_v5 }
 0x116   : > { %v1750_v11 = vsel %vm538_vm0, %v1747_v1, %v1749_v6  ;;  %v1995_v23 = vrot.slane %v1871_v4, 2  ;;  %v1997_v25 = vrot.slane %v1872_v7, 2  ;;  %v385_v17 = vmul.f32 %v4000_v9, %v3723_v35 }
 0x117   : > { %v1816_v29 = vadd.f32 %v1748_v44, %v1568_v19  ;;  %v463_v36 = vmul.f32 %v4010_v27, %v3719_v14  ;;  %v464_v42 = vmul.f32 %v4010_v27, %v3723_v35  ;;  %v1817_v38 = vadd.f32 %v1750_v11, %v1569_v33 }
 0x118   : > { %v1996_v28 = vsel %vm787_vm1, %v1994_v10, %v1995_v23  ;;  %v1998_v47 = vsel %vm787_vm1, %v1995_v23, %v1997_v25  ;;  %v465_v20 = vmul.f32 %v4010_v27, %v3726_v60  ;;  %v712_v30 = vmul.f32 %v3938_v62, %v3719_v14 }
 0x119   : > { %v2064_v32 = vadd.f32 %v1996_v28, %v1816_v29  ;;  %v574_v37 = vrot.slane %v463_v36, 1  ;;  %v575_v21 = vrot.slane %v464_v42, 1  ;;  %v2065_v51 = vadd.f32 %v1998_v47, %v1817_v38  ;;  %v4066_v36 = vld [vmem:[%s4307_s1 + $0x7] ss:$0 sm:$0xff] }
 0x11a   : > { %v577_v45 = vrot.slane %v465_v20, 1  ;;  %v713_v57 = vmul.f32 %v3938_v62, %v3723_v35  ;;  %v714_v53 = vmul.f32 %v3938_v62, %v3726_v60  ;;  %v823_v16 = vrot.slane %v712_v30, 2 }
 0x11b   : > { %v576_v18 = vsel %vm538_vm0, %v574_v37, %v575_v21  ;;  %v954_v58 = vmul.f32 %v3949_v59, %v2992_v49  ;;  %v955_v50 = vmul.f32 %v3949_v59, %v3010_v63  ;;  %v2082_v31 = vpack.c.bf16 %v2065_v51, %v2064_v32  ;;  %v4078_v32 = vld [vmem:[%s4307_s1 + $0x8] ss:$0 sm:$0xff] }
 0x11c   : > { %v578_v14 = vsel %vm538_vm0, %v575_v21, %v577_v45  ;;  %v665_v13 = vadd.f32 %v576_v18, %v384_v15  ;;  %v824_v46 = vrot.slane %v713_v57, 2  ;;  %v826_v3 = vrot.slane %v714_v53, 2  ;;  %v306_v21 = vld [vmem:[%s2912_s6 + $0xcc] sm:$0xff]  }
 0x11d   : > { %v666_v52 = vadd.f32 %v578_v14, %v385_v17  ;;  %v1033_v35 = vmul.f32 %v3960_v12, %v2992_v49  ;;  %v1034_v60 = vmul.f32 %v3960_v12, %v3010_v63  ;;  %2754 = vmatprep.mubr.bf16.mxu1 %v2082_v31  ;;  %v1035_v26 = vmul.f32 %v3960_v12, %v3056_v55 }
 0x11e   : > { %v825_v24 = vsel %vm787_vm1, %v823_v16, %v824_v46  ;;  %v1281_v61 = vmul.f32 %v4042_v22, %v2992_v49  ;;  %v1282_v54 = vmul.f32 %v4042_v22, %v3010_v63  ;;  %v827_v1 = vsel %vm787_vm1, %v824_v46, %v826_v3  ;;  %v4055_v49 = vld [vmem:[%s4307_s1 + $0x6] ss:$0 sm:$0xff] }
 0x11f   : > { %v914_v41 = vadd.f32 %v825_v24, %v665_v13  ;;  %v1143_v5 = vrot.slane %v1033_v35, 1  ;;  %v1144_v6 = vrot.slane %v1034_v60, 1  ;;  %v915_v4 = vadd.f32 %v827_v1, %v666_v52 }
 0x120   : > { %v1146_v7 = vrot.slane %v1035_v26, 1  ;;  %v1283_v19 = vmul.f32 %v4042_v22, %v3056_v55  ;;  %v1391_v44 = vrot.slane %v1281_v61, 2  ;;  %v1392_v33 = vrot.slane %v1282_v54, 2 }
 0x121   : > { %v986_v10 = vadd.f32 %v954_v58, %v914_v41  ;;  %v1145_v15 = vsel %vm538_vm0, %v1143_v5, %v1144_v6  ;;  %v1522_v63 = vmul.f32 %v4055_v49, %v3058_v56  ;;  %v987_v11 = vadd.f32 %v955_v50, %v915_v4  ;;  %v4088_v50 = vld [vmem:[%s2912_s6 + $0xd4] sm:$0x1] }
 0x122   : > { %v1147_v23 = vsel %vm538_vm0, %v1144_v6, %v1146_v7  ;;  %v1394_v25 = vrot.slane %v1283_v19, 2  ;;  %v1523_v55 = vmul.f32 %v4055_v49, %v3064_v0  ;;  %v1393_v17 = vsel %vm787_vm1, %v1391_v44, %v1392_v33 }
 0x123   : > { %v1234_v29 = vadd.f32 %v1145_v15, %v986_v10  ;;  %v1601_v42 = vmul.f32 %v4066_v36, %v3058_v56  ;;  %v1602_v38 = vmul.f32 %v4066_v36, %v3064_v0  ;;  %v1235_v28 = vadd.f32 %v1147_v23, %v987_v11 }
 0x124   : > { %v1395_v47 = vsel %vm787_vm1, %v1392_v33, %v1394_v25  ;;  %v1603_v20 = vmul.f32 %v4066_v36, %v3067_v2  ;;  %v1849_v37 = vmul.f32 %v4078_v32, %v3058_v56  ;;  %v1850_v57 = vmul.f32 %v4078_v32, %v3064_v0 }
 0x125   : > { %v1482_v30 = vadd.f32 %v1393_v17, %v1234_v29  ;;  %v1711_v51 = vrot.slane %v1601_v42, 1  ;;  %v1712_v45 = vrot.slane %v1602_v38, 1  ;;  %v1483_v53 = vadd.f32 %v1395_v47, %v1235_v28 }
 0x126   : > { %v1714_v18 = vrot.slane %v1603_v20, 1  ;;  %v1851_v16 = vmul.f32 %v4078_v32, %v3067_v2  ;;  %v1959_v58 = vrot.slane %v1849_v37, 2  ;;  %v4090_v31 = vpop.f32.mrb[0].mxu0  ;;  %v1960_v13 = vrot.slane %v1850_v57, 2 }
 0x127   : > { %v1554_v14 = vadd.f32 %v1522_v63, %v1482_v30  ;;  %v1713_v56 = vsel %vm538_vm0, %v1711_v51, %v1712_v45  ;;  %v4093_v46 = vunpack.c.l.bf16 %v306_v21  ;;  %v4095_v52 = vpop.f32.mrb[1].mxu0  ;;  %v1555_v3 = vadd.f32 %v1523_v55, %v1483_v53 }
 0x128   : > { %v1715_v0 = vsel %vm538_vm0, %v1712_v45, %v1714_v18  ;;  %v1962_v35 = vrot.slane %v1851_v16, 2  ;;  %v4098_v60 = vunpack.c.h.bf16 %v306_v21  ;;  %v4100_v2 = vpop.f32.mrb[2].mxu0  ;;  %v1961_v26 = vsel %vm787_vm1, %v1959_v58, %v1960_v13 }
 0x129   : > { %v1802_v24 = vadd.f32 %v1713_v56, %v1554_v14  ;;  %v362_v61 = vunpack.c.l.bf16 %v4088_v50  ;;  %v400_v54 = vmul.f32 %v4000_v9, %v3788_v43  ;;  %v4106_v1 = vpop.f32.mrb[3].mxu0  ;;  %v1803_v41 = vadd.f32 %v1715_v0, %v1555_v3 }
 0x12a   : > { %v1963_v5 = vsel %vm787_vm1, %v1960_v13, %v1962_v35  ;;  %v401_v6 = vmul.f32 %v4000_v9, %v3791_v39  ;;  %v487_v4 = vmul.f32 %v4010_v27, %v3788_v43  ;;  %v488_v19 = vmul.f32 %v4010_v27, %v3791_v39 }
 0x12b   : > { %v2050_v7 = vadd.f32 %v1961_v26, %v1802_v24  ;;  %v489_v44 = vmul.f32 %v4010_v27, %v3793_v40  ;;  %v736_v10 = vmul.f32 %v3938_v62, %v3788_v43  ;;  %v2051_v15 = vadd.f32 %v1963_v5, %v1803_v41 }
 0x12c   : > { %v614_v33 = vrot.slane %v487_v4, 1  ;;  %v737_v63 = vmul.f32 %v3938_v62, %v3791_v39  ;;  %v738_v9 = vmul.f32 %v3938_v62, %v3793_v40  ;;  %v615_v11 = vrot.slane %v488_v19, 1 }
 0x12d   : > { %v617_v23 = vrot.slane %v489_v44, 1  ;;  %v863_v25 = vrot.slane %v736_v10, 2  ;;  %v970_v55 = vmul.f32 %v3949_v59, %v3915_v48  ;;  %v2075_v29 = vpack.c.bf16 %v2051_v15, %v2050_v7 }
 0x12e   : > { %v864_v17 = vrot.slane %v737_v63, 2  ;;  %v866_v27 = vrot.slane %v738_v9, 2  ;;  %v971_v43 = vmul.f32 %v3949_v59, %v3919_v8  ;;  %v616_v42 = vsel %vm538_vm0, %v614_v33, %v615_v11 }
 0x12f   : > { %v618_v38 = vsel %vm538_vm0, %v615_v11, %v617_v23  ;;  %v1057_v39 = vmul.f32 %v3960_v12, %v3915_v48  ;;  %v1058_v40 = vmul.f32 %v3960_v12, %v3919_v8  ;;  %2739 = vmatmul.mubr.bf16.gmra.mrb[12].mxu0 %v2075_v29  ;;  %v681_v62 = vadd.f32 %v616_v42, %v400_v54  ;;  %v4183_v42 = vld [vmem:[%s4310_s4] ss:$0 sm:$0xff] }
 0x130   : > { %v682_v28 = vadd.f32 %v618_v38, %v401_v6  ;;  %v865_v47 = vsel %vm787_vm1, %v863_v25, %v864_v17  ;;  %v867_v20 = vsel %vm787_vm1, %v864_v17, %v866_v27  ;;  %v1059_v59 = vmul.f32 %v3960_v12, %v3921_v34 }
 0x131   : > { %v1183_v37 = vrot.slane %v1057_v39, 1  ;;  %v1184_v21 = vrot.slane %v1058_v40, 1  ;;  %v1305_v30 = vmul.f32 %v4042_v22, %v3915_v48  ;;  %v930_v51 = vadd.f32 %v865_v47, %v681_v62 }
 0x132   : > { %v931_v45 = vadd.f32 %v867_v20, %v682_v28  ;;  %v1306_v57 = vmul.f32 %v4042_v22, %v3919_v8  ;;  %v1307_v53 = vmul.f32 %v4042_v22, %v3921_v34  ;;  %v1186_v16 = vrot.slane %v1059_v59, 1 }
 0x133   : > { %v1185_v18 = vsel %vm538_vm0, %v1183_v37, %v1184_v21  ;;  %v1431_v58 = vrot.slane %v1305_v30, 2  ;;  %v1538_v12 = vmul.f32 %v4055_v49, %v4093_v46  ;;  %v1002_v14 = vadd.f32 %v970_v55, %v930_v51 }
 0x134   : > { %v1003_v56 = vadd.f32 %v971_v43, %v931_v45  ;;  %v1432_v13 = vrot.slane %v1306_v57, 2  ;;  %v1434_v3 = vrot.slane %v1307_v53, 2  ;;  %v1187_v48 = vsel %vm538_vm0, %v1184_v21, %v1186_v16 }
 0x135   : > { %v1539_v0 = vmul.f32 %v4055_v49, %v4098_v60  ;;  %v1625_v8 = vmul.f32 %v4066_v36, %v4093_v46  ;;  %v1626_v34 = vmul.f32 %v4066_v36, %v4098_v60  ;;  %v1250_v22 = vadd.f32 %v1185_v18, %v1002_v14 }
 0x136   : > { %v1251_v35 = vadd.f32 %v1187_v48, %v1003_v56  ;;  %v1433_v24 = vsel %vm787_vm1, %v1431_v58, %v1432_v13  ;;  %v1435_v26 = vsel %vm787_vm1, %v1432_v13, %v1434_v3  ;;  %v1627_v54 = vmul.f32 %v4066_v36, %v362_v61 }
 0x137   : > { %v1751_v41 = vrot.slane %v1625_v8, 1  ;;  %v1752_v5 = vrot.slane %v1626_v34, 1  ;;  %v1873_v49 = vmul.f32 %v4078_v32, %v4093_v46  ;;  %v1498_v6 = vadd.f32 %v1433_v24, %v1250_v22 }
 0x138   : > { %v1499_v4 = vadd.f32 %v1435_v26, %v1251_v35  ;;  %v1874_v7 = vmul.f32 %v4078_v32, %v4098_v60  ;;  %v1875_v19 = vmul.f32 %v4078_v32, %v362_v61  ;;  %v2744_v44 = vpop.f32.mrb[0].mxu1  ;;  %v1754_v15 = vrot.slane %v1627_v54, 1  ;;  %v4170_v60 = vld [vmem:[%s4309_s3] ss:$0 sm:$0xff] }
 0x139   : > { %v1753_v10 = vsel %vm538_vm0, %v1751_v41, %v1752_v5  ;;  %v1999_v33 = vrot.slane %v1873_v49, 2  ;;  %vm2311_vm2 = vcmp.gt.f32.partialorder %v4090_v31, 0.0  ;;  %v2246_v36 = vpop.f32.mrb[1].mxu1  ;;  %v1570_v63 = vadd.f32 %v1538_v12, %v1498_v6 }
 0x13a   : > { %v1571_v46 = vadd.f32 %v1539_v0, %v1499_v4  ;;  %v2000_v9 = vrot.slane %v1874_v7, 2  ;;  %v2002_v11 = vrot.slane %v1875_v19, 2  ;;  %v2745_v50 = vpop.f32.mrb[2].mxu1  ;;  %v1755_v32 = vsel %vm538_vm0, %v1752_v5, %v1754_v15 }
 0x13b   : > { %v2343_v61 = vmul.f32 0.01, %v4090_v31  ;;  %vm2327_vm3 = vcmp.gt.f32.partialorder %v2744_v44, 0.0  ;;  %v2359_v23 = vmul.f32 0.01, %v2744_v44  ;;  %v2249_v25 = vpop.f32.mrb[3].mxu1  ;;  %v1818_v55 = vadd.f32 %v1753_v10, %v1570_v63 }
 0x13c   : > { %v1819_v29 = vadd.f32 %v1755_v32, %v1571_v46  ;;  %v2001_v17 = vsel %vm787_vm1, %v1999_v33, %v2000_v9  ;;  %v2003_v27 = vsel %vm787_vm1, %v2000_v9, %v2002_v11  ;;  %vm2309_vm4 = vcmp.gt.f32.partialorder %v4095_v52, 0.0 }
 0x13d   : > { %v2375_v43 = vsel %vm2311_vm2, %v4090_v31, %v2343_v61  ;;  %v2391_v38 = vsel %vm2327_vm3, %v2744_v44, %v2359_v23  ;;  %v2341_v39 = vmul.f32 0.01, %v4095_v52  ;;  %v2066_v40 = vadd.f32 %v2001_v17, %v1818_v55 }
 0x13e   : > { %v2067_v62 = vadd.f32 %v2003_v27, %v1819_v29  ;;  %v2414_v28 = vmul.f32 %v4170_v60, %v2375_v43  ;;  %v2430_v47 = vmul.f32 %v4170_v60, %v2391_v38  ;;  %vm2325_vm5 = vcmp.gt.f32.partialorder %v2246_v36, 0.0 }
 0x13f   : > { %v2373_v31 = vsel %vm2309_vm4, %v4095_v52, %v2341_v39  ;;  %v2357_v20 = vmul.f32 0.01, %v2246_v36  ;;  %vm2312_vm6 = vcmp.gt.f32.partialorder %v4100_v2, 0.0  ;;  %v2344_v45 = vmul.f32 0.01, %v4100_v2 }
 0x140   : > { %v2083_v59 = vpack.c.bf16 %v2067_v62, %v2066_v40  ;;  %v2453_v37 = vadd.f32 %v4183_v42, %v2414_v28  ;;  %v2469_v21 = vadd.f32 %v4183_v42, %v2430_v47  ;;  %v2412_v30 = vmul.f32 %v4170_v60, %v2373_v31 }
 0x141   : > { %v2389_v51 = vsel %vm2325_vm5, %v2246_v36, %v2357_v20  ;;  %vm2328_vm7 = vcmp.gt.f32.partialorder %v2745_v50, 0.0  ;;  %v2360_v57 = vmul.f32 0.01, %v2745_v50  ;;  %vm2310_vm8 = vcmp.gt.f32.partialorder %v4106_v1, 0.0 }
 0x142   : > { %2755 = vmatmul.mubr.bf16.gmra.mrb[12].mxu1 %v2083_v59  ;;  %2485 = vst [vmem:[%s4192_s16 + $0x10] sm:$0xff] %v2453_v37  ;;  %2501 = vst [vmem:[%s4192_s16 + $0x90] sm:$0xff] %v2469_v21  ;;  %v2451_v52 = vadd.f32 %v4183_v42, %v2412_v30  ;;  %v2428_v53 = vmul.f32 %v4170_v60, %v2389_v51  ;;  %v2342_v18 = vmul.f32 0.01, %v4106_v1  ;;  %vm2326_vm9 = vcmp.gt.f32.partialorder %v2249_v25, 0.0 }
 0x143   : > { %v2376_v16 = vsel %vm2312_vm6, %v4100_v2, %v2344_v45  ;;  %v2392_v58 = vsel %vm2328_vm7, %v2745_v50, %v2360_v57  ;;  %v2358_v12 = vmul.f32 0.01, %v2249_v25 }
 0x144   : > { %2483 = vst [vmem:[%s4192_s16] sm:$0xff] %v2451_v52  ;;  %v2467_v14 = vadd.f32 %v4183_v42, %v2428_v53  ;;  %v2415_v56 = vmul.f32 %v4170_v60, %v2376_v16  ;;  %v2431_v13 = vmul.f32 %v4170_v60, %v2392_v58  ;;  %v2374_v3 = vsel %vm2310_vm8, %v4106_v1, %v2342_v18 }
 0x145   : > { %v2413_v48 = vmul.f32 %v4170_v60, %v2374_v3  ;;  %v2390_v0 = vsel %vm2326_vm9, %v2249_v25, %v2358_v12 }
 0x146   : > { %2499 = vst [vmem:[%s4192_s16 + $0x80] sm:$0xff] %v2467_v14  ;;  %v2454_v2 = vadd.f32 %v4183_v42, %v2415_v56  ;;  %v2470_v8 = vadd.f32 %v4183_v42, %v2431_v13  ;;  %v2429_v34 = vmul.f32 %v4170_v60, %v2390_v0 }
 0x147   : > { %v2452_v22 = vadd.f32 %v4183_v42, %v2413_v48 }
 0x148   : > { %2486 = vst [vmem:[%s4192_s16 + $0x18] sm:$0xff] %v2454_v2  ;;  %2502 = vst [vmem:[%s4192_s16 + $0x98] sm:$0xff] %v2470_v8  ;;  %v2468_v35 = vadd.f32 %v4183_v42, %v2429_v34 }
 0x149   : > { %2484 = vst [vmem:[%s4192_s16 + $0x8] sm:$0xff] %v2452_v22 }
 0x14a   : > { %2500 = vst [vmem:[%s4192_s16 + $0x88] sm:$0xff] %v2468_v35 }
 0x170   : > { %v2732_v24 = vpop.f32.mrb[4].mxu0 }
 0x171   : > { %vm2315_vm10 = vcmp.gt.f32.partialorder %v2732_v24, 0.0  ;;  %v2347_v1 = vmul.f32 0.01, %v2732_v24  ;;  %v2198_v26 = vpop.f32.mrb[5].mxu0 }
 0x172   : > { %vm2313_vm11 = vcmp.gt.f32.partialorder %v2198_v26, 0.0  ;;  %v2345_v54 = vmul.f32 0.01, %v2198_v26  ;;  %v2733_v41 = vpop.f32.mrb[6].mxu0 }
 0x173   : > { %v2379_v5 = vsel %vm2315_vm10, %v2732_v24, %v2347_v1  ;;  %vm2316_vm12 = vcmp.gt.f32.partialorder %v2733_v41, 0.0  ;;  %v2348_v49 = vmul.f32 0.01, %v2733_v41  ;;  %v2201_v6 = vpop.f32.mrb[7].mxu0 }
 0x174   : > { %v2418_v4 = vmul.f32 %v4170_v60, %v2379_v5  ;;  %v2377_v7 = vsel %vm2313_vm11, %v2198_v26, %v2345_v54  ;;  %vm2314_vm13 = vcmp.gt.f32.partialorder %v2201_v6, 0.0  ;;  %v2346_v19 = vmul.f32 0.01, %v2201_v6 }
 0x175   : > { %v2416_v44 = vmul.f32 %v4170_v60, %v2377_v7  ;;  %v2380_v10 = vsel %vm2316_vm12, %v2733_v41, %v2348_v49 }
 0x176   : > { %v2457_v15 = vadd.f32 %v4183_v42, %v2418_v4  ;;  %v2419_v33 = vmul.f32 %v4170_v60, %v2380_v10  ;;  %v2378_v36 = vsel %vm2314_vm13, %v2201_v6, %v2346_v19 }
 0x177   : > { %v2455_v63 = vadd.f32 %v4183_v42, %v2416_v44  ;;  %v2417_v46 = vmul.f32 %v4170_v60, %v2378_v36 }
 0x178   : > { %2489 = vst [vmem:[%s4192_s16 + $0x30] sm:$0xff] %v2457_v15  ;;  %v2458_v9 = vadd.f32 %v4183_v42, %v2419_v33 }
 0x179   : > { %2487 = vst [vmem:[%s4192_s16 + $0x20] sm:$0xff] %v2455_v63  ;;  %v2456_v11 = vadd.f32 %v4183_v42, %v2417_v46 }
 0x17a   : > { %2490 = vst [vmem:[%s4192_s16 + $0x38] sm:$0xff] %v2458_v9 }
 0x17b   : > { %2488 = vst [vmem:[%s4192_s16 + $0x28] sm:$0xff] %v2456_v11 }
 0x182   : > { %v2748_v50 = vpop.f32.mrb[4].mxu1 }
 0x183   : > { %vm2331_vm14 = vcmp.gt.f32.partialorder %v2748_v50, 0.0  ;;  %v2363_v32 = vmul.f32 0.01, %v2748_v50  ;;  %v2262_v61 = vpop.f32.mrb[5].mxu1 }
 0x184   : > { %vm2329_vm15 = vcmp.gt.f32.partialorder %v2262_v61, 0.0  ;;  %v2361_v23 = vmul.f32 0.01, %v2262_v61  ;;  %v2749_v25 = vpop.f32.mrb[6].mxu1 }
 0x185   : > { %v2395_v55 = vsel %vm2331_vm14, %v2748_v50, %v2363_v32  ;;  %vm2332_vm0 = vcmp.gt.f32.partialorder %v2749_v25, 0.0  ;;  %v2364_v29 = vmul.f32 0.01, %v2749_v25  ;;  %v2265_v17 = vpop.f32.mrb[7].mxu1 }
 0x186   : > { %v2434_v27 = vmul.f32 %v4170_v60, %v2395_v55  ;;  %v2393_v43 = vsel %vm2329_vm15, %v2262_v61, %v2361_v23  ;;  %vm2330_vm1 = vcmp.gt.f32.partialorder %v2265_v17, 0.0  ;;  %v2362_v38 = vmul.f32 0.01, %v2265_v17 }
 0x187   : > { %v2432_v39 = vmul.f32 %v4170_v60, %v2393_v43  ;;  %v2396_v40 = vsel %vm2332_vm0, %v2749_v25, %v2364_v29 }
 0x188   : > { %v2473_v62 = vadd.f32 %v4183_v42, %v2434_v27  ;;  %v2435_v28 = vmul.f32 %v4170_v60, %v2396_v40  ;;  %v2394_v47 = vsel %vm2330_vm1, %v2265_v17, %v2362_v38 }
 0x189   : > { %v2471_v31 = vadd.f32 %v4183_v42, %v2432_v39  ;;  %v2433_v20 = vmul.f32 %v4170_v60, %v2394_v47 }
 0x18a   : > { %2505 = vst [vmem:[%s4192_s16 + $0xb0] sm:$0xff] %v2473_v62  ;;  %v2474_v59 = vadd.f32 %v4183_v42, %v2435_v28 }
 0x18b   : > { %2503 = vst [vmem:[%s4192_s16 + $0xa0] sm:$0xff] %v2471_v31  ;;  %v2472_v37 = vadd.f32 %v4183_v42, %v2433_v20 }
 0x18c   : > { %2506 = vst [vmem:[%s4192_s16 + $0xb8] sm:$0xff] %v2474_v59 }
 0x18d   : > { %2504 = vst [vmem:[%s4192_s16 + $0xa8] sm:$0xff] %v2472_v37 }
 0x1ba   : > { %v2736_v21 = vpop.f32.mrb[8].mxu0 }
 0x1bb   : > { %vm2319_vm2 = vcmp.gt.f32.partialorder %v2736_v21, 0.0  ;;  %v2351_v30 = vmul.f32 0.01, %v2736_v21  ;;  %v2214_v51 = vpop.f32.mrb[9].mxu0 }
 0x1bc   : > { %vm2317_vm3 = vcmp.gt.f32.partialorder %v2214_v51, 0.0  ;;  %v2349_v45 = vmul.f32 0.01, %v2214_v51  ;;  %v2737_v57 = vpop.f32.mrb[10].mxu0 }
 0x1bd   : > { %v2383_v52 = vsel %vm2319_vm2, %v2736_v21, %v2351_v30  ;;  %vm2320_vm4 = vcmp.gt.f32.partialorder %v2737_v57, 0.0  ;;  %v2352_v53 = vmul.f32 0.01, %v2737_v57  ;;  %v2217_v18 = vpop.f32.mrb[11].mxu0 }
 0x1be   : > { %v2422_v16 = vmul.f32 %v4170_v60, %v2383_v52  ;;  %v2381_v58 = vsel %vm2317_vm3, %v2214_v51, %v2349_v45  ;;  %vm2318_vm5 = vcmp.gt.f32.partialorder %v2217_v18, 0.0  ;;  %v2350_v12 = vmul.f32 0.01, %v2217_v18 }
 0x1bf   : > { %v2420_v14 = vmul.f32 %v4170_v60, %v2381_v58  ;;  %v2384_v56 = vsel %vm2320_vm4, %v2737_v57, %v2352_v53 }
 0x1c0   : > { %v2461_v13 = vadd.f32 %v4183_v42, %v2422_v16  ;;  %v2423_v3 = vmul.f32 %v4170_v60, %v2384_v56  ;;  %v2382_v48 = vsel %vm2318_vm5, %v2217_v18, %v2350_v12 }
 0x1c1   : > { %v2459_v0 = vadd.f32 %v4183_v42, %v2420_v14  ;;  %v2421_v2 = vmul.f32 %v4170_v60, %v2382_v48 }
 0x1c2   : > { %2493 = vst [vmem:[%s4192_s16 + $0x50] sm:$0xff] %v2461_v13  ;;  %v2462_v8 = vadd.f32 %v4183_v42, %v2423_v3 }
 0x1c3   : > { %2491 = vst [vmem:[%s4192_s16 + $0x40] sm:$0xff] %v2459_v0  ;;  %v2460_v34 = vadd.f32 %v4183_v42, %v2421_v2 }
 0x1c4   : > { %2494 = vst [vmem:[%s4192_s16 + $0x58] sm:$0xff] %v2462_v8 }
 0x1c5   : > { %2492 = vst [vmem:[%s4192_s16 + $0x48] sm:$0xff] %v2460_v34 }
 0x1cc   : > { %v2752_v22 = vpop.f32.mrb[8].mxu1 }
 0x1cd   : > { %vm2335_vm6 = vcmp.gt.f32.partialorder %v2752_v22, 0.0  ;;  %v2367_v35 = vmul.f32 0.01, %v2752_v22  ;;  %v2278_v24 = vpop.f32.mrb[9].mxu1 }
 0x1ce   : > { %vm2333_vm7 = vcmp.gt.f32.partialorder %v2278_v24, 0.0  ;;  %v2365_v1 = vmul.f32 0.01, %v2278_v24  ;;  %v2753_v26 = vpop.f32.mrb[10].mxu1 }
 0x1cf   : > { %v2399_v54 = vsel %vm2335_vm6, %v2752_v22, %v2367_v35  ;;  %vm2336_vm8 = vcmp.gt.f32.partialorder %v2753_v26, 0.0  ;;  %v2368_v41 = vmul.f32 0.01, %v2753_v26  ;;  %v2281_v5 = vpop.f32.mrb[11].mxu1 }
 0x1d0   : > { %v2438_v49 = vmul.f32 %v4170_v60, %v2399_v54  ;;  %v2397_v6 = vsel %vm2333_vm7, %v2278_v24, %v2365_v1  ;;  %vm2334_vm9 = vcmp.gt.f32.partialorder %v2281_v5, 0.0  ;;  %v2366_v4 = vmul.f32 0.01, %v2281_v5 }
 0x1d1   : > { %v2436_v7 = vmul.f32 %v4170_v60, %v2397_v6  ;;  %v2400_v19 = vsel %vm2336_vm8, %v2753_v26, %v2368_v41 }
 0x1d2   : > { %v2477_v44 = vadd.f32 %v4183_v42, %v2438_v49  ;;  %v2439_v10 = vmul.f32 %v4170_v60, %v2400_v19  ;;  %v2398_v15 = vsel %vm2334_vm9, %v2281_v5, %v2366_v4 }
 0x1d3   : > { %v2475_v33 = vadd.f32 %v4183_v42, %v2436_v7  ;;  %v2437_v36 = vmul.f32 %v4170_v60, %v2398_v15 }
 0x1d4   : > { %2509 = vst [vmem:[%s4192_s16 + $0xd0] sm:$0xff] %v2477_v44  ;;  %v2478_v63 = vadd.f32 %v4183_v42, %v2439_v10 }
 0x1d5   : > { %2507 = vst [vmem:[%s4192_s16 + $0xc0] sm:$0xff] %v2475_v33  ;;  %v2476_v46 = vadd.f32 %v4183_v42, %v2437_v36 }
 0x1d6   : > { %2510 = vst [vmem:[%s4192_s16 + $0xd8] sm:$0xff] %v2478_v63 }
 0x1d7   : > { %2508 = vst [vmem:[%s4192_s16 + $0xc8] sm:$0xff] %v2476_v46 }
 0x202   : > { %v2740_v9 = vpop.f32.mrb[12].mxu0 }
 0x203   : > { %vm2323_vm10 = vcmp.gt.f32.partialorder %v2740_v9, 0.0  ;;  %v2355_v11 = vmul.f32 0.01, %v2740_v9  ;;  %v2230_v50 = vpop.f32.mrb[13].mxu0 }
 0x204   : > { %vm2321_vm11 = vcmp.gt.f32.partialorder %v2230_v50, 0.0  ;;  %v2353_v32 = vmul.f32 0.01, %v2230_v50  ;;  %v2741_v61 = vpop.f32.mrb[14].mxu0 }
 0x205   : > { %v2387_v23 = vsel %vm2323_vm10, %v2740_v9, %v2355_v11  ;;  %vm2324_vm12 = vcmp.gt.f32.partialorder %v2741_v61, 0.0  ;;  %v2356_v25 = vmul.f32 0.01, %v2741_v61  ;;  %v2233_v55 = vpop.f32.mrb[15].mxu0 }
 0x206   : > { %v2426_v29 = vmul.f32 %v4170_v60, %v2387_v23  ;;  %v2385_v17 = vsel %vm2321_vm11, %v2230_v50, %v2353_v32  ;;  %vm2322_vm13 = vcmp.gt.f32.partialorder %v2233_v55, 0.0  ;;  %v2354_v27 = vmul.f32 0.01, %v2233_v55 }
 0x207   : > { %v2424_v43 = vmul.f32 %v4170_v60, %v2385_v17  ;;  %v2388_v38 = vsel %vm2324_vm12, %v2741_v61, %v2356_v25 }
 0x208   : > { %v2465_v39 = vadd.f32 %v4183_v42, %v2426_v29  ;;  %v2427_v40 = vmul.f32 %v4170_v60, %v2388_v38  ;;  %v2386_v62 = vsel %vm2322_vm13, %v2233_v55, %v2354_v27 }
 0x209   : > { %v2463_v28 = vadd.f32 %v4183_v42, %v2424_v43  ;;  %v2425_v47 = vmul.f32 %v4170_v60, %v2386_v62 }
 0x20a   : > { %2497 = vst [vmem:[%s4192_s16 + $0x70] sm:$0xff] %v2465_v39  ;;  %v2466_v31 = vadd.f32 %v4183_v42, %v2427_v40 }
 0x20b   : > { %2495 = vst [vmem:[%s4192_s16 + $0x60] sm:$0xff] %v2463_v28  ;;  %v2464_v20 = vadd.f32 %v4183_v42, %v2425_v47 }
 0x20c   : > { %2498 = vst [vmem:[%s4192_s16 + $0x78] sm:$0xff] %v2466_v31 }
 0x20d   : > { %2496 = vst [vmem:[%s4192_s16 + $0x68] sm:$0xff] %v2464_v20 }
 0x215   : > { %v2756_v59 = vpop.f32.mrb[12].mxu1 }
 0x216   : > { %vm2339_vm14 = vcmp.gt.f32.partialorder %v2756_v59, 0.0  ;;  %v2371_v37 = vmul.f32 0.01, %v2756_v59  ;;  %v2294_v21 = vpop.f32.mrb[13].mxu1 }
 0x217   : > { %vm2337_vm15 = vcmp.gt.f32.partialorder %v2294_v21, 0.0  ;;  %v2369_v30 = vmul.f32 0.01, %v2294_v21  ;;  %v2757_v51 = vpop.f32.mrb[14].mxu1 }
 0x218   : > { %v2403_v45 = vsel %vm2339_vm14, %v2756_v59, %v2371_v37  ;;  %vm2340_vm0 = vcmp.gt.f32.partialorder %v2757_v51, 0.0  ;;  %v2372_v57 = vmul.f32 0.01, %v2757_v51  ;;  %v2297_v52 = vpop.f32.mrb[15].mxu1 }
 0x219   : > { %v2442_v53 = vmul.f32 %v4170_v60, %v2403_v45  ;;  %v2401_v18 = vsel %vm2337_vm15, %v2294_v21, %v2369_v30  ;;  %vm2338_vm1 = vcmp.gt.f32.partialorder %v2297_v52, 0.0  ;;  %v2370_v16 = vmul.f32 0.01, %v2297_v52 }
 0x21a   : > { %v2440_v58 = vmul.f32 %v4170_v60, %v2401_v18  ;;  %v2404_v12 = vsel %vm2340_vm0, %v2757_v51, %v2372_v57 }
 0x21b   : > { %v2481_v14 = vadd.f32 %v4183_v42, %v2442_v53  ;;  %v2443_v56 = vmul.f32 %v4170_v60, %v2404_v12  ;;  %v2402_v13 = vsel %vm2338_vm1, %v2297_v52, %v2370_v16 }
 0x21c   : > { %v2479_v3 = vadd.f32 %v4183_v42, %v2440_v58  ;;  %v2441_v48 = vmul.f32 %v4170_v60, %v2402_v13 }
 0x21d   : > { %2513 = vst [vmem:[%s4192_s16 + $0xf0] sm:$0xff] %v2481_v14  ;;  %v2482_v0 = vadd.f32 %v4183_v42, %v2443_v56 }
 0x21e   : > { %2511 = vst [vmem:[%s4192_s16 + $0xe0] sm:$0xff] %v2479_v3  ;;  %v2480_v2 = vadd.f32 %v4183_v42, %v2441_v48 }
 0x21f   : > { %2514 = vst [vmem:[%s4192_s16 + $0xf8] sm:$0xff] %v2482_v0 }
 0x220   : > { %2512 = vst [vmem:[%s4192_s16 + $0xe8] sm:$0xff] %v2480_v2 }
 0x221 PF: > { %s15_s20 = sadd.s32 1, %s2847_s20   ;;  %s4312_s18 = smov %s2843_s19 }
 0x222   : > { %p12_p5 = scmp.ge.s32.totalorder %s15_s20, 4   ;;  %s4313_s19 = smov %s4315_s21 }
 0x224   :  { %14 = sbr.rel (!%p12_p5) target bundleno = 2 (0x2), region = 79 }

// kernel: double_sep_conv_v2_forward.2
= control target key start
LH: loop header
LB: loop body
LE: loop exit
PB: predicated region body
PF: predicated region fallthrough
CT: control target
= control target key end

     0   :  { %s3030_s18 = smov 0   ;;  %s3032_s19 = smov 0   ;;  %s4413_s0 = inlined_call_operand.vmem [shape: f32[2,18,18,8], index: 0, kind: input, shape index: {}]   ;;  %s4414_s1 = inlined_call_operand.vmem [shape: f32[9,1,1,8], index: 1, kind: input, shape index: {}]   ;;  %s4415_s2 = inlined_call_operand.vmem [shape: bf16[8,128], index: 2, kind: input, shape index: {}]   ;;  %s4416_s3 = inlined_call_operand.vmem [shape: f32[1,128], index: 3, kind: input, shape index: {}]   ;;  %s4417_s4 = inlined_call_operand.vmem [shape: f32[1,128], index: 4, kind: input, shape index: {}]   ;;  %s4418_s5 = inlined_call_operand.vmem [shape: bf16[2,16,16,128], index: 5, kind: output, shape index: {}]  }
   0x1   :  { %s3034_s20 = smov 0  }
   0x2 LB: > { %s27_s21 = sadd.s32 1, %s2994_s19  ;;  %p2671_p0 = scmp.ge.s32.totalorder %s2998_s20, 1  ;;  %s2998_s20 = sphi %s3034_s20, %s15_s20   ;;  %s2994_s19 = sphi %s3032_s19, %s4420_s19   ;;  %s2990_s18 = sphi %s3030_s18, %s4419_s18  }
   0x3   : > { %p29_p1 = scmp.ge.s32.totalorder %s27_s21, 2  ;;  %p201_p2 = scmp.lt.s32.totalorder %s2998_s20, 3 }
   0x5   : > { %s4422_s21 = smov (%p29_p1, %s27_s21), 0  ;;  %p202_p3 = pnand %p2671_p0, %p201_p2 }
   0x6   : > { %v2029_v0 = vld [vmem:[%s4415_s2] sm:$0xf] (!%p202_p3)  ;;  %vm2079_vm0 = vcmask (!%p202_p3), 1043456   ;;  %p234_p4 = scmp.lt.s32.totalorder (!%p202_p3), %s2990_s18, 1  ;;  %vm483_vm1 = vcmask (!%p202_p3), 1046528   ;;  %vm732_vm2 = vcmask (!%p202_p3), 1045504  }
   0x7   : > { %205 = sbr.rel (%p202_p3) target bundleno = 533 (0x215), region = 40  ;;  %2925 = vmatprep.subr.msk.bf16.mxu0 (!%p202_p3), %vm2079_vm0, %v2029_v0  ;;  %2926 = vmatprep.subr.msk.bf16.mxu1 (!%p202_p3), %vm2079_vm0, %v2029_v0  ;;  %v2081_v1 = vsel (!%p202_p3), %vm2079_vm0, %v2029_v0, 0  ;;  %v3057_v2 = vld [vmem:[%s4414_s1] ss:$0 sm:$0xff] (!%p202_p3)  ;;  %v3062_v3 = vld [vmem:[%s4414_s1 + $0x1] ss:$0 sm:$0xff] (!%p202_p3) }
   0x8   : > { %2890 = vmatpush3.bf16.msra.mxu0 (!%p202_p3), %v2081_v1  ;;  %2924 = vmatpush3.bf16.msra.mxu1 (!%p202_p3), %v2081_v1  ;;  %v3072_v4 = vld [vmem:[%s4414_s1 + $0x2] ss:$0 sm:$0xff] (!%p202_p3)  ;;  %v3099_v22 = vld [vmem:[%s4414_s1 + $0x3] ss:$0 sm:$0xff] (!%p202_p3)  ;;  %v3113_v32 = vld [vmem:[%s4414_s1 + $0x4] ss:$0 sm:$0xff] (!%p202_p3) }
   0x9   : > { %v3125_v38 = vld [vmem:[%s4414_s1 + $0x5] ss:$0 sm:$0xff] (!%p202_p3)  ;;  %v3144_v51 = vld [vmem:[%s4414_s1 + $0x6] ss:$0 sm:$0xff] (!%p202_p3)  ;;  %v3149_v52 = vld [vmem:[%s4414_s1 + $0x7] ss:$0 sm:$0xff] (!%p202_p3) }
   0xa   : > { %v3154_v57 = vld [vmem:[%s4414_s1 + $0x8] ss:$0 sm:$0xff] (!%p202_p3)  ;;  %vm2030_vm3 = vcmask (!%p202_p3), 64512  }
   0xe   : > { %s4424_s18 = smov (!%p234_p4, %s2990_s18), 1 }
   0xf   : > { %s2927_s24 = smul.u32 432, %s4424_s18 }
  0x11   : > { %s3067_s6 = scalar_lea.vmem %s4413_s0, %s2927_s24  ;;  %s2744_s24 = sshll.u32 %s4424_s18, 7 }
  0x12   : > { %v254_v5 = vld [vmem:[%s3067_s6] sm:$0xff]  ;;  %v255_v6 = vld [vmem:[%s3067_s6 + $0x8] sm:$0xff]  ;;  %v256_v7 = vld [vmem:[%s3067_s6 + $0x10] sm:$0x3]  ;;  %s4329_s26 = scalar_lea.vmem %s4418_s5, %s2744_s24 }
  0x13   : > { %v259_v8 = vld [vmem:[%s3067_s6 + $0x28] sm:$0x3]  ;;  %v315_v9 = vmul.f32 %v3057_v2, %v254_v5  ;;  %v316_v10 = vmul.f32 %v3057_v2, %v255_v6  ;;  %v387_v11 = vmul.f32 %v3062_v3, %v254_v5  ;;  %v388_v12 = vmul.f32 %v3062_v3, %v255_v6  ;;  %v3083_v13 = vld [vmem:[%s3067_s6 + $0x40] sm:$0x3]  ;;  %v3106_v27 = vld [vmem:[%s3067_s6 + $0x18] sm:$0xff] }
  0x14   : > { %v389_v14 = vmul.f32 %v3062_v3, %v256_v7  ;;  %v3087_v15 = vmul.f32 %v3062_v3, %v259_v8  ;;  %v636_v16 = vmul.f32 %v3072_v4, %v254_v5  ;;  %v637_v17 = vmul.f32 %v3072_v4, %v255_v6  ;;  %v3116_v33 = vld [vmem:[%s3067_s6 + $0x20] sm:$0xff]  ;;  %v3157_v58 = vld [vmem:[%s3067_s6 + $0x30] sm:$0xff]  ;;  %v3160_v59 = vld [vmem:[%s3067_s6 + $0x38] sm:$0xff] }
  0x15   : > { %v3093_v18 = vmul.f32 %v3062_v3, %v3083_v13  ;;  %v484_v19 = vrot.slane %v387_v11, 1  ;;  %v485_v20 = vrot.slane %v388_v12, 1  ;;  %v638_v21 = vmul.f32 %v3072_v4, %v256_v7 }
  0x16   : > { %v487_v23 = vrot.slane %v389_v14, 1  ;;  %v492_v24 = vrot.slane %v3087_v15, 1  ;;  %v3103_v25 = vmul.f32 %v3072_v4, %v259_v8  ;;  %v733_v26 = vrot.slane %v636_v16, 2 }
  0x17   : > { %v486_v28 = vsel %vm483_vm1, %v484_v19, %v485_v20  ;;  %v497_v29 = vrot.slane %v3093_v18, 1  ;;  %v734_v30 = vrot.slane %v637_v17, 2  ;;  %v736_v31 = vrot.slane %v638_v21, 2 }
  0x18   : > { %v488_v34 = vsel %vm483_vm1, %v485_v20, %v487_v23  ;;  %v596_v35 = vadd.f32 %v486_v28, %v315_v9  ;;  %v741_v36 = vrot.slane %v3103_v25, 2  ;;  %v885_v37 = vmul.f32 %v3099_v22, %v3106_v27  ;;  %v3306_v25 = vld [vmem:[%s3067_s6 + $0x50] sm:$0xff] }
  0x19   : > { %v597_v39 = vadd.f32 %v488_v34, %v316_v10  ;;  %v735_v40 = vsel %vm732_vm2, %v733_v26, %v734_v30  ;;  %v737_v41 = vsel %vm732_vm2, %v734_v30, %v736_v31  ;;  %v886_v42 = vmul.f32 %v3099_v22, %v3116_v33  ;;  %v278_v31 = vld [vmem:[%s3067_s6 + $0xc0] sm:$0xff]  ;;  %v279_v34 = vld [vmem:[%s3067_s6 + $0xc8] sm:$0xff] }
  0x1a   : > { %v845_v43 = vadd.f32 %v735_v40, %v596_v35  ;;  %v957_v44 = vmul.f32 %v3113_v32, %v3106_v27  ;;  %v958_v45 = vmul.f32 %v3113_v32, %v3116_v33  ;;  %v959_v46 = vmul.f32 %v3113_v32, %v259_v8 }
  0x1b   : > { %v846_v47 = vadd.f32 %v737_v41, %v597_v39  ;;  %v1205_v48 = vmul.f32 %v3125_v38, %v3106_v27  ;;  %v1206_v49 = vmul.f32 %v3125_v38, %v3116_v33  ;;  %v1207_v50 = vmul.f32 %v3125_v38, %v259_v8  ;;  %v280_v41 = vld [vmem:[%s3067_s6 + $0xd0] sm:$0x3] }
  0x1c   : > { %v917_v53 = vadd.f32 %v885_v37, %v845_v43  ;;  %v1053_v54 = vrot.slane %v957_v44, 1  ;;  %v1054_v55 = vrot.slane %v958_v45, 1  ;;  %v1056_v56 = vrot.slane %v959_v46, 1 }
  0x1d   : > { %v918_v60 = vadd.f32 %v886_v42, %v846_v47  ;;  %v1301_v61 = vrot.slane %v1205_v48, 2  ;;  %v1302_v62 = vrot.slane %v1206_v49, 2  ;;  %v1304_v63 = vrot.slane %v1207_v50, 2  ;;  %v3186_v42 = vld [vmem:[%s3067_s6 + $0x100] sm:$0x3] }
  0x1e   : > { %v1055_v0 = vsel %vm483_vm1, %v1053_v54, %v1054_v55  ;;  %v1057_v1 = vsel %vm483_vm1, %v1054_v55, %v1056_v56  ;;  %v1453_v5 = vmul.f32 %v3144_v51, %v3157_v58  ;;  %v1454_v6 = vmul.f32 %v3144_v51, %v3160_v59 }
  0x1f   : > { %v1165_v7 = vadd.f32 %v1055_v0, %v917_v53  ;;  %v1166_v8 = vadd.f32 %v1057_v1, %v918_v60  ;;  %v1303_v9 = vsel %vm732_vm2, %v1301_v61, %v1302_v62  ;;  %v1305_v10 = vsel %vm732_vm2, %v1302_v62, %v1304_v63 }
  0x20   : > { %v1525_v11 = vmul.f32 %v3149_v52, %v3157_v58  ;;  %v1526_v12 = vmul.f32 %v3149_v52, %v3160_v59  ;;  %v1527_v14 = vmul.f32 %v3149_v52, %v3083_v13  ;;  %v1773_v16 = vmul.f32 %v3154_v57, %v3157_v58 }
  0x21   : > { %v1413_v17 = vadd.f32 %v1303_v9, %v1165_v7  ;;  %v1414_v19 = vadd.f32 %v1305_v10, %v1166_v8  ;;  %v1774_v20 = vmul.f32 %v3154_v57, %v3160_v59  ;;  %v1775_v21 = vmul.f32 %v3154_v57, %v3083_v13  ;;  %v3205_v8 = vld [vmem:[%s3067_s6 + $0xd8] sm:$0xff]  ;;  %v3208_v9 = vld [vmem:[%s3067_s6 + $0xe0] sm:$0xff] }
  0x22   : > { %v1621_v23 = vrot.slane %v1525_v11, 1  ;;  %v1622_v26 = vrot.slane %v1526_v12, 1  ;;  %v1624_v28 = vrot.slane %v1527_v14, 1  ;;  %v1869_v30 = vrot.slane %v1773_v16, 2 }
  0x23   : > { %v1485_v35 = vadd.f32 %v1453_v5, %v1413_v17  ;;  %v1486_v37 = vadd.f32 %v1454_v6, %v1414_v19  ;;  %v1870_v39 = vrot.slane %v1774_v20, 2  ;;  %v1872_v40 = vrot.slane %v1775_v21, 2  ;;  %v3219_v20 = vld [vmem:[%s3067_s6 + $0xe8] sm:$0x3] }
  0x24   : > { %v1623_v43 = vsel %vm483_vm1, %v1621_v23, %v1622_v26  ;;  %v1625_v44 = vsel %vm483_vm1, %v1622_v26, %v1624_v28  ;;  %v331_v45 = vmul.f32 %v3057_v2, %v278_v31  ;;  %v332_v46 = vmul.f32 %v3057_v2, %v279_v34 }
  0x25   : > { %v1733_v47 = vadd.f32 %v1623_v43, %v1485_v35  ;;  %v1734_v48 = vadd.f32 %v1625_v44, %v1486_v37  ;;  %v1871_v49 = vsel %vm732_vm2, %v1869_v30, %v1870_v39  ;;  %v1873_v50 = vsel %vm732_vm2, %v1870_v39, %v1872_v40 }
  0x26   : > { %v411_v53 = vmul.f32 %v3062_v3, %v278_v31  ;;  %v412_v54 = vmul.f32 %v3062_v3, %v279_v34  ;;  %v413_v55 = vmul.f32 %v3062_v3, %v280_v41  ;;  %v3199_v56 = vmul.f32 %v3062_v3, %v3186_v42 }
  0x27   : > { %v1981_v60 = vadd.f32 %v1871_v49, %v1733_v47  ;;  %v1982_v61 = vadd.f32 %v1873_v50, %v1734_v48  ;;  %v660_v62 = vmul.f32 %v3072_v4, %v278_v31  ;;  %v661_v63 = vmul.f32 %v3072_v4, %v279_v34  ;;  %v3236_v47 = vld [vmem:[%s3067_s6 + $0xf0] sm:$0xff] }
  0x28   : > { %v524_v0 = vrot.slane %v411_v53, 1  ;;  %v525_v1 = vrot.slane %v412_v54, 1  ;;  %v527_v5 = vrot.slane %v413_v55, 1  ;;  %v537_v6 = vrot.slane %v3199_v56, 1  ;;  %v3239_v54 = vld [vmem:[%s3067_s6 + $0xf8] sm:$0xff] }
  0x29   : > { %v2013_v7 = vpack.c.bf16 %v1982_v61, %v1981_v60  ;;  %v662_v10 = vmul.f32 %v3072_v4, %v280_v41  ;;  %v773_v11 = vrot.slane %v660_v62, 2  ;;  %v774_v12 = vrot.slane %v661_v63, 2 }
  0x2a   : > { %v526_v14 = vsel %vm483_vm1, %v524_v0, %v525_v1  ;;  %v528_v16 = vsel %vm483_vm1, %v525_v1, %v527_v5  ;;  %v901_v17 = vmul.f32 %v3099_v22, %v3205_v8  ;;  %v902_v19 = vmul.f32 %v3099_v22, %v3208_v9 }
  0x2b   : > { %2891 = vmatprep.mubr.msk.bf16.mxu0 %vm2030_vm3, %v2013_v7  ;;  %v612_v21 = vadd.f32 %v526_v14, %v331_v45  ;;  %v613_v23 = vadd.f32 %v528_v16, %v332_v46  ;;  %v775_v26 = vsel %vm732_vm2, %v773_v11, %v774_v12  ;;  %v776_v28 = vrot.slane %v662_v10, 2 }
  0x2c   : > { %v981_v30 = vmul.f32 %v3113_v32, %v3205_v8  ;;  %v982_v31 = vmul.f32 %v3113_v32, %v3208_v9  ;;  %v983_v34 = vmul.f32 %v3113_v32, %v3219_v20  ;;  %v1229_v35 = vmul.f32 %v3125_v38, %v3205_v8 }
  0x2d   : > { %v777_v37 = vsel %vm732_vm2, %v774_v12, %v776_v28  ;;  %v861_v39 = vadd.f32 %v775_v26, %v612_v21  ;;  %v1230_v40 = vmul.f32 %v3125_v38, %v3208_v9  ;;  %v1231_v41 = vmul.f32 %v3125_v38, %v3219_v20 }
  0x2e   : > { %v862_v43 = vadd.f32 %v777_v37, %v613_v23  ;;  %v1093_v44 = vrot.slane %v981_v30, 1  ;;  %v1094_v45 = vrot.slane %v982_v31, 1  ;;  %v1096_v46 = vrot.slane %v983_v34, 1 }
  0x2f   : > { %v933_v48 = vadd.f32 %v901_v17, %v861_v39  ;;  %v1341_v49 = vrot.slane %v1229_v35, 2  ;;  %v1342_v50 = vrot.slane %v1230_v40, 2  ;;  %v1344_v53 = vrot.slane %v1231_v41, 2 }
  0x30   : > { %v934_v55 = vadd.f32 %v902_v19, %v862_v43  ;;  %v1095_v60 = vsel %vm483_vm1, %v1093_v44, %v1094_v45  ;;  %v1097_v61 = vsel %vm483_vm1, %v1094_v45, %v1096_v46  ;;  %v1469_v62 = vmul.f32 %v3144_v51, %v3236_v47 }
  0x31   : > { %v1181_v63 = vadd.f32 %v1095_v60, %v933_v48  ;;  %v1343_v0 = vsel %vm732_vm2, %v1341_v49, %v1342_v50  ;;  %v1345_v1 = vsel %vm732_vm2, %v1342_v50, %v1344_v53  ;;  %v1470_v5 = vmul.f32 %v3144_v51, %v3239_v54 }
  0x32   : > { %v1182_v7 = vadd.f32 %v1097_v61, %v934_v55  ;;  %v1549_v10 = vmul.f32 %v3149_v52, %v3236_v47  ;;  %v1550_v11 = vmul.f32 %v3149_v52, %v3239_v54  ;;  %v1551_v12 = vmul.f32 %v3149_v52, %v3186_v42 }
  0x33   : > { %v1429_v14 = vadd.f32 %v1343_v0, %v1181_v63  ;;  %v1797_v16 = vmul.f32 %v3154_v57, %v3236_v47  ;;  %v1798_v17 = vmul.f32 %v3154_v57, %v3239_v54  ;;  %v1799_v19 = vmul.f32 %v3154_v57, %v3186_v42 }
  0x34   : > { %v1430_v21 = vadd.f32 %v1345_v1, %v1182_v7  ;;  %v1661_v23 = vrot.slane %v1549_v10, 1  ;;  %v1662_v26 = vrot.slane %v1550_v11, 1  ;;  %v1664_v28 = vrot.slane %v1551_v12, 1 }
  0x35   : > { %v1501_v30 = vadd.f32 %v1469_v62, %v1429_v14  ;;  %v1909_v31 = vrot.slane %v1797_v16, 2  ;;  %v1910_v34 = vrot.slane %v1798_v17, 2  ;;  %v1912_v35 = vrot.slane %v1799_v19, 2 }
  0x36   : > { %v1502_v37 = vadd.f32 %v1470_v5, %v1430_v21  ;;  %v1663_v39 = vsel %vm483_vm1, %v1661_v23, %v1662_v26  ;;  %v1665_v40 = vsel %vm483_vm1, %v1662_v26, %v1664_v28  ;;  %v317_v41 = vmul.f32 %v3057_v2, %v3106_v27 }
  0x37   : > { %v1749_v43 = vadd.f32 %v1663_v39, %v1501_v30  ;;  %v1911_v44 = vsel %vm732_vm2, %v1909_v31, %v1910_v34  ;;  %v1913_v45 = vsel %vm732_vm2, %v1910_v34, %v1912_v35  ;;  %v318_v46 = vmul.f32 %v3057_v2, %v3116_v33  ;;  %v3301_v30 = vld [vmem:[%s3067_s6 + $0x48] sm:$0xff] }
  0x38   : > { %v1750_v48 = vadd.f32 %v1665_v40, %v1502_v37  ;;  %v390_v49 = vmul.f32 %v3062_v3, %v3106_v27  ;;  %v391_v50 = vmul.f32 %v3062_v3, %v3116_v33  ;;  %v639_v53 = vmul.f32 %v3072_v4, %v3106_v27 }
  0x39   : > { %v1997_v55 = vadd.f32 %v1911_v44, %v1749_v43  ;;  %v640_v60 = vmul.f32 %v3072_v4, %v3116_v33  ;;  %v887_v61 = vmul.f32 %v3099_v22, %v3157_v58  ;;  %v888_v62 = vmul.f32 %v3099_v22, %v3160_v59  ;;  %v3313_v43 = vld [vmem:[%s3067_s6 + $0x58] sm:$0x3] }
  0x3a   : > { %v1998_v63 = vadd.f32 %v1913_v45, %v1750_v48  ;;  %v489_v0 = vrot.slane %v390_v49, 1  ;;  %v490_v1 = vrot.slane %v391_v50, 1  ;;  %v738_v5 = vrot.slane %v639_v53, 2 }
  0x3b   : > { %v739_v7 = vrot.slane %v640_v60, 2  ;;  %v960_v10 = vmul.f32 %v3113_v32, %v3157_v58  ;;  %v961_v27 = vmul.f32 %v3113_v32, %v3160_v59  ;;  %v962_v33 = vmul.f32 %v3113_v32, %v3083_v13 }
  0x3c   : > { %v2021_v11 = vpack.c.bf16 %v1998_v63, %v1997_v55  ;;  %v491_v12 = vsel %vm483_vm1, %v489_v0, %v490_v1  ;;  %v493_v14 = vsel %vm483_vm1, %v490_v1, %v492_v24  ;;  %v1208_v16 = vmul.f32 %v3125_v38, %v3157_v58 }
  0x3d   : > { %v598_v17 = vadd.f32 %v491_v12, %v317_v41  ;;  %v599_v19 = vadd.f32 %v493_v14, %v318_v46  ;;  %v740_v21 = vsel %vm732_vm2, %v738_v5, %v739_v7  ;;  %v742_v23 = vsel %vm732_vm2, %v739_v7, %v741_v36 }
  0x3e   : > { %2907 = vmatprep.mubr.msk.bf16.mxu1 %vm2030_vm3, %v2021_v11  ;;  %v1058_v26 = vrot.slane %v960_v10, 1  ;;  %v1059_v28 = vrot.slane %v961_v27, 1  ;;  %v1061_v15 = vrot.slane %v962_v33, 1  ;;  %v1209_v24 = vmul.f32 %v3125_v38, %v3160_v59 }
  0x3f   : > { %v847_v31 = vadd.f32 %v740_v21, %v598_v17  ;;  %v848_v34 = vadd.f32 %v742_v23, %v599_v19  ;;  %v1210_v35 = vmul.f32 %v3125_v38, %v3083_v13  ;;  %v1306_v37 = vrot.slane %v1208_v16, 2 }
  0x40   : > { %v1060_v36 = vsel %vm483_vm1, %v1058_v26, %v1059_v28  ;;  %v1062_v39 = vsel %vm483_vm1, %v1059_v28, %v1061_v15  ;;  %v1307_v40 = vrot.slane %v1209_v24, 2  ;;  %v1455_v41 = vmul.f32 %v3144_v51, %v3301_v30 }
  0x41   : > { %v919_v44 = vadd.f32 %v887_v61, %v847_v31  ;;  %v920_v45 = vadd.f32 %v888_v62, %v848_v34  ;;  %v1309_v46 = vrot.slane %v1210_v35, 2  ;;  %v1456_v48 = vmul.f32 %v3144_v51, %v3306_v25 }
  0x42   : > { %v1308_v49 = vsel %vm732_vm2, %v1306_v37, %v1307_v40  ;;  %v1528_v50 = vmul.f32 %v3149_v52, %v3301_v30  ;;  %v1529_v53 = vmul.f32 %v3149_v52, %v3306_v25  ;;  %v1530_v55 = vmul.f32 %v3149_v52, %v3313_v43 }
  0x43   : > { %v1167_v60 = vadd.f32 %v1060_v36, %v919_v44  ;;  %v1168_v63 = vadd.f32 %v1062_v39, %v920_v45  ;;  %v1310_v61 = vsel %vm732_vm2, %v1307_v40, %v1309_v46  ;;  %v1776_v62 = vmul.f32 %v3154_v57, %v3301_v30 }
  0x44   : > { %v1626_v0 = vrot.slane %v1528_v50, 1  ;;  %v1627_v1 = vrot.slane %v1529_v53, 1  ;;  %v1629_v5 = vrot.slane %v1530_v55, 1  ;;  %v1777_v7 = vmul.f32 %v3154_v57, %v3306_v25 }
  0x45   : > { %v1415_v10 = vadd.f32 %v1308_v49, %v1167_v60  ;;  %v1416_v27 = vadd.f32 %v1310_v61, %v1168_v63  ;;  %v1778_v33 = vmul.f32 %v3154_v57, %v3313_v43  ;;  %v1874_v11 = vrot.slane %v1776_v62, 2 }
  0x46   : > { %v1628_v12 = vsel %vm483_vm1, %v1626_v0, %v1627_v1  ;;  %v1630_v14 = vsel %vm483_vm1, %v1627_v1, %v1629_v5  ;;  %v1875_v16 = vrot.slane %v1777_v7, 2  ;;  %v333_v17 = vmul.f32 %v3057_v2, %v3205_v8 }
  0x47   : > { %v1487_v19 = vadd.f32 %v1455_v41, %v1415_v10  ;;  %v1488_v21 = vadd.f32 %v1456_v48, %v1416_v27  ;;  %v1877_v23 = vrot.slane %v1778_v33, 2  ;;  %v334_v26 = vmul.f32 %v3057_v2, %v3208_v9 }
  0x48   : > { %v1876_v28 = vsel %vm732_vm2, %v1874_v11, %v1875_v16  ;;  %v414_v15 = vmul.f32 %v3062_v3, %v3205_v8  ;;  %v415_v24 = vmul.f32 %v3062_v3, %v3208_v9  ;;  %v416_v31 = vmul.f32 %v3062_v3, %v3219_v20 }
  0x49   : > { %v1735_v34 = vadd.f32 %v1628_v12, %v1487_v19  ;;  %v1736_v35 = vadd.f32 %v1630_v14, %v1488_v21  ;;  %v1878_v37 = vsel %vm732_vm2, %v1875_v16, %v1877_v23  ;;  %v663_v36 = vmul.f32 %v3072_v4, %v3205_v8  ;;  %v3371_v16 = vld [vmem:[%s3067_s6 + $0x108] sm:$0xff] }
  0x4a   : > { %v529_v39 = vrot.slane %v414_v15, 1  ;;  %v530_v40 = vrot.slane %v415_v24, 1  ;;  %v532_v41 = vrot.slane %v416_v31, 1  ;;  %v664_v44 = vmul.f32 %v3072_v4, %v3208_v9 }
  0x4b   : > { %v1983_v45 = vadd.f32 %v1876_v28, %v1735_v34  ;;  %v1984_v46 = vadd.f32 %v1878_v37, %v1736_v35  ;;  %v665_v48 = vmul.f32 %v3072_v4, %v3219_v20  ;;  %v778_v49 = vrot.slane %v663_v36, 2 }
  0x4c   : > { %v531_v50 = vsel %vm483_vm1, %v529_v39, %v530_v40  ;;  %v533_v53 = vsel %vm483_vm1, %v530_v40, %v532_v41  ;;  %v779_v55 = vrot.slane %v664_v44, 2  ;;  %v903_v8 = vmul.f32 %v3099_v22, %v3236_v47  ;;  %v3385_v39 = vld [vmem:[%s3067_s6 + $0x118] sm:$0x3] }
  0x4d   : > { %v2014_v60 = vpack.c.bf16 %v1984_v46, %v1983_v45  ;;  %v614_v63 = vadd.f32 %v531_v50, %v333_v17  ;;  %v615_v61 = vadd.f32 %v533_v53, %v334_v26  ;;  %v781_v62 = vrot.slane %v665_v48, 2  ;;  %v3376_v26 = vld [vmem:[%s3067_s6 + $0x110] sm:$0xff] }
  0x4e   : > { %v780_v9 = vsel %vm732_vm2, %v778_v49, %v779_v55  ;;  %v904_v0 = vmul.f32 %v3099_v22, %v3239_v54  ;;  %v984_v20 = vmul.f32 %v3113_v32, %v3236_v47  ;;  %v985_v1 = vmul.f32 %v3113_v32, %v3239_v54 }
  0x4f   : > { %2892 = vmatmul.mubr.msk.bf16.vlgmr.msra.gmra.mrb[0].mxu0 %vm2030_vm3, %v2014_v60  ;;  %v782_v5 = vsel %vm732_vm2, %v779_v55, %v781_v62  ;;  %v863_v7 = vadd.f32 %v780_v9, %v614_v63  ;;  %v986_v10 = vmul.f32 %v3113_v32, %v3186_v42  ;;  %v1232_v27 = vmul.f32 %v3125_v38, %v3236_v47 }
  0x50   : > { %v864_v33 = vadd.f32 %v782_v5, %v615_v61  ;;  %v1098_v11 = vrot.slane %v984_v20, 1  ;;  %v1099_v12 = vrot.slane %v985_v1, 1  ;;  %v1233_v14 = vmul.f32 %v3125_v38, %v3239_v54 }
  0x51   : > { %v935_v17 = vadd.f32 %v903_v8, %v863_v7  ;;  %v1101_v19 = vrot.slane %v986_v10, 1  ;;  %v1234_v21 = vmul.f32 %v3125_v38, %v3186_v42  ;;  %v1346_v23 = vrot.slane %v1232_v27, 2 }
  0x52   : > { %v936_v28 = vadd.f32 %v904_v0, %v864_v33  ;;  %v1100_v15 = vsel %vm483_vm1, %v1098_v11, %v1099_v12  ;;  %v1347_v24 = vrot.slane %v1233_v14, 2  ;;  %v1471_v31 = vmul.f32 %v3144_v51, %v3371_v16 }
  0x53   : > { %v1102_v34 = vsel %vm483_vm1, %v1099_v12, %v1101_v19  ;;  %v1183_v35 = vadd.f32 %v1100_v15, %v935_v17  ;;  %v1349_v37 = vrot.slane %v1234_v21, 2  ;;  %v1472_v36 = vmul.f32 %v3144_v51, %v3376_v26 }
  0x54   : > { %v1184_v40 = vadd.f32 %v1102_v34, %v936_v28  ;;  %v1348_v41 = vsel %vm732_vm2, %v1346_v23, %v1347_v24  ;;  %v1552_v44 = vmul.f32 %v3149_v52, %v3371_v16  ;;  %v1553_v45 = vmul.f32 %v3149_v52, %v3376_v26 }
  0x55   : > { %v1350_v46 = vsel %vm732_vm2, %v1347_v24, %v1349_v37  ;;  %v1431_v48 = vadd.f32 %v1348_v41, %v1183_v35  ;;  %v1554_v49 = vmul.f32 %v3149_v52, %v3385_v39  ;;  %v1800_v50 = vmul.f32 %v3154_v57, %v3371_v16 }
  0x56   : > { %v1432_v53 = vadd.f32 %v1350_v46, %v1184_v40  ;;  %v1666_v55 = vrot.slane %v1552_v44, 1  ;;  %v1667_v8 = vrot.slane %v1553_v45, 1  ;;  %v1801_v60 = vmul.f32 %v3154_v57, %v3376_v26 }
  0x57   : > { %v1503_v63 = vadd.f32 %v1471_v31, %v1431_v48  ;;  %v1669_v61 = vrot.slane %v1554_v49, 1  ;;  %v1802_v62 = vmul.f32 %v3154_v57, %v3385_v39  ;;  %v1914_v9 = vrot.slane %v1800_v50, 2 }
  0x58   : > { %v1504_v0 = vadd.f32 %v1472_v36, %v1432_v53  ;;  %v1668_v20 = vsel %vm483_vm1, %v1666_v55, %v1667_v8  ;;  %v1915_v1 = vrot.slane %v1801_v60, 2  ;;  %v319_v5 = vmul.f32 %v3057_v2, %v3157_v58 }
  0x59   : > { %v1670_v7 = vsel %vm483_vm1, %v1667_v8, %v1669_v61  ;;  %v1751_v10 = vadd.f32 %v1668_v20, %v1503_v63  ;;  %v1917_v27 = vrot.slane %v1802_v62, 2  ;;  %v320_v33 = vmul.f32 %v3057_v2, %v3160_v59  ;;  %v3441_v63 = vld [vmem:[%s3067_s6 + $0x60] sm:$0xff]  ;;  %v3446_v20 = vld [vmem:[%s3067_s6 + $0x68] sm:$0xff] }
  0x5a   : > { %v1752_v11 = vadd.f32 %v1670_v7, %v1504_v0  ;;  %v1916_v12 = vsel %vm732_vm2, %v1914_v9, %v1915_v1  ;;  %v393_v14 = vmul.f32 %v3062_v3, %v3157_v58  ;;  %v394_v17 = vmul.f32 %v3062_v3, %v3160_v59 }
  0x5b   : > { %v1918_v19 = vsel %vm732_vm2, %v1915_v1, %v1917_v27  ;;  %v1999_v21 = vadd.f32 %v1916_v12, %v1751_v10  ;;  %v642_v23 = vmul.f32 %v3072_v4, %v3157_v58  ;;  %v643_v28 = vmul.f32 %v3072_v4, %v3160_v59 }
  0x5c   : > { %v2000_v15 = vadd.f32 %v1918_v19, %v1752_v11  ;;  %v494_v24 = vrot.slane %v393_v14, 1  ;;  %v495_v31 = vrot.slane %v394_v17, 1  ;;  %v644_v34 = vmul.f32 %v3072_v4, %v3083_v13  ;;  %v3455_v14 = vld [vmem:[%s3067_s6 + $0x70] sm:$0x3] }
  0x5d   : > { %v743_v35 = vrot.slane %v642_v23, 2  ;;  %v744_v37 = vrot.slane %v643_v28, 2  ;;  %v889_v36 = vmul.f32 %v3099_v22, %v3301_v30  ;;  %v890_v40 = vmul.f32 %v3099_v22, %v3306_v25 }
  0x5e   : > { %v2022_v41 = vpack.c.bf16 %v2000_v15, %v1999_v21  ;;  %v496_v58 = vsel %vm483_vm1, %v494_v24, %v495_v31  ;;  %v498_v59 = vsel %vm483_vm1, %v495_v31, %v497_v29  ;;  %v746_v44 = vrot.slane %v644_v34, 2 }
  0x5f   : > { %v600_v45 = vadd.f32 %v496_v58, %v319_v5  ;;  %v601_v46 = vadd.f32 %v498_v59, %v320_v33  ;;  %v745_v13 = vsel %vm732_vm2, %v743_v35, %v744_v37  ;;  %v963_v48 = vmul.f32 %v3113_v32, %v3301_v30 }
  0x60   : > { %2908 = vmatmul.mubr.msk.bf16.vlgmr.msra.gmra.mrb[0].mxu1 %vm2030_vm3, %v2022_v41  ;;  %v747_v49 = vsel %vm732_vm2, %v744_v37, %v746_v44  ;;  %v964_v50 = vmul.f32 %v3113_v32, %v3306_v25  ;;  %v965_v18 = vmul.f32 %v3113_v32, %v3313_v43  ;;  %v1211_v29 = vmul.f32 %v3125_v38, %v3301_v30 }
  0x61   : > { %v849_v53 = vadd.f32 %v745_v13, %v600_v45  ;;  %v850_v55 = vadd.f32 %v747_v49, %v601_v46  ;;  %v1063_v8 = vrot.slane %v963_v48, 1  ;;  %v1212_v60 = vmul.f32 %v3125_v38, %v3306_v25 }
  0x62   : > { %v1064_v61 = vrot.slane %v964_v50, 1  ;;  %v1066_v62 = vrot.slane %v965_v18, 1  ;;  %v1213_v9 = vmul.f32 %v3125_v38, %v3313_v43  ;;  %v1311_v0 = vrot.slane %v1211_v29, 2 }
  0x63   : > { %v921_v1 = vadd.f32 %v889_v36, %v849_v53  ;;  %v922_v5 = vadd.f32 %v890_v40, %v850_v55  ;;  %v1312_v7 = vrot.slane %v1212_v60, 2  ;;  %v1457_v10 = vmul.f32 %v3144_v51, %v3441_v63 }
  0x64   : > { %v1065_v27 = vsel %vm483_vm1, %v1063_v8, %v1064_v61  ;;  %v1067_v33 = vsel %vm483_vm1, %v1064_v61, %v1066_v62  ;;  %v1314_v11 = vrot.slane %v1213_v9, 2  ;;  %v1458_v12 = vmul.f32 %v3144_v51, %v3446_v20 }
  0x65   : > { %v1169_v17 = vadd.f32 %v1065_v27, %v921_v1  ;;  %v1170_v19 = vadd.f32 %v1067_v33, %v922_v5  ;;  %v1313_v21 = vsel %vm732_vm2, %v1311_v0, %v1312_v7  ;;  %v1531_v23 = vmul.f32 %v3149_v52, %v3441_v63 }
  0x66   : > { %v1315_v28 = vsel %vm732_vm2, %v1312_v7, %v1314_v11  ;;  %v1532_v15 = vmul.f32 %v3149_v52, %v3446_v20  ;;  %v1533_v24 = vmul.f32 %v3149_v52, %v3455_v14  ;;  %v1779_v31 = vmul.f32 %v3154_v57, %v3441_v63 }
  0x67   : > { %v1417_v34 = vadd.f32 %v1313_v21, %v1169_v17  ;;  %v1418_v35 = vadd.f32 %v1315_v28, %v1170_v19  ;;  %v1631_v37 = vrot.slane %v1531_v23, 1  ;;  %v1780_v36 = vmul.f32 %v3154_v57, %v3446_v20 }
  0x68   : > { %v1632_v40 = vrot.slane %v1532_v15, 1  ;;  %v1634_v41 = vrot.slane %v1533_v24, 1  ;;  %v1781_v58 = vmul.f32 %v3154_v57, %v3455_v14  ;;  %v1879_v59 = vrot.slane %v1779_v31, 2 }
  0x69   : > { %v1489_v44 = vadd.f32 %v1457_v10, %v1417_v34  ;;  %v1490_v45 = vadd.f32 %v1458_v12, %v1418_v35  ;;  %v1880_v46 = vrot.slane %v1780_v36, 2  ;;  %v335_v13 = vmul.f32 %v3057_v2, %v3236_v47 }
  0x6a   : > { %v1633_v48 = vsel %vm483_vm1, %v1631_v37, %v1632_v40  ;;  %v1635_v49 = vsel %vm483_vm1, %v1632_v40, %v1634_v41  ;;  %v1882_v50 = vrot.slane %v1781_v58, 2  ;;  %v336_v18 = vmul.f32 %v3057_v2, %v3239_v54  ;;  %v3511_v37 = vld [vmem:[%s3067_s6 + $0x120] sm:$0xff] }
  0x6b   : > { %v1737_v29 = vadd.f32 %v1633_v48, %v1489_v44  ;;  %v1738_v53 = vadd.f32 %v1635_v49, %v1490_v45  ;;  %v1881_v55 = vsel %vm732_vm2, %v1879_v59, %v1880_v46  ;;  %v417_v8 = vmul.f32 %v3062_v3, %v3236_v47 }
  0x6c   : > { %v1883_v60 = vsel %vm732_vm2, %v1880_v46, %v1882_v50  ;;  %v418_v61 = vmul.f32 %v3062_v3, %v3239_v54  ;;  %v666_v62 = vmul.f32 %v3072_v4, %v3236_v47  ;;  %v667_v9 = vmul.f32 %v3072_v4, %v3239_v54 }
  0x6d   : > { %v1985_v0 = vadd.f32 %v1881_v55, %v1737_v29  ;;  %v1986_v1 = vadd.f32 %v1883_v60, %v1738_v53  ;;  %v534_v5 = vrot.slane %v417_v8, 1  ;;  %v668_v7 = vmul.f32 %v3072_v4, %v3186_v42  ;;  %v3523_v29 = vld [vmem:[%s3067_s6 + $0x130] sm:$0x3] }
  0x6e   : > { %v535_v10 = vrot.slane %v418_v61, 1  ;;  %v783_v27 = vrot.slane %v666_v62, 2  ;;  %v784_v33 = vrot.slane %v667_v9, 2  ;;  %v905_v11 = vmul.f32 %v3099_v22, %v3371_v16 }
  0x6f   : > { %v2015_v12 = vpack.c.bf16 %v1986_v1, %v1985_v0  ;;  %v786_v17 = vrot.slane %v668_v7, 2  ;;  %v906_v47 = vmul.f32 %v3099_v22, %v3376_v26  ;;  %v987_v54 = vmul.f32 %v3113_v32, %v3371_v16 }
  0x70   : > { %v536_v19 = vsel %vm483_vm1, %v534_v5, %v535_v10  ;;  %v538_v42 = vsel %vm483_vm1, %v535_v10, %v537_v6  ;;  %v785_v21 = vsel %vm732_vm2, %v783_v27, %v784_v33  ;;  %v988_v23 = vmul.f32 %v3113_v32, %v3376_v26 }
  0x71   : > { %2895 = vmatprep.mubr.msk.bf16.mxu0 %vm2030_vm3, %v2015_v12  ;;  %v616_v28 = vadd.f32 %v536_v19, %v335_v13  ;;  %v617_v15 = vadd.f32 %v538_v42, %v336_v18  ;;  %v787_v24 = vsel %vm732_vm2, %v784_v33, %v786_v17  ;;  %v989_v31 = vmul.f32 %v3113_v32, %v3385_v39  ;;  %v3519_v13 = vld [vmem:[%s3067_s6 + $0x128] sm:$0xff] }
  0x72   : > { %v1103_v34 = vrot.slane %v987_v54, 1  ;;  %v1104_v35 = vrot.slane %v988_v23, 1  ;;  %v1235_v56 = vmul.f32 %v3125_v38, %v3371_v16  ;;  %v1236_v6 = vmul.f32 %v3125_v38, %v3376_v26 }
  0x73   : > { %v865_v36 = vadd.f32 %v785_v21, %v616_v28  ;;  %v866_v40 = vadd.f32 %v787_v24, %v617_v15  ;;  %v1106_v41 = vrot.slane %v989_v31, 1  ;;  %v1237_v58 = vmul.f32 %v3125_v38, %v3385_v39 }
  0x74   : > { %v1105_v59 = vsel %vm483_vm1, %v1103_v34, %v1104_v35  ;;  %v1351_v44 = vrot.slane %v1235_v56, 2  ;;  %v1352_v45 = vrot.slane %v1236_v6, 2  ;;  %v1473_v46 = vmul.f32 %v3144_v51, %v3511_v37 }
  0x75   : > { %v937_v48 = vadd.f32 %v905_v11, %v865_v36  ;;  %v938_v49 = vadd.f32 %v906_v47, %v866_v40  ;;  %v1107_v50 = vsel %vm483_vm1, %v1104_v35, %v1106_v41  ;;  %v1354_v18 = vrot.slane %v1237_v58, 2 }
  0x76   : > { %v1353_v53 = vsel %vm732_vm2, %v1351_v44, %v1352_v45  ;;  %v1474_v55 = vmul.f32 %v3144_v51, %v3519_v13  ;;  %v1555_v8 = vmul.f32 %v3149_v52, %v3511_v37  ;;  %v1556_v60 = vmul.f32 %v3149_v52, %v3519_v13 }
  0x77   : > { %v1185_v61 = vadd.f32 %v1105_v59, %v937_v48  ;;  %v1186_v62 = vadd.f32 %v1107_v50, %v938_v49  ;;  %v1355_v9 = vsel %vm732_vm2, %v1352_v45, %v1354_v18  ;;  %v1557_v0 = vmul.f32 %v3149_v52, %v3523_v29 }
  0x78   : > { %v1671_v1 = vrot.slane %v1555_v8, 1  ;;  %v1672_v5 = vrot.slane %v1556_v60, 1  ;;  %v1803_v7 = vmul.f32 %v3154_v57, %v3511_v37  ;;  %v1804_v10 = vmul.f32 %v3154_v57, %v3519_v13 }
  0x79   : > { %v1433_v27 = vadd.f32 %v1353_v53, %v1185_v61  ;;  %v1434_v33 = vadd.f32 %v1355_v9, %v1186_v62  ;;  %v1674_v11 = vrot.slane %v1557_v0, 1  ;;  %v1805_v12 = vmul.f32 %v3154_v57, %v3523_v29 }
  0x7a   : > { %v1673_v17 = vsel %vm483_vm1, %v1671_v1, %v1672_v5  ;;  %v1919_v47 = vrot.slane %v1803_v7, 2  ;;  %v1920_v54 = vrot.slane %v1804_v10, 2  ;;  %v321_v19 = vmul.f32 %v3057_v2, %v3301_v30  ;;  %v3581_v7 = vld [vmem:[%s3067_s6 + $0x78] sm:$0xff] }
  0x7b   : > { %v1505_v42 = vadd.f32 %v1473_v46, %v1433_v27  ;;  %v1506_v21 = vadd.f32 %v1474_v55, %v1434_v33  ;;  %v1675_v23 = vsel %vm483_vm1, %v1672_v5, %v1674_v11  ;;  %v1922_v28 = vrot.slane %v1805_v12, 2  ;;  %v3586_v12 = vld [vmem:[%s3067_s6 + $0x80] sm:$0xff] }
  0x7c   : > { %v1921_v15 = vsel %vm732_vm2, %v1919_v47, %v1920_v54  ;;  %v322_v24 = vmul.f32 %v3057_v2, %v3306_v25  ;;  %v396_v31 = vmul.f32 %v3062_v3, %v3301_v30  ;;  %v397_v34 = vmul.f32 %v3062_v3, %v3306_v25 }
  0x7d   : > { %v1753_v35 = vadd.f32 %v1673_v17, %v1505_v42  ;;  %v1754_v56 = vadd.f32 %v1675_v23, %v1506_v21  ;;  %v1923_v6 = vsel %vm732_vm2, %v1920_v54, %v1922_v28  ;;  %v398_v36 = vmul.f32 %v3062_v3, %v3313_v43  ;;  %v3595_v28 = vld [vmem:[%s3067_s6 + $0x88] sm:$0x3] }
  0x7e   : > { %v499_v40 = vrot.slane %v396_v31, 1  ;;  %v500_v41 = vrot.slane %v397_v34, 1  ;;  %v645_v58 = vmul.f32 %v3072_v4, %v3301_v30  ;;  %v646_v2 = vmul.f32 %v3072_v4, %v3306_v25 }
  0x7f   : > { %v2001_v59 = vadd.f32 %v1921_v15, %v1753_v35  ;;  %v2002_v44 = vadd.f32 %v1923_v6, %v1754_v56  ;;  %v502_v45 = vrot.slane %v398_v36, 1  ;;  %v647_v46 = vmul.f32 %v3072_v4, %v3313_v43 }
  0x80   : > { %v501_v48 = vsel %vm483_vm1, %v499_v40, %v500_v41  ;;  %v748_v49 = vrot.slane %v645_v58, 2  ;;  %v749_v50 = vrot.slane %v646_v2, 2  ;;  %v891_v3 = vmul.f32 %v3099_v22, %v3441_v63 }
  0x81   : > { %v2023_v18 = vpack.c.bf16 %v2002_v44, %v2001_v59  ;;  %v503_v53 = vsel %vm483_vm1, %v500_v41, %v502_v45  ;;  %v602_v30 = vadd.f32 %v501_v48, %v321_v19  ;;  %v751_v55 = vrot.slane %v647_v46, 2 }
  0x82   : > { %v603_v25 = vadd.f32 %v503_v53, %v322_v24  ;;  %v750_v8 = vsel %vm732_vm2, %v748_v49, %v749_v50  ;;  %v892_v60 = vmul.f32 %v3099_v22, %v3446_v20  ;;  %v966_v4 = vmul.f32 %v3113_v32, %v3441_v63 }
  0x83   : > { %2911 = vmatprep.mubr.msk.bf16.mxu1 %vm2030_vm3, %v2023_v18  ;;  %v752_v43 = vsel %vm732_vm2, %v749_v50, %v751_v55  ;;  %v851_v61 = vadd.f32 %v750_v8, %v602_v30  ;;  %v967_v62 = vmul.f32 %v3113_v32, %v3446_v20  ;;  %v968_v9 = vmul.f32 %v3113_v32, %v3455_v14 }
  0x84   : > { %v852_v0 = vadd.f32 %v752_v43, %v603_v25  ;;  %v1068_v1 = vrot.slane %v966_v4, 1  ;;  %v1214_v22 = vmul.f32 %v3125_v38, %v3441_v63  ;;  %v1215_v5 = vmul.f32 %v3125_v38, %v3446_v20  ;;  %v3626_v25 = vld [vmem:[%s4414_s1 + $0x1] ss:$0 sm:$0xff] }
  0x85   : > { %v923_v10 = vadd.f32 %v891_v3, %v851_v61  ;;  %v1069_v27 = vrot.slane %v967_v62, 1  ;;  %v1071_v33 = vrot.slane %v968_v9, 1  ;;  %v1216_v11 = vmul.f32 %v3125_v38, %v3455_v14  ;;  %v3638_v61 = vld [vmem:[%s4414_s1 + $0x2] ss:$0 sm:$0xff] }
  0x86   : > { %v924_v32 = vadd.f32 %v892_v60, %v852_v0  ;;  %v1316_v17 = vrot.slane %v1214_v22, 2  ;;  %v1317_v47 = vrot.slane %v1215_v5, 2  ;;  %v1459_v54 = vmul.f32 %v3144_v51, %v3581_v7 }
  0x87   : > { %v1070_v19 = vsel %vm483_vm1, %v1068_v1, %v1069_v27  ;;  %v1072_v42 = vsel %vm483_vm1, %v1069_v27, %v1071_v33  ;;  %v1319_v21 = vrot.slane %v1216_v11, 2  ;;  %v1460_v23 = vmul.f32 %v3144_v51, %v3586_v12 }
  0x88   : > { %v1171_v15 = vadd.f32 %v1070_v19, %v923_v10  ;;  %v1172_v38 = vadd.f32 %v1072_v42, %v924_v32  ;;  %v1318_v24 = vsel %vm732_vm2, %v1316_v17, %v1317_v47  ;;  %v1534_v31 = vmul.f32 %v3149_v52, %v3581_v7  ;;  %v3649_v17 = vld [vmem:[%s4414_s1 + $0x3] ss:$0 sm:$0xff]  ;;  %v3660_v19 = vld [vmem:[%s4414_s1 + $0x4] ss:$0 sm:$0xff] }
  0x89   : > { %v1320_v34 = vsel %vm732_vm2, %v1317_v47, %v1319_v21  ;;  %v1535_v35 = vmul.f32 %v3149_v52, %v3586_v12  ;;  %v1536_v56 = vmul.f32 %v3149_v52, %v3595_v28  ;;  %v1782_v51 = vmul.f32 %v3154_v57, %v3581_v7  ;;  %v3614_v52 = vld [vmem:[%s4414_s1] ss:$0 sm:$0xff] }
  0x8a   : > { %v1419_v6 = vadd.f32 %v1318_v24, %v1171_v15  ;;  %v1420_v36 = vadd.f32 %v1320_v34, %v1172_v38  ;;  %v1636_v40 = vrot.slane %v1534_v31, 1  ;;  %v1783_v41 = vmul.f32 %v3154_v57, %v3586_v12 }
  0x8b   : > { %v1637_v58 = vrot.slane %v1535_v35, 1  ;;  %v1639_v2 = vrot.slane %v1536_v56, 1  ;;  %v1784_v59 = vmul.f32 %v3154_v57, %v3595_v28  ;;  %v1884_v44 = vrot.slane %v1782_v51, 2  ;;  %v3674_v35 = vld [vmem:[%s4414_s1 + $0x5] ss:$0 sm:$0xff]  ;;  %v3679_v51 = vld [vmem:[%s3067_s6 + $0x138] sm:$0xff] }
  0x8c   : > { %v1491_v45 = vadd.f32 %v1459_v54, %v1419_v6  ;;  %v1492_v46 = vadd.f32 %v1460_v23, %v1420_v36  ;;  %v1885_v48 = vrot.slane %v1783_v41, 2  ;;  %v337_v49 = vmul.f32 %v3614_v52, %v3371_v16 }
  0x8d   : > { %v1638_v50 = vsel %vm483_vm1, %v1636_v40, %v1637_v58  ;;  %v1640_v3 = vsel %vm483_vm1, %v1637_v58, %v1639_v2  ;;  %v1887_v18 = vrot.slane %v1784_v59, 2  ;;  %v338_v57 = vmul.f32 %v3614_v52, %v3376_v26 }
  0x8e   : > { %v1739_v53 = vadd.f32 %v1638_v50, %v1491_v45  ;;  %v1740_v30 = vadd.f32 %v1640_v3, %v1492_v46  ;;  %v1886_v55 = vsel %vm732_vm2, %v1884_v44, %v1885_v48  ;;  %v420_v8 = vmul.f32 %v3626_v25, %v3371_v16  ;;  %v3688_v44 = vld [vmem:[%s4414_s1 + $0x6] ss:$0 sm:$0xff] }
  0x8f   : > { %v1888_v60 = vsel %vm732_vm2, %v1885_v48, %v1887_v18  ;;  %v421_v4 = vmul.f32 %v3626_v25, %v3376_v26  ;;  %v422_v43 = vmul.f32 %v3626_v25, %v3385_v39  ;;  %v669_v62 = vmul.f32 %v3638_v61, %v3371_v16  ;;  %v3693_v46 = vld [vmem:[%s3067_s6 + $0x140] sm:$0xff] }
  0x90   : > { %v1987_v9 = vadd.f32 %v1886_v55, %v1739_v53  ;;  %v1988_v0 = vadd.f32 %v1888_v60, %v1740_v30  ;;  %v539_v1 = vrot.slane %v420_v8, 1  ;;  %v670_v22 = vmul.f32 %v3638_v61, %v3376_v26  ;;  %v3702_v30 = vld [vmem:[%s4414_s1 + $0x7] ss:$0 sm:$0xff]  ;;  %v3707_v8 = vld [vmem:[%s3067_s6 + $0x148] sm:$0x3] }
  0x91   : > { %v540_v5 = vrot.slane %v421_v4, 1  ;;  %v542_v10 = vrot.slane %v422_v43, 1  ;;  %v671_v27 = vmul.f32 %v3638_v61, %v3385_v39  ;;  %v788_v33 = vrot.slane %v669_v62, 2 }
  0x92   : > { %v2016_v11 = vpack.c.bf16 %v1988_v0, %v1987_v9  ;;  %v789_v32 = vrot.slane %v670_v22, 2  ;;  %v907_v16 = vmul.f32 %v3649_v17, %v3511_v37  ;;  %v908_v47 = vmul.f32 %v3649_v17, %v3519_v13  ;;  %v3718_v22 = vld [vmem:[%s4414_s1 + $0x8] ss:$0 sm:$0xff] }
  0x93   : > { %v541_v26 = vsel %vm483_vm1, %v539_v1, %v540_v5  ;;  %v543_v54 = vsel %vm483_vm1, %v540_v5, %v542_v10  ;;  %v791_v39 = vrot.slane %v671_v27, 2  ;;  %v990_v42 = vmul.f32 %v3660_v19, %v3511_v37 }
  0x94   : > { %2896 = vmatmul.mubr.msk.bf16.gmra.mrb[4].mxu0 %vm2030_vm3, %v2016_v11  ;;  %v618_v21 = vadd.f32 %v541_v26, %v337_v49  ;;  %v619_v23 = vadd.f32 %v543_v54, %v338_v57  ;;  %v790_v15 = vsel %vm732_vm2, %v788_v33, %v789_v32  ;;  %v991_v38 = vmul.f32 %v3660_v19, %v3519_v13 }
  0x95   : > { %v792_v24 = vsel %vm732_vm2, %v789_v32, %v791_v39  ;;  %v992_v31 = vmul.f32 %v3660_v19, %v3523_v29  ;;  %v1108_v34 = vrot.slane %v990_v42, 1  ;;  %v1238_v56 = vmul.f32 %v3674_v35, %v3511_v37 }
  0x96   : > { %v867_v6 = vadd.f32 %v790_v15, %v618_v21  ;;  %v868_v36 = vadd.f32 %v792_v24, %v619_v23  ;;  %v1109_v40 = vrot.slane %v991_v38, 1  ;;  %v1239_v41 = vmul.f32 %v3674_v35, %v3519_v13 }
  0x97   : > { %v1111_v58 = vrot.slane %v992_v31, 1  ;;  %v1240_v2 = vmul.f32 %v3674_v35, %v3523_v29  ;;  %v1356_v59 = vrot.slane %v1238_v56, 2  ;;  %v1475_v45 = vmul.f32 %v3688_v44, %v3679_v51 }
  0x98   : > { %v939_v48 = vadd.f32 %v907_v16, %v867_v6  ;;  %v940_v49 = vadd.f32 %v908_v47, %v868_v36  ;;  %v1110_v50 = vsel %vm483_vm1, %v1108_v34, %v1109_v40  ;;  %v1357_v3 = vrot.slane %v1239_v41, 2 }
  0x99   : > { %v1112_v18 = vsel %vm483_vm1, %v1109_v40, %v1111_v58  ;;  %v1359_v57 = vrot.slane %v1240_v2, 2  ;;  %v1476_v53 = vmul.f32 %v3688_v44, %v3693_v46  ;;  %v1558_v55 = vmul.f32 %v3702_v30, %v3679_v51 }
  0x9a   : > { %v1187_v60 = vadd.f32 %v1110_v50, %v939_v48  ;;  %v1188_v4 = vadd.f32 %v1112_v18, %v940_v49  ;;  %v1358_v43 = vsel %vm732_vm2, %v1356_v59, %v1357_v3  ;;  %v1559_v62 = vmul.f32 %v3702_v30, %v3693_v46 }
  0x9b   : > { %v1360_v9 = vsel %vm732_vm2, %v1357_v3, %v1359_v57  ;;  %v1560_v0 = vmul.f32 %v3702_v30, %v3707_v8  ;;  %v1676_v1 = vrot.slane %v1558_v55, 1  ;;  %v1806_v5 = vmul.f32 %v3718_v22, %v3679_v51 }
  0x9c   : > { %v1435_v10 = vadd.f32 %v1358_v43, %v1187_v60  ;;  %v1436_v27 = vadd.f32 %v1360_v9, %v1188_v4  ;;  %v1677_v33 = vrot.slane %v1559_v62, 1  ;;  %v1807_v11 = vmul.f32 %v3718_v22, %v3693_v46 }
  0x9d   : > { %v1679_v32 = vrot.slane %v1560_v0, 1  ;;  %v1808_v16 = vmul.f32 %v3718_v22, %v3707_v8  ;;  %v1924_v47 = vrot.slane %v1806_v5, 2  ;;  %v323_v26 = vmul.f32 %v3614_v52, %v3441_v63 }
  0x9e   : > { %v1507_v54 = vadd.f32 %v1475_v45, %v1435_v10  ;;  %v1508_v39 = vadd.f32 %v1476_v53, %v1436_v27  ;;  %v1678_v42 = vsel %vm483_vm1, %v1676_v1, %v1677_v33  ;;  %v1925_v21 = vrot.slane %v1807_v11, 2 }
  0x9f   : > { %v1680_v23 = vsel %vm483_vm1, %v1677_v33, %v1679_v32  ;;  %v1927_v15 = vrot.slane %v1808_v16, 2  ;;  %v324_v38 = vmul.f32 %v3614_v52, %v3446_v20  ;;  %v399_v24 = vmul.f32 %v3626_v25, %v3441_v63  ;;  %v3764_v33 = vld [vmem:[%s3067_s6 + $0x90] sm:$0xff] }
  0xa0   : > { %v1755_v31 = vadd.f32 %v1678_v42, %v1507_v54  ;;  %v1756_v34 = vadd.f32 %v1680_v23, %v1508_v39  ;;  %v1926_v56 = vsel %vm732_vm2, %v1924_v47, %v1925_v21  ;;  %v400_v6 = vmul.f32 %v3626_v25, %v3446_v20 }
  0xa1   : > { %v1928_v36 = vsel %vm732_vm2, %v1925_v21, %v1927_v15  ;;  %v401_v40 = vmul.f32 %v3626_v25, %v3455_v14  ;;  %v504_v41 = vrot.slane %v399_v24, 1  ;;  %v648_v58 = vmul.f32 %v3638_v61, %v3441_v63  ;;  %v3773_v21 = vld [vmem:[%s3067_s6 + $0x98] sm:$0xff] }
  0xa2   : > { %v2003_v2 = vadd.f32 %v1926_v56, %v1755_v31  ;;  %v2004_v59 = vadd.f32 %v1928_v36, %v1756_v34  ;;  %v505_v45 = vrot.slane %v400_v6, 1  ;;  %v649_v48 = vmul.f32 %v3638_v61, %v3446_v20  ;;  %v3778_v31 = vld [vmem:[%s3067_s6 + $0xa0] sm:$0x3] }
  0xa3   : > { %v507_v49 = vrot.slane %v401_v40, 1  ;;  %v650_v50 = vmul.f32 %v3638_v61, %v3455_v14  ;;  %v753_v3 = vrot.slane %v648_v58, 2  ;;  %v893_v18 = vmul.f32 %v3649_v17, %v3581_v7 }
  0xa4   : > { %v2024_v57 = vpack.c.bf16 %v2004_v59, %v2003_v2  ;;  %v506_v53 = vsel %vm483_vm1, %v504_v41, %v505_v45  ;;  %v754_v55 = vrot.slane %v649_v48, 2  ;;  %v894_v63 = vmul.f32 %v3649_v17, %v3586_v12 }
  0xa5   : > { %v508_v60 = vsel %vm483_vm1, %v505_v45, %v507_v49  ;;  %v604_v4 = vadd.f32 %v506_v53, %v323_v26  ;;  %v756_v20 = vrot.slane %v650_v50, 2  ;;  %v969_v43 = vmul.f32 %v3660_v19, %v3581_v7 }
  0xa6   : > { %2912 = vmatmul.mubr.msk.bf16.gmra.mrb[4].mxu1 %vm2030_vm3, %v2024_v57  ;;  %v605_v14 = vadd.f32 %v508_v60, %v324_v38  ;;  %v755_v62 = vsel %vm732_vm2, %v753_v3, %v754_v55  ;;  %v970_v9 = vmul.f32 %v3660_v19, %v3586_v12  ;;  %v971_v0 = vmul.f32 %v3660_v19, %v3595_v28 }
  0xa7   : > { %v757_v1 = vsel %vm732_vm2, %v754_v55, %v756_v20  ;;  %v853_v5 = vadd.f32 %v755_v62, %v604_v4  ;;  %v1073_v10 = vrot.slane %v969_v43, 1  ;;  %v1217_v27 = vmul.f32 %v3674_v35, %v3581_v7 }
  0xa8   : > { %v854_v11 = vadd.f32 %v757_v1, %v605_v14  ;;  %v1074_v32 = vrot.slane %v970_v9, 1  ;;  %v1076_v16 = vrot.slane %v971_v0, 1  ;;  %v1218_v47 = vmul.f32 %v3674_v35, %v3586_v12 }
  0xa9   : > { %v925_v26 = vadd.f32 %v893_v18, %v853_v5  ;;  %v1219_v54 = vmul.f32 %v3674_v35, %v3595_v28  ;;  %v1321_v39 = vrot.slane %v1217_v27, 2  ;;  %v1461_v42 = vmul.f32 %v3688_v44, %v3764_v33 }
  0xaa   : > { %v926_v23 = vadd.f32 %v894_v63, %v854_v11  ;;  %v1075_v15 = vsel %vm483_vm1, %v1073_v10, %v1074_v32  ;;  %v1077_v38 = vsel %vm483_vm1, %v1074_v32, %v1076_v16  ;;  %v1322_v24 = vrot.slane %v1218_v47, 2 }
  0xab   : > { %v1173_v34 = vadd.f32 %v1075_v15, %v925_v26  ;;  %v1324_v56 = vrot.slane %v1219_v54, 2  ;;  %v1462_v6 = vmul.f32 %v3688_v44, %v3773_v21  ;;  %v1537_v36 = vmul.f32 %v3702_v30, %v3764_v33 }
  0xac   : > { %v1174_v40 = vadd.f32 %v1077_v38, %v926_v23  ;;  %v1323_v41 = vsel %vm732_vm2, %v1321_v39, %v1322_v24  ;;  %v1538_v58 = vmul.f32 %v3702_v30, %v3773_v21  ;;  %v1539_v2 = vmul.f32 %v3702_v30, %v3778_v31 }
  0xad   : > { %v1325_v59 = vsel %vm732_vm2, %v1322_v24, %v1324_v56  ;;  %v1421_v45 = vadd.f32 %v1323_v41, %v1173_v34  ;;  %v1641_v48 = vrot.slane %v1537_v36, 1  ;;  %v1785_v49 = vmul.f32 %v3718_v22, %v3764_v33 }
  0xae   : > { %v1422_v50 = vadd.f32 %v1325_v59, %v1174_v40  ;;  %v1642_v3 = vrot.slane %v1538_v58, 1  ;;  %v1644_v18 = vrot.slane %v1539_v2, 1  ;;  %v1786_v57 = vmul.f32 %v3718_v22, %v3773_v21 }
  0xaf   : > { %v1493_v53 = vadd.f32 %v1461_v42, %v1421_v45  ;;  %v1787_v55 = vmul.f32 %v3718_v22, %v3778_v31  ;;  %v1889_v63 = vrot.slane %v1785_v49, 2  ;;  %v339_v60 = vmul.f32 %v3614_v52, %v3511_v37 }
  0xb0   : > { %v1494_v4 = vadd.f32 %v1462_v6, %v1422_v50  ;;  %v1643_v20 = vsel %vm483_vm1, %v1641_v48, %v1642_v3  ;;  %v1645_v43 = vsel %vm483_vm1, %v1642_v3, %v1644_v18  ;;  %v1890_v14 = vrot.slane %v1786_v57, 2  ;;  %v3836_v18 = vld [vmem:[%s3067_s6 + $0x150] sm:$0xff] }
  0xb1   : > { %v1741_v62 = vadd.f32 %v1643_v20, %v1493_v53  ;;  %v1892_v9 = vrot.slane %v1787_v55, 2  ;;  %v340_v0 = vmul.f32 %v3614_v52, %v3519_v13  ;;  %v423_v1 = vmul.f32 %v3626_v25, %v3511_v37 }
  0xb2   : > { %v1742_v5 = vadd.f32 %v1645_v43, %v1494_v4  ;;  %v1891_v10 = vsel %vm732_vm2, %v1889_v63, %v1890_v14  ;;  %v424_v27 = vmul.f32 %v3626_v25, %v3519_v13  ;;  %v425_v11 = vmul.f32 %v3626_v25, %v3523_v29 }
  0xb3   : > { %v1893_v32 = vsel %vm732_vm2, %v1890_v14, %v1892_v9  ;;  %v1989_v16 = vadd.f32 %v1891_v10, %v1741_v62  ;;  %v544_v47 = vrot.slane %v423_v1, 1  ;;  %v672_v26 = vmul.f32 %v3638_v61, %v3511_v37  ;;  %v3843_v14 = vld [vmem:[%s3067_s6 + $0x158] sm:$0xff] }
  0xb4   : > { %v1990_v54 = vadd.f32 %v1893_v32, %v1742_v5  ;;  %v545_v39 = vrot.slane %v424_v27, 1  ;;  %v547_v42 = vrot.slane %v425_v11, 1  ;;  %v673_v23 = vmul.f32 %v3638_v61, %v3519_v13  ;;  %v3848_v5 = vld [vmem:[%s3067_s6 + $0x160] sm:$0x3] }
  0xb5   : > { %v674_v15 = vmul.f32 %v3638_v61, %v3523_v29  ;;  %v793_v38 = vrot.slane %v672_v26, 2  ;;  %v909_v24 = vmul.f32 %v3649_v17, %v3679_v51  ;;  %v910_v34 = vmul.f32 %v3649_v17, %v3693_v46 }
  0xb6   : > { %v2017_v56 = vpack.c.bf16 %v1990_v54, %v1989_v16  ;;  %v546_v6 = vsel %vm483_vm1, %v544_v47, %v545_v39  ;;  %v548_v37 = vsel %vm483_vm1, %v545_v39, %v547_v42  ;;  %v794_v36 = vrot.slane %v673_v23, 2 }
  0xb7   : > { %v620_v40 = vadd.f32 %v546_v6, %v339_v60  ;;  %v621_v41 = vadd.f32 %v548_v37, %v340_v0  ;;  %v796_v13 = vrot.slane %v674_v15, 2  ;;  %v993_v29 = vmul.f32 %v3660_v19, %v3679_v51 }
  0xb8   : > { %2899 = vmatprep.mubr.msk.bf16.mxu0 %vm2030_vm3, %v2017_v56  ;;  %v795_v58 = vsel %vm732_vm2, %v793_v38, %v794_v36  ;;  %v994_v2 = vmul.f32 %v3660_v19, %v3693_v46  ;;  %v995_v59 = vmul.f32 %v3660_v19, %v3707_v8  ;;  %v1241_v45 = vmul.f32 %v3674_v35, %v3679_v51 }
  0xb9   : > { %v797_v48 = vsel %vm732_vm2, %v794_v36, %v796_v13  ;;  %v869_v49 = vadd.f32 %v795_v58, %v620_v40  ;;  %v1113_v50 = vrot.slane %v993_v29, 1  ;;  %v1242_v3 = vmul.f32 %v3674_v35, %v3693_v46 }
  0xba   : > { %v870_v57 = vadd.f32 %v797_v48, %v621_v41  ;;  %v1114_v53 = vrot.slane %v994_v2, 1  ;;  %v1116_v55 = vrot.slane %v995_v59, 1  ;;  %v1243_v63 = vmul.f32 %v3674_v35, %v3707_v8 }
  0xbb   : > { %v941_v60 = vadd.f32 %v909_v24, %v869_v49  ;;  %v1361_v4 = vrot.slane %v1241_v45, 2  ;;  %v1362_v20 = vrot.slane %v1242_v3, 2  ;;  %v1477_v43 = vmul.f32 %v3688_v44, %v3836_v18 }
  0xbc   : > { %v942_v62 = vadd.f32 %v910_v34, %v870_v57  ;;  %v1115_v9 = vsel %vm483_vm1, %v1113_v50, %v1114_v53  ;;  %v1117_v0 = vsel %vm483_vm1, %v1114_v53, %v1116_v55  ;;  %v1364_v1 = vrot.slane %v1243_v63, 2 }
  0xbd   : > { %v1189_v10 = vadd.f32 %v1115_v9, %v941_v60  ;;  %v1363_v27 = vsel %vm732_vm2, %v1361_v4, %v1362_v20  ;;  %v1478_v11 = vmul.f32 %v3688_v44, %v3843_v14  ;;  %v1561_v32 = vmul.f32 %v3702_v30, %v3836_v18 }
  0xbe   : > { %v1190_v16 = vadd.f32 %v1117_v0, %v942_v62  ;;  %v1365_v47 = vsel %vm732_vm2, %v1362_v20, %v1364_v1  ;;  %v1562_v26 = vmul.f32 %v3702_v30, %v3843_v14  ;;  %v1563_v54 = vmul.f32 %v3702_v30, %v3848_v5 }
  0xbf   : > { %v1437_v39 = vadd.f32 %v1363_v27, %v1189_v10  ;;  %v1681_v42 = vrot.slane %v1561_v32, 1  ;;  %v1809_v23 = vmul.f32 %v3718_v22, %v3836_v18  ;;  %v1810_v15 = vmul.f32 %v3718_v22, %v3843_v14 }
  0xc0   : > { %v1438_v38 = vadd.f32 %v1365_v47, %v1190_v16  ;;  %v1682_v24 = vrot.slane %v1562_v26, 1  ;;  %v1684_v34 = vrot.slane %v1563_v54, 1  ;;  %v1811_v56 = vmul.f32 %v3718_v22, %v3848_v5 }
  0xc1   : > { %v1509_v6 = vadd.f32 %v1477_v43, %v1437_v39  ;;  %v1929_v37 = vrot.slane %v1809_v23, 2  ;;  %v1930_v36 = vrot.slane %v1810_v15, 2  ;;  %v325_v40 = vmul.f32 %v3614_v52, %v3581_v7 }
  0xc2   : > { %v1510_v41 = vadd.f32 %v1478_v11, %v1438_v38  ;;  %v1683_v13 = vsel %vm483_vm1, %v1681_v42, %v1682_v24  ;;  %v1685_v29 = vsel %vm483_vm1, %v1682_v24, %v1684_v34  ;;  %v1932_v58 = vrot.slane %v1811_v56, 2  ;;  %v3906_v34 = vld [vmem:[%s3067_s6 + $0xa8] sm:$0xff] }
  0xc3   : > { %v1757_v2 = vadd.f32 %v1683_v13, %v1509_v6  ;;  %v1931_v59 = vsel %vm732_vm2, %v1929_v37, %v1930_v36  ;;  %v326_v45 = vmul.f32 %v3614_v52, %v3586_v12  ;;  %v402_v48 = vmul.f32 %v3626_v25, %v3581_v7 }
  0xc4   : > { %v1758_v49 = vadd.f32 %v1685_v29, %v1510_v41  ;;  %v1933_v50 = vsel %vm732_vm2, %v1930_v36, %v1932_v58  ;;  %v403_v3 = vmul.f32 %v3626_v25, %v3586_v12  ;;  %v404_v57 = vmul.f32 %v3626_v25, %v3595_v28 }
  0xc5   : > { %v2005_v53 = vadd.f32 %v1931_v59, %v1757_v2  ;;  %v509_v55 = vrot.slane %v402_v48, 1  ;;  %v651_v63 = vmul.f32 %v3638_v61, %v3581_v7  ;;  %v652_v60 = vmul.f32 %v3638_v61, %v3586_v12 }
  0xc6   : > { %v2006_v4 = vadd.f32 %v1933_v50, %v1758_v49  ;;  %v510_v20 = vrot.slane %v403_v3, 1  ;;  %v512_v43 = vrot.slane %v404_v57, 1  ;;  %v653_v62 = vmul.f32 %v3638_v61, %v3595_v28  ;;  %v3920_v49 = vld [vmem:[%s3067_s6 + $0xb8] sm:$0x3] }
  0xc7   : > { %v758_v9 = vrot.slane %v651_v63, 2  ;;  %v759_v0 = vrot.slane %v652_v60, 2  ;;  %v895_v1 = vmul.f32 %v3649_v17, %v3764_v33  ;;  %v896_v10 = vmul.f32 %v3649_v17, %v3773_v21 }
  0xc8   : > { %v2025_v27 = vpack.c.bf16 %v2006_v4, %v2005_v53  ;;  %v511_v7 = vsel %vm483_vm1, %v509_v55, %v510_v20  ;;  %v513_v12 = vsel %vm483_vm1, %v510_v20, %v512_v43  ;;  %v761_v11 = vrot.slane %v653_v62, 2 }
  0xc9   : > { %v606_v32 = vadd.f32 %v511_v7, %v325_v40  ;;  %v607_v16 = vadd.f32 %v513_v12, %v326_v45  ;;  %v760_v47 = vsel %vm732_vm2, %v758_v9, %v759_v0  ;;  %v972_v28 = vmul.f32 %v3660_v19, %v3764_v33  ;;  %v3911_v40 = vld [vmem:[%s3067_s6 + $0xb0] sm:$0xff] }
  0xca   : > { %2915 = vmatprep.mubr.msk.bf16.mxu1 %vm2030_vm3, %v2025_v27  ;;  %v762_v26 = vsel %vm732_vm2, %v759_v0, %v761_v11  ;;  %v973_v54 = vmul.f32 %v3660_v19, %v3773_v21  ;;  %v974_v39 = vmul.f32 %v3660_v19, %v3778_v31  ;;  %v1220_v42 = vmul.f32 %v3674_v35, %v3764_v33 }
  0xcb   : > { %v855_v23 = vadd.f32 %v760_v47, %v606_v32  ;;  %v856_v15 = vadd.f32 %v762_v26, %v607_v16  ;;  %v1078_v38 = vrot.slane %v972_v28, 1  ;;  %v1221_v24 = vmul.f32 %v3674_v35, %v3773_v21 }
  0xcc   : > { %v1079_v56 = vrot.slane %v973_v54, 1  ;;  %v1081_v6 = vrot.slane %v974_v39, 1  ;;  %v1222_v37 = vmul.f32 %v3674_v35, %v3778_v31  ;;  %v1326_v36 = vrot.slane %v1220_v42, 2 }
  0xcd   : > { %v927_v41 = vadd.f32 %v895_v1, %v855_v23  ;;  %v928_v13 = vadd.f32 %v896_v10, %v856_v15  ;;  %v1327_v29 = vrot.slane %v1221_v24, 2  ;;  %v1463_v58 = vmul.f32 %v3688_v44, %v3906_v34 }
  0xce   : > { %v1080_v2 = vsel %vm483_vm1, %v1078_v38, %v1079_v56  ;;  %v1082_v59 = vsel %vm483_vm1, %v1079_v56, %v1081_v6  ;;  %v1329_v45 = vrot.slane %v1222_v37, 2  ;;  %v1464_v48 = vmul.f32 %v3688_v44, %v3911_v40 }
  0xcf   : > { %v1175_v50 = vadd.f32 %v1080_v2, %v927_v41  ;;  %v1176_v3 = vadd.f32 %v1082_v59, %v928_v13  ;;  %v1328_v57 = vsel %vm732_vm2, %v1326_v36, %v1327_v29  ;;  %v1540_v53 = vmul.f32 %v3702_v30, %v3906_v34 }
  0xd0   : > { %v1330_v55 = vsel %vm732_vm2, %v1327_v29, %v1329_v45  ;;  %v1541_v63 = vmul.f32 %v3702_v30, %v3911_v40  ;;  %v1542_v60 = vmul.f32 %v3702_v30, %v3920_v49  ;;  %v1788_v4 = vmul.f32 %v3718_v22, %v3906_v34 }
  0xd1   : > { %v1423_v20 = vadd.f32 %v1328_v57, %v1175_v50  ;;  %v1424_v43 = vadd.f32 %v1330_v55, %v1176_v3  ;;  %v1646_v62 = vrot.slane %v1540_v53, 1  ;;  %v1789_v9 = vmul.f32 %v3718_v22, %v3911_v40 }
  0xd2   : > { %v1647_v0 = vrot.slane %v1541_v63, 1  ;;  %v1649_v1 = vrot.slane %v1542_v60, 1  ;;  %v1790_v10 = vmul.f32 %v3718_v22, %v3920_v49  ;;  %v1894_v27 = vrot.slane %v1788_v4, 2 }
  0xd3   : > { %v1495_v7 = vadd.f32 %v1463_v58, %v1423_v20  ;;  %v1496_v12 = vadd.f32 %v1464_v48, %v1424_v43  ;;  %v1895_v11 = vrot.slane %v1789_v9, 2  ;;  %v341_v32 = vmul.f32 %v3614_v52, %v3679_v51 }
  0xd4   : > { %v1648_v16 = vsel %vm483_vm1, %v1646_v62, %v1647_v0  ;;  %v1650_v47 = vsel %vm483_vm1, %v1647_v0, %v1649_v1  ;;  %v1897_v28 = vrot.slane %v1790_v10, 2  ;;  %v342_v26 = vmul.f32 %v3614_v52, %v3693_v46  ;;  %v3974_v62 = vld [vmem:[%s3067_s6 + $0x168] sm:$0xff] }
  0xd5   : > { %v1743_v54 = vadd.f32 %v1648_v16, %v1495_v7  ;;  %v1744_v39 = vadd.f32 %v1650_v47, %v1496_v12  ;;  %v1896_v42 = vsel %vm732_vm2, %v1894_v27, %v1895_v11  ;;  %v426_v23 = vmul.f32 %v3626_v25, %v3679_v51 }
  0xd6   : > { %v1898_v15 = vsel %vm732_vm2, %v1895_v11, %v1897_v28  ;;  %v427_v38 = vmul.f32 %v3626_v25, %v3693_v46  ;;  %v428_v24 = vmul.f32 %v3626_v25, %v3707_v8  ;;  %v675_v56 = vmul.f32 %v3638_v61, %v3679_v51 }
  0xd7   : > { %v1991_v6 = vadd.f32 %v1896_v42, %v1743_v54  ;;  %v1992_v37 = vadd.f32 %v1898_v15, %v1744_v39  ;;  %v549_v36 = vrot.slane %v426_v23, 1  ;;  %v676_v41 = vmul.f32 %v3638_v61, %v3693_v46  ;;  %v3992_v15 = vld [vmem:[%s3067_s6 + $0x178] sm:$0x3] }
  0xd8   : > { %v550_v13 = vrot.slane %v427_v38, 1  ;;  %v552_v29 = vrot.slane %v428_v24, 1  ;;  %v677_v58 = vmul.f32 %v3638_v61, %v3707_v8  ;;  %v798_v2 = vrot.slane %v675_v56, 2 }
  0xd9   : > { %v2018_v59 = vpack.c.bf16 %v1992_v37, %v1991_v6  ;;  %v799_v45 = vrot.slane %v676_v41, 2  ;;  %v911_v48 = vmul.f32 %v3649_v17, %v3836_v18  ;;  %v912_v51 = vmul.f32 %v3649_v17, %v3843_v14 }
  0xda   : > { %v551_v50 = vsel %vm483_vm1, %v549_v36, %v550_v13  ;;  %v553_v3 = vsel %vm483_vm1, %v550_v13, %v552_v29  ;;  %v801_v46 = vrot.slane %v677_v58, 2  ;;  %v996_v57 = vmul.f32 %v3660_v19, %v3836_v18 }
  0xdb   : > { %2900 = vmatmul.mubr.msk.bf16.gmra.mrb[8].mxu0 %vm2030_vm3, %v2018_v59  ;;  %v622_v8 = vadd.f32 %v551_v50, %v341_v32  ;;  %v623_v53 = vadd.f32 %v553_v3, %v342_v26  ;;  %v800_v55 = vsel %vm732_vm2, %v798_v2, %v799_v45  ;;  %v997_v63 = vmul.f32 %v3660_v19, %v3843_v14  ;;  %v3983_v32 = vld [vmem:[%s3067_s6 + $0x170] sm:$0xff] }
  0xdc   : > { %v802_v60 = vsel %vm732_vm2, %v799_v45, %v801_v46  ;;  %v998_v4 = vmul.f32 %v3660_v19, %v3848_v5  ;;  %v1118_v20 = vrot.slane %v996_v57, 1  ;;  %v1244_v43 = vmul.f32 %v3674_v35, %v3836_v18 }
  0xdd   : > { %v871_v9 = vadd.f32 %v800_v55, %v622_v8  ;;  %v872_v0 = vadd.f32 %v802_v60, %v623_v53  ;;  %v1119_v1 = vrot.slane %v997_v63, 1  ;;  %v1245_v10 = vmul.f32 %v3674_v35, %v3843_v14 }
  0xde   : > { %v1121_v27 = vrot.slane %v998_v4, 1  ;;  %v1246_v7 = vmul.f32 %v3674_v35, %v3848_v5  ;;  %v1366_v12 = vrot.slane %v1244_v43, 2  ;;  %v1479_v11 = vmul.f32 %v3688_v44, %v3974_v62 }
  0xdf   : > { %v943_v16 = vadd.f32 %v911_v48, %v871_v9  ;;  %v944_v47 = vadd.f32 %v912_v51, %v872_v0  ;;  %v1120_v28 = vsel %vm483_vm1, %v1118_v20, %v1119_v1  ;;  %v1367_v26 = vrot.slane %v1245_v10, 2 }
  0xe0   : > { %v1122_v54 = vsel %vm483_vm1, %v1119_v1, %v1121_v27  ;;  %v1369_v39 = vrot.slane %v1246_v7, 2  ;;  %v1480_v42 = vmul.f32 %v3688_v44, %v3983_v32  ;;  %v1564_v23 = vmul.f32 %v3702_v30, %v3974_v62 }
  0xe1   : > { %v1191_v38 = vadd.f32 %v1120_v28, %v943_v16  ;;  %v1192_v24 = vadd.f32 %v1122_v54, %v944_v47  ;;  %v1368_v56 = vsel %vm732_vm2, %v1366_v12, %v1367_v26  ;;  %v1565_v6 = vmul.f32 %v3702_v30, %v3983_v32 }
  0xe2   : > { %v1370_v37 = vsel %vm732_vm2, %v1367_v26, %v1369_v39  ;;  %v1566_v36 = vmul.f32 %v3702_v30, %v3992_v15  ;;  %v1686_v41 = vrot.slane %v1564_v23, 1  ;;  %v1812_v13 = vmul.f32 %v3718_v22, %v3974_v62 }
  0xe3   : > { %v1439_v29 = vadd.f32 %v1368_v56, %v1191_v38  ;;  %v1440_v58 = vadd.f32 %v1370_v37, %v1192_v24  ;;  %v1687_v2 = vrot.slane %v1565_v6, 1  ;;  %v1813_v59 = vmul.f32 %v3718_v22, %v3983_v32 }
  0xe4   : > { %v1689_v45 = vrot.slane %v1566_v36, 1  ;;  %v1814_v48 = vmul.f32 %v3718_v22, %v3992_v15  ;;  %v1934_v51 = vrot.slane %v1812_v13, 2  ;;  %v327_v50 = vmul.f32 %v3614_v52, %v3764_v33 }
  0xe5   : > { %v1511_v3 = vadd.f32 %v1479_v11, %v1439_v29  ;;  %v1512_v46 = vadd.f32 %v1480_v42, %v1440_v58  ;;  %v1688_v57 = vsel %vm483_vm1, %v1686_v41, %v1687_v2  ;;  %v1935_v8 = vrot.slane %v1813_v59, 2 }
  0xe6   : > { %v1690_v53 = vsel %vm483_vm1, %v1687_v2, %v1689_v45  ;;  %v1937_v55 = vrot.slane %v1814_v48, 2  ;;  %v328_v63 = vmul.f32 %v3614_v52, %v3773_v21  ;;  %v405_v60 = vmul.f32 %v3626_v25, %v3764_v33 }
  0xe7   : > { %v1759_v4 = vadd.f32 %v1688_v57, %v1511_v3  ;;  %v1760_v20 = vadd.f32 %v1690_v53, %v1512_v46  ;;  %v1936_v43 = vsel %vm732_vm2, %v1934_v51, %v1935_v8  ;;  %v406_v9 = vmul.f32 %v3626_v25, %v3773_v21  ;;  %v4048_v46 = vld [vmem:[%s3067_s6 + $0xc0] sm:$0xff] }
  0xe8   : > { %v1938_v0 = vsel %vm732_vm2, %v1935_v8, %v1937_v55  ;;  %v407_v1 = vmul.f32 %v3626_v25, %v3778_v31  ;;  %v514_v10 = vrot.slane %v405_v60, 1  ;;  %v654_v27 = vmul.f32 %v3638_v61, %v3764_v33 }
  0xe9   : > { %v2007_v7 = vadd.f32 %v1936_v43, %v1759_v4  ;;  %v2008_v12 = vadd.f32 %v1938_v0, %v1760_v20  ;;  %v515_v11 = vrot.slane %v406_v9, 1  ;;  %v655_v16 = vmul.f32 %v3638_v61, %v3773_v21  ;;  %v4055_v20 = vld [vmem:[%s3067_s6 + $0xc8] sm:$0xff] }
  0xea   : > { %v517_v47 = vrot.slane %v407_v1, 1  ;;  %v656_v28 = vmul.f32 %v3638_v61, %v3778_v31  ;;  %v763_v26 = vrot.slane %v654_v27, 2  ;;  %v897_v54 = vmul.f32 %v3649_v17, %v3906_v34  ;;  %v4065_v27 = vld [vmem:[%s3067_s6 + $0xd0] sm:$0x3] }
  0xeb   : > { %v2026_v39 = vpack.c.bf16 %v2008_v12, %v2007_v7  ;;  %v516_v42 = vsel %vm483_vm1, %v514_v10, %v515_v11  ;;  %v764_v23 = vrot.slane %v655_v16, 2  ;;  %v898_v33 = vmul.f32 %v3649_v17, %v3911_v40 }
  0xec   : > { %v518_v38 = vsel %vm483_vm1, %v515_v11, %v517_v47  ;;  %v608_v24 = vadd.f32 %v516_v42, %v327_v50  ;;  %v766_v56 = vrot.slane %v656_v28, 2  ;;  %v975_v21 = vmul.f32 %v3660_v19, %v3906_v34 }
  0xed   : > { %2916 = vmatmul.mubr.msk.bf16.gmra.mrb[8].mxu1 %vm2030_vm3, %v2026_v39  ;;  %v609_v31 = vadd.f32 %v518_v38, %v328_v63  ;;  %v765_v6 = vsel %vm732_vm2, %v763_v26, %v764_v23  ;;  %v976_v37 = vmul.f32 %v3660_v19, %v3911_v40  ;;  %v977_v36 = vmul.f32 %v3660_v19, %v3920_v49 }
  0xee   : > { %v767_v41 = vsel %vm732_vm2, %v764_v23, %v766_v56  ;;  %v857_v13 = vadd.f32 %v765_v6, %v608_v24  ;;  %v1083_v29 = vrot.slane %v975_v21, 1  ;;  %v1223_v58 = vmul.f32 %v3674_v35, %v3906_v34 }
  0xef   : > { %v858_v2 = vadd.f32 %v767_v41, %v609_v31  ;;  %v1084_v59 = vrot.slane %v976_v37, 1  ;;  %v1086_v45 = vrot.slane %v977_v36, 1  ;;  %v1224_v48 = vmul.f32 %v3674_v35, %v3911_v40 }
  0xf0   : > { %v929_v51 = vadd.f32 %v897_v54, %v857_v13  ;;  %v1225_v50 = vmul.f32 %v3674_v35, %v3920_v49  ;;  %v1331_v3 = vrot.slane %v1223_v58, 2  ;;  %v1465_v57 = vmul.f32 %v4048_v46, %v3688_v44 }
  0xf1   : > { %v930_v8 = vadd.f32 %v898_v33, %v858_v2  ;;  %v1085_v53 = vsel %vm483_vm1, %v1083_v29, %v1084_v59  ;;  %v1087_v55 = vsel %vm483_vm1, %v1084_v59, %v1086_v45  ;;  %v1332_v63 = vrot.slane %v1224_v48, 2 }
  0xf2   : > { %v1177_v60 = vadd.f32 %v1085_v53, %v929_v51  ;;  %v1334_v4 = vrot.slane %v1225_v50, 2  ;;  %v1466_v43 = vmul.f32 %v4055_v20, %v3688_v44  ;;  %v1543_v9 = vmul.f32 %v4048_v46, %v3702_v30 }
  0xf3   : > { %v1178_v0 = vadd.f32 %v1087_v55, %v930_v8  ;;  %v1333_v1 = vsel %vm732_vm2, %v1331_v3, %v1332_v63  ;;  %v1544_v10 = vmul.f32 %v4055_v20, %v3702_v30  ;;  %v1545_v7 = vmul.f32 %v4065_v27, %v3702_v30 }
  0xf4   : > { %v1335_v12 = vsel %vm732_vm2, %v1332_v63, %v1334_v4  ;;  %v1425_v11 = vadd.f32 %v1333_v1, %v1177_v60  ;;  %v1651_v16 = vrot.slane %v1543_v9, 1  ;;  %v1791_v47 = vmul.f32 %v4048_v46, %v3718_v22 }
  0xf5   : > { %v1426_v28 = vadd.f32 %v1335_v12, %v1178_v0  ;;  %v1652_v26 = vrot.slane %v1544_v10, 1  ;;  %v1654_v54 = vrot.slane %v1545_v7, 1  ;;  %v1792_v39 = vmul.f32 %v4055_v20, %v3718_v22 }
  0xf6   : > { %v1497_v42 = vadd.f32 %v1465_v57, %v1425_v11  ;;  %v1793_v23 = vmul.f32 %v4065_v27, %v3718_v22  ;;  %v1899_v33 = vrot.slane %v1791_v47, 2  ;;  %v343_v38 = vmul.f32 %v3614_v52, %v3836_v18 }
  0xf7   : > { %v1498_v24 = vadd.f32 %v1466_v43, %v1426_v28  ;;  %v1653_v56 = vsel %vm483_vm1, %v1651_v16, %v1652_v26  ;;  %v1655_v21 = vsel %vm483_vm1, %v1652_v26, %v1654_v54  ;;  %v1900_v31 = vrot.slane %v1792_v39, 2  ;;  %v4116_v16 = vld [vmem:[%s3067_s6 + $0x180] sm:$0xff] }
  0xf8   : > { %v1745_v6 = vadd.f32 %v1653_v56, %v1497_v42  ;;  %v1902_v37 = vrot.slane %v1793_v23, 2  ;;  %v344_v36 = vmul.f32 %v3614_v52, %v3843_v14  ;;  %v429_v41 = vmul.f32 %v3626_v25, %v3836_v18 }
  0xf9   : > { %v1746_v13 = vadd.f32 %v1655_v21, %v1498_v24  ;;  %v1901_v29 = vsel %vm732_vm2, %v1899_v33, %v1900_v31  ;;  %v430_v58 = vmul.f32 %v3626_v25, %v3843_v14  ;;  %v431_v2 = vmul.f32 %v3626_v25, %v3848_v5  ;;  %v4123_v33 = vld [vmem:[%s3067_s6 + $0x188] sm:$0xff] }
  0xfa   : > { %v1903_v59 = vsel %vm732_vm2, %v1900_v31, %v1902_v37  ;;  %v1993_v45 = vadd.f32 %v1901_v29, %v1745_v6  ;;  %v554_v48 = vrot.slane %v429_v41, 1  ;;  %v678_v51 = vmul.f32 %v3638_v61, %v3836_v18  ;;  %v4128_v31 = vld [vmem:[%s3067_s6 + $0x190] sm:$0x3] }
  0xfb   : > { %v1994_v52 = vadd.f32 %v1903_v59, %v1746_v13  ;;  %v555_v50 = vrot.slane %v430_v58, 1  ;;  %v557_v3 = vrot.slane %v431_v2, 1  ;;  %v679_v57 = vmul.f32 %v3638_v61, %v3843_v14 }
  0xfc   : > { %v680_v8 = vmul.f32 %v3638_v61, %v3848_v5  ;;  %v803_v53 = vrot.slane %v678_v51, 2  ;;  %v913_v25 = vmul.f32 %v3649_v17, %v3974_v62  ;;  %v914_v55 = vmul.f32 %v3649_v17, %v3983_v32 }
  0xfd   : > { %v2019_v63 = vpack.c.bf16 %v1994_v52, %v1993_v45  ;;  %v556_v60 = vsel %vm483_vm1, %v554_v48, %v555_v50  ;;  %v558_v18 = vsel %vm483_vm1, %v555_v50, %v557_v3  ;;  %v804_v4 = vrot.slane %v679_v57, 2 }
  0xfe   : > { %v624_v43 = vadd.f32 %v556_v60, %v343_v38  ;;  %v625_v9 = vadd.f32 %v558_v18, %v344_v36  ;;  %v806_v14 = vrot.slane %v680_v8, 2  ;;  %v999_v61 = vmul.f32 %v3660_v19, %v3974_v62 }
  0xff   : > { %2903 = vmatprep.mubr.msk.bf16.mxu0 %vm2030_vm3, %v2019_v63  ;;  %v805_v5 = vsel %vm732_vm2, %v803_v53, %v804_v4  ;;  %v1000_v17 = vmul.f32 %v3660_v19, %v3983_v32  ;;  %v1001_v0 = vmul.f32 %v3660_v19, %v3992_v15  ;;  %v1247_v1 = vmul.f32 %v3674_v35, %v3974_v62 }
 0x100   : > { %v807_v10 = vsel %vm732_vm2, %v804_v4, %v806_v14  ;;  %v873_v7 = vadd.f32 %v805_v5, %v624_v43  ;;  %v1123_v12 = vrot.slane %v999_v61, 1  ;;  %v1248_v11 = vmul.f32 %v3674_v35, %v3983_v32  ;;  %v4161_v43 = vld [vmem:[%s4414_s1 + $0x1] ss:$0 sm:$0xff] }
 0x101   : > { %v874_v47 = vadd.f32 %v807_v10, %v625_v9  ;;  %v1124_v28 = vrot.slane %v1000_v17, 1  ;;  %v1126_v26 = vrot.slane %v1001_v0, 1  ;;  %v1249_v54 = vmul.f32 %v3674_v35, %v3992_v15  ;;  %v4173_v10 = vld [vmem:[%s4414_s1 + $0x2] ss:$0 sm:$0xff] }
 0x102   : > { %v945_v19 = vadd.f32 %v913_v25, %v873_v7  ;;  %v1371_v39 = vrot.slane %v1247_v1, 2  ;;  %v1372_v42 = vrot.slane %v1248_v11, 2  ;;  %v1481_v23 = vmul.f32 %v3688_v44, %v4116_v16 }
 0x103   : > { %v946_v38 = vadd.f32 %v914_v55, %v874_v47  ;;  %v1125_v24 = vsel %vm483_vm1, %v1123_v12, %v1124_v28  ;;  %v1127_v56 = vsel %vm483_vm1, %v1124_v28, %v1126_v26  ;;  %v1374_v21 = vrot.slane %v1249_v54, 2 }
 0x104   : > { %v1193_v6 = vadd.f32 %v1125_v24, %v945_v19  ;;  %v1373_v37 = vsel %vm732_vm2, %v1371_v39, %v1372_v42  ;;  %v1482_v35 = vmul.f32 %v3688_v44, %v4123_v33  ;;  %v1567_v36 = vmul.f32 %v3702_v30, %v4116_v16  ;;  %v4184_v39 = vld [vmem:[%s4414_s1 + $0x3] ss:$0 sm:$0xff] }
 0x105   : > { %v1194_v41 = vadd.f32 %v1127_v56, %v946_v38  ;;  %v1375_v13 = vsel %vm732_vm2, %v1372_v42, %v1374_v21  ;;  %v1568_v29 = vmul.f32 %v3702_v30, %v4123_v33  ;;  %v1569_v58 = vmul.f32 %v3702_v30, %v4128_v31  ;;  %v4149_v30 = vld [vmem:[%s4414_s1] ss:$0 sm:$0xff] }
 0x106   : > { %v1441_v2 = vadd.f32 %v1373_v37, %v1193_v6  ;;  %v1691_v59 = vrot.slane %v1567_v36, 1  ;;  %v1815_v45 = vmul.f32 %v3718_v22, %v4116_v16  ;;  %v1816_v44 = vmul.f32 %v3718_v22, %v4123_v33  ;;  %v4196_v6 = vld [vmem:[%s4414_s1 + $0x4] ss:$0 sm:$0xff] }
 0x107   : > { %v1442_v48 = vadd.f32 %v1375_v13, %v1194_v41  ;;  %v1692_v51 = vrot.slane %v1568_v29, 1  ;;  %v1694_v52 = vrot.slane %v1569_v58, 1  ;;  %v1817_v50 = vmul.f32 %v3718_v22, %v4128_v31  ;;  %v4209_v13 = vld [vmem:[%s4414_s1 + $0x5] ss:$0 sm:$0xff] }
 0x108   : > { %v1513_v3 = vadd.f32 %v1481_v23, %v1441_v2  ;;  %v1939_v57 = vrot.slane %v1815_v45, 2  ;;  %v1940_v8 = vrot.slane %v1816_v44, 2  ;;  %v329_v53 = vmul.f32 %v4149_v30, %v3906_v34 }
 0x109   : > { %v1514_v25 = vadd.f32 %v1482_v35, %v1442_v48  ;;  %v1693_v55 = vsel %vm483_vm1, %v1691_v59, %v1692_v51  ;;  %v1695_v63 = vsel %vm483_vm1, %v1692_v51, %v1694_v52  ;;  %v1942_v60 = vrot.slane %v1817_v50, 2 }
 0x10a   : > { %v1761_v18 = vadd.f32 %v1693_v55, %v1513_v3  ;;  %v1941_v22 = vsel %vm732_vm2, %v1939_v57, %v1940_v8  ;;  %v330_v4 = vmul.f32 %v4149_v30, %v3911_v40  ;;  %v408_v9 = vmul.f32 %v4161_v43, %v3906_v34 }
 0x10b   : > { %v1762_v14 = vadd.f32 %v1695_v63, %v1514_v25  ;;  %v1943_v61 = vsel %vm732_vm2, %v1940_v8, %v1942_v60  ;;  %v409_v5 = vmul.f32 %v4161_v43, %v3911_v40  ;;  %v410_v17 = vmul.f32 %v4161_v43, %v3920_v49  ;;  %v2971_v8 = vld [vmem:[%s3067_s6 + $0xd8] sm:$0xff]  ;;  %v2972_v63 = vld [vmem:[%s3067_s6 + $0xe0] sm:$0xff] }
 0x10c   : > { %v2009_v0 = vadd.f32 %v1941_v22, %v1761_v18  ;;  %v519_v1 = vrot.slane %v408_v9, 1  ;;  %v657_v7 = vmul.f32 %v4173_v10, %v3906_v34  ;;  %v658_v12 = vmul.f32 %v4173_v10, %v3911_v40 }
 0x10d   : > { %v2010_v11 = vadd.f32 %v1943_v61, %v1762_v14  ;;  %v520_v47 = vrot.slane %v409_v5, 1  ;;  %v522_v28 = vrot.slane %v410_v17, 1  ;;  %v659_v26 = vmul.f32 %v4173_v10, %v3920_v49  ;;  %v2974_v5 = vld [vmem:[%s3067_s6 + $0xe8] sm:$0x3] }
 0x10e   : > { %v768_v54 = vrot.slane %v657_v7, 2  ;;  %v769_v19 = vrot.slane %v658_v12, 2  ;;  %v899_v42 = vmul.f32 %v4184_v39, %v4048_v46  ;;  %v900_v34 = vmul.f32 %v4184_v39, %v4055_v20 }
 0x10f   : > { %v2027_v40 = vpack.c.bf16 %v2010_v11, %v2009_v0  ;;  %v521_v23 = vsel %vm483_vm1, %v519_v1, %v520_v47  ;;  %v523_v38 = vsel %vm483_vm1, %v520_v47, %v522_v28  ;;  %v771_v24 = vrot.slane %v659_v26, 2  ;;  %v4242_v0 = vld [vmem:[%s4414_s1 + $0x8] ss:$0 sm:$0xff] }
 0x110   : > { %v610_v49 = vadd.f32 %v521_v23, %v329_v53  ;;  %v611_v56 = vadd.f32 %v523_v38, %v330_v4  ;;  %v770_v21 = vsel %vm732_vm2, %v768_v54, %v769_v19  ;;  %v978_v37 = vmul.f32 %v4196_v6, %v4048_v46  ;;  %v4232_v4 = vld [vmem:[%s4414_s1 + $0x7] ss:$0 sm:$0xff] }
 0x111   : > { %2919 = vmatprep.mubr.msk.bf16.mxu1 %vm2030_vm3, %v2027_v40  ;;  %v772_v35 = vsel %vm732_vm2, %v769_v19, %v771_v24  ;;  %v979_v36 = vmul.f32 %v4196_v6, %v4055_v20  ;;  %v980_v41 = vmul.f32 %v4196_v6, %v4065_v27  ;;  %v1226_v29 = vmul.f32 %v4209_v13, %v4048_v46  ;;  %v4220_v46 = vld [vmem:[%s4414_s1 + $0x6] ss:$0 sm:$0xff] }
 0x112   : > { %v859_v58 = vadd.f32 %v770_v21, %v610_v49  ;;  %v860_v2 = vadd.f32 %v772_v35, %v611_v56  ;;  %v1088_v59 = vrot.slane %v978_v37, 1  ;;  %v1227_v45 = vmul.f32 %v4209_v13, %v4055_v20 }
 0x113   : > { %v1089_v44 = vrot.slane %v979_v36, 1  ;;  %v1091_v48 = vrot.slane %v980_v41, 1  ;;  %v1228_v51 = vmul.f32 %v4209_v13, %v4065_v27  ;;  %v1336_v52 = vrot.slane %v1226_v29, 2 }
 0x114   : > { %v931_v50 = vadd.f32 %v899_v42, %v859_v58  ;;  %v932_v3 = vadd.f32 %v900_v34, %v860_v2  ;;  %v1337_v57 = vrot.slane %v1227_v45, 2  ;;  %v1467_v53 = vmul.f32 %v2971_v8, %v4220_v46 }
 0x115   : > { %v1090_v20 = vsel %vm483_vm1, %v1088_v59, %v1089_v44  ;;  %v1092_v25 = vsel %vm483_vm1, %v1089_v44, %v1091_v48  ;;  %v1339_v55 = vrot.slane %v1228_v51, 2  ;;  %v1468_v27 = vmul.f32 %v2972_v63, %v4220_v46 }
 0x116   : > { %v1179_v60 = vadd.f32 %v1090_v20, %v931_v50  ;;  %v1180_v18 = vadd.f32 %v1092_v25, %v932_v3  ;;  %v1338_v22 = vsel %vm732_vm2, %v1336_v52, %v1337_v57  ;;  %v1546_v9 = vmul.f32 %v4232_v4, %v2971_v8 }
 0x117   : > { %v1340_v14 = vsel %vm732_vm2, %v1337_v57, %v1339_v55  ;;  %v1547_v61 = vmul.f32 %v4232_v4, %v2972_v63  ;;  %v1548_v17 = vmul.f32 %v2974_v5, %v4232_v4  ;;  %v1794_v1 = vmul.f32 %v4242_v0, %v2971_v8 }
 0x118   : > { %v1427_v7 = vadd.f32 %v1338_v22, %v1179_v60  ;;  %v1428_v12 = vadd.f32 %v1340_v14, %v1180_v18  ;;  %v1656_v11 = vrot.slane %v1546_v9, 1  ;;  %v1795_v47 = vmul.f32 %v4242_v0, %v2972_v63  ;;  %v306_v14 = vld [vmem:[%s3067_s6 + $0x1a0] sm:$0xff] }
 0x119   : > { %v1657_v28 = vrot.slane %v1547_v61, 1  ;;  %v1659_v26 = vrot.slane %v1548_v17, 1  ;;  %v1796_v54 = vmul.f32 %v4242_v0, %v2974_v5  ;;  %v1904_v19 = vrot.slane %v1794_v1, 2 }
 0x11a   : > { %v1499_v42 = vadd.f32 %v1467_v53, %v1427_v7  ;;  %v1500_v34 = vadd.f32 %v1468_v27, %v1428_v12  ;;  %v1905_v40 = vrot.slane %v1795_v47, 2  ;;  %v345_v23 = vmul.f32 %v4149_v30, %v3974_v62 }
 0x11b   : > { %v1658_v38 = vsel %vm483_vm1, %v1656_v11, %v1657_v28  ;;  %v1660_v24 = vsel %vm483_vm1, %v1657_v28, %v1659_v26  ;;  %v1907_v49 = vrot.slane %v1796_v54, 2  ;;  %v346_v56 = vmul.f32 %v4149_v30, %v3983_v32  ;;  %v307_v26 = vld [vmem:[%s3067_s6 + $0x1a8] sm:$0x3] }
 0x11c   : > { %v1747_v21 = vadd.f32 %v1658_v38, %v1499_v42  ;;  %v1748_v37 = vadd.f32 %v1660_v24, %v1500_v34  ;;  %v1906_v35 = vsel %vm732_vm2, %v1904_v19, %v1905_v40  ;;  %v432_v36 = vmul.f32 %v4161_v43, %v3974_v62 }
 0x11d   : > { %v1908_v41 = vsel %vm732_vm2, %v1905_v40, %v1907_v49  ;;  %v433_v29 = vmul.f32 %v4161_v43, %v3983_v32  ;;  %v434_v58 = vmul.f32 %v4161_v43, %v3992_v15  ;;  %v681_v2 = vmul.f32 %v4173_v10, %v3974_v62 }
 0x11e   : > { %v1995_v59 = vadd.f32 %v1906_v35, %v1747_v21  ;;  %v1996_v30 = vadd.f32 %v1908_v41, %v1748_v37  ;;  %v559_v45 = vrot.slane %v432_v36, 1  ;;  %v682_v44 = vmul.f32 %v4173_v10, %v3983_v32 }
 0x11f   : > { %v560_v48 = vrot.slane %v433_v29, 1  ;;  %v562_v51 = vrot.slane %v434_v58, 1  ;;  %v683_v52 = vmul.f32 %v4173_v10, %v3992_v15  ;;  %v808_v50 = vrot.slane %v681_v2, 2  ;;  %v305_v15 = vld [vmem:[%s3067_s6 + $0x198] sm:$0xff] }
 0x120   : > { %v2020_v3 = vpack.c.bf16 %v1996_v30, %v1995_v59  ;;  %v809_v57 = vrot.slane %v682_v44, 2  ;;  %v915_v43 = vmul.f32 %v4184_v39, %v4116_v16  ;;  %v916_v62 = vmul.f32 %v4184_v39, %v4123_v33 }
 0x121   : > { %v561_v8 = vsel %vm483_vm1, %v559_v45, %v560_v48  ;;  %v563_v53 = vsel %vm483_vm1, %v560_v48, %v562_v51  ;;  %v811_v32 = vrot.slane %v683_v52, 2  ;;  %v1002_v20 = vmul.f32 %v4196_v6, %v4116_v16  ;;  %v4308_v52 = vld [vmem:[%s4416_s3] ss:$0 sm:$0xff] }
 0x122   : > { %2904 = vmatmul.mubr.msk.bf16.gmra.mrb[12].mxu0 %vm2030_vm3, %v2020_v3  ;;  %v626_v10 = vadd.f32 %v561_v8, %v345_v23  ;;  %v627_v25 = vadd.f32 %v563_v53, %v346_v56  ;;  %v810_v55 = vsel %vm732_vm2, %v808_v50, %v809_v57  ;;  %v1003_v63 = vmul.f32 %v4196_v6, %v4123_v33  ;;  %v2893_v39 = vpop.f32.mrb[0].mxu0 }
 0x123   : > { %v812_v27 = vsel %vm732_vm2, %v809_v57, %v811_v32  ;;  %v1004_v60 = vmul.f32 %v4196_v6, %v4128_v31  ;;  %v1128_v18 = vrot.slane %v1002_v20, 1  ;;  %v1250_v22 = vmul.f32 %v4209_v13, %v4116_v16  ;;  %v2117_v9 = vpop.f32.mrb[1].mxu0 }
 0x124   : > { %v875_v61 = vadd.f32 %v810_v55, %v626_v10  ;;  %v876_v5 = vadd.f32 %v812_v27, %v627_v25  ;;  %v1129_v17 = vrot.slane %v1003_v63, 1  ;;  %v1251_v1 = vmul.f32 %v4209_v13, %v4123_v33  ;;  %v2894_v7 = vpop.f32.mrb[2].mxu0 }
 0x125   : > { %v1131_v12 = vrot.slane %v1004_v60, 1  ;;  %v1252_v11 = vmul.f32 %v4209_v13, %v4128_v31  ;;  %v1376_v47 = vrot.slane %v1250_v22, 2  ;;  %v1483_v6 = vmul.f32 %v4220_v46, %v305_v15  ;;  %v2120_v28 = vpop.f32.mrb[3].mxu0 }
 0x126   : > { %v947_v54 = vadd.f32 %v915_v43, %v875_v61  ;;  %v948_v16 = vadd.f32 %v916_v62, %v876_v5  ;;  %v1130_v19 = vsel %vm483_vm1, %v1128_v18, %v1129_v17  ;;  %v1377_v42 = vrot.slane %v1251_v1, 2 }
 0x127   : > { %v1132_v34 = vsel %vm483_vm1, %v1129_v17, %v1131_v12  ;;  %v1379_v40 = vrot.slane %v1252_v11, 2  ;;  %v1484_v33 = vmul.f32 %v4220_v46, %v306_v14  ;;  %v1570_v23 = vmul.f32 %v4232_v4, %v305_v15 }
 0x128   : > { %v1195_v38 = vadd.f32 %v1130_v19, %v947_v54  ;;  %v1196_v24 = vadd.f32 %v1132_v34, %v948_v16  ;;  %v1378_v31 = vsel %vm732_vm2, %v1376_v47, %v1377_v42  ;;  %v1571_v13 = vmul.f32 %v4232_v4, %v306_v14 }
 0x129   : > { %v1380_v49 = vsel %vm732_vm2, %v1377_v42, %v1379_v40  ;;  %v1572_v56 = vmul.f32 %v4232_v4, %v307_v26  ;;  %v1696_v21 = vrot.slane %v1570_v23, 1  ;;  %v1818_v37 = vmul.f32 %v4242_v0, %v305_v15  ;;  %v4316_v15 = vld [vmem:[%s4417_s4] ss:$0 sm:$0xff] }
 0x12a   : > { %v1443_v35 = vadd.f32 %v1378_v31, %v1195_v38  ;;  %v1444_v36 = vadd.f32 %v1380_v49, %v1196_v24  ;;  %v1697_v41 = vrot.slane %v1571_v13, 1  ;;  %v1819_v46 = vmul.f32 %v4242_v0, %v306_v14 }
 0x12b   : > { %v1699_v29 = vrot.slane %v1572_v56, 1  ;;  %v1820_v58 = vmul.f32 %v4242_v0, %v307_v26  ;;  %v1944_v2 = vrot.slane %v1818_v37, 2  ;;  %vm2246_vm4 = vcmp.gt.f32.partialorder %v2893_v39, 0.0 }
 0x12c   : > { %v1515_v59 = vadd.f32 %v1483_v6, %v1443_v35  ;;  %v1516_v30 = vadd.f32 %v1484_v33, %v1444_v36  ;;  %v1698_v45 = vsel %vm483_vm1, %v1696_v21, %v1697_v41  ;;  %v1945_v44 = vrot.slane %v1819_v46, 2 }
 0x12d   : > { %v1700_v4 = vsel %vm483_vm1, %v1697_v41, %v1699_v29  ;;  %v1947_v48 = vrot.slane %v1820_v58, 2  ;;  %v2278_v51 = vmul.f32 0.01, %v2893_v39  ;;  %vm2244_vm5 = vcmp.gt.f32.partialorder %v2117_v9, 0.0 }
 0x12e   : > { %v1763_v50 = vadd.f32 %v1698_v45, %v1515_v59  ;;  %v1764_v3 = vadd.f32 %v1700_v4, %v1516_v30  ;;  %v1946_v0 = vsel %vm732_vm2, %v1944_v2, %v1945_v44  ;;  %v2276_v57 = vmul.f32 0.01, %v2117_v9 }
 0x12f   : > { %v1948_v43 = vsel %vm732_vm2, %v1945_v44, %v1947_v48  ;;  %v2310_v62 = vsel %vm2246_vm4, %v2893_v39, %v2278_v51  ;;  %vm2247_vm6 = vcmp.gt.f32.partialorder %v2894_v7, 0.0  ;;  %v2279_v8 = vmul.f32 0.01, %v2894_v7 }
 0x130   : > { %v2011_v53 = vadd.f32 %v1946_v0, %v1763_v50  ;;  %v2012_v32 = vadd.f32 %v1948_v43, %v1764_v3  ;;  %v2349_v20 = vmul.f32 %v4308_v52, %v2310_v62  ;;  %v2308_v10 = vsel %vm2244_vm5, %v2117_v9, %v2276_v57 }
 0x131   : > { %v2347_v25 = vmul.f32 %v4308_v52, %v2308_v10  ;;  %v2311_v55 = vsel %vm2247_vm6, %v2894_v7, %v2279_v8  ;;  %vm2245_vm7 = vcmp.gt.f32.partialorder %v2120_v28, 0.0  ;;  %v2277_v63 = vmul.f32 0.01, %v2120_v28 }
 0x132   : > { %v2028_v27 = vpack.c.bf16 %v2012_v32, %v2011_v53  ;;  %v2350_v39 = vmul.f32 %v4308_v52, %v2311_v55  ;;  %v2388_v60 = vadd.f32 %v4316_v15, %v2349_v20 }
 0x133   : > { %v2909_v18 = vpop.f32.mrb[0].mxu1  ;;  %v2309_v22 = vsel %vm2245_vm7, %v2120_v28, %v2277_v63  ;;  %v2386_v17 = vadd.f32 %v4316_v15, %v2347_v25 }
 0x134   : > { %2920 = vmatmul.mubr.msk.bf16.gmra.mrb[12].mxu1 %vm2030_vm3, %v2028_v27  ;;  %vm2262_vm8 = vcmp.gt.f32.partialorder %v2909_v18, 0.0  ;;  %v2294_v14 = vmul.f32 0.01, %v2909_v18  ;;  %v2181_v61 = vpop.f32.mrb[1].mxu1  ;;  %v2389_v9 = vadd.f32 %v4316_v15, %v2350_v39  ;;  %v2348_v5 = vmul.f32 %v4308_v52, %v2309_v22 }
 0x135   : > { %vm2260_vm9 = vcmp.gt.f32.partialorder %v2181_v61, 0.0  ;;  %v2292_v1 = vmul.f32 0.01, %v2181_v61  ;;  %v2910_v7 = vpop.f32.mrb[2].mxu1 }
 0x136   : > { %v2326_v12 = vsel %vm2262_vm8, %v2909_v18, %v2294_v14  ;;  %v2785_v11 = vpack.c.bf16 %v2389_v9, %v2388_v60  ;;  %vm2263_vm10 = vcmp.gt.f32.partialorder %v2910_v7, 0.0  ;;  %v2295_v47 = vmul.f32 0.01, %v2910_v7  ;;  %v2184_v6 = vpop.f32.mrb[3].mxu1 }
 0x137   : > { %v2365_v28 = vmul.f32 %v4308_v52, %v2326_v12  ;;  %v2324_v26 = vsel %vm2260_vm9, %v2181_v61, %v2292_v1  ;;  %v2387_v54 = vadd.f32 %v4316_v15, %v2348_v5  ;;  %vm2261_vm11 = vcmp.gt.f32.partialorder %v2184_v6, 0.0 }
 0x138   : > { %2857 = vst [vmem:[%s4329_s26 + $0x8] sm:$0xff] %v2785_v11   ;;  %v2327_v16 = vsel %vm2263_vm10, %v2910_v7, %v2295_v47  ;;  %v2293_v19 = vmul.f32 0.01, %v2184_v6  ;;  %v2363_v42 = vmul.f32 %v4308_v52, %v2324_v26 }
 0x139   : > { %v2366_v34 = vmul.f32 %v4308_v52, %v2327_v16  ;;  %v2780_v40 = vpack.c.bf16 %v2387_v54, %v2386_v17  ;;  %v2404_v23 = vadd.f32 %v4316_v15, %v2365_v28 }
 0x13a   : > { %v2325_v33 = vsel %vm2261_vm11, %v2184_v6, %v2293_v19  ;;  %v2402_v31 = vadd.f32 %v4316_v15, %v2363_v42 }
 0x13b   : > { %v2405_v38 = vadd.f32 %v4316_v15, %v2366_v34  ;;  %2781 = vst [vmem:[%s4329_s26] sm:$0xff] %v2780_v40   ;;  %v2364_v24 = vmul.f32 %v4308_v52, %v2325_v33 }
 0x13d   : > { %v2825_v13 = vpack.c.bf16 %v2405_v38, %v2404_v23  ;;  %v2403_v49 = vadd.f32 %v4316_v15, %v2364_v24 }
 0x13f   : > { %2865 = vst [vmem:[%s4329_s26 + $0x48] sm:$0xff] %v2825_v13   ;;  %v2820_v56 = vpack.c.bf16 %v2403_v49, %v2402_v31 }
 0x141   : > { %2864 = vst [vmem:[%s4329_s26 + $0x40] sm:$0xff] %v2820_v56  }
 0x167   : > { %v2897_v21 = vpop.f32.mrb[4].mxu0 }
 0x168   : > { %vm2250_vm12 = vcmp.gt.f32.partialorder %v2897_v21, 0.0  ;;  %v2282_v37 = vmul.f32 0.01, %v2897_v21  ;;  %v2133_v35 = vpop.f32.mrb[5].mxu0 }
 0x169   : > { %vm2248_vm13 = vcmp.gt.f32.partialorder %v2133_v35, 0.0  ;;  %v2280_v36 = vmul.f32 0.01, %v2133_v35  ;;  %v2898_v41 = vpop.f32.mrb[6].mxu0 }
 0x16a   : > { %v2314_v46 = vsel %vm2250_vm12, %v2897_v21, %v2282_v37  ;;  %vm2251_vm14 = vcmp.gt.f32.partialorder %v2898_v41, 0.0  ;;  %v2283_v29 = vmul.f32 0.01, %v2898_v41  ;;  %v2136_v58 = vpop.f32.mrb[7].mxu0 }
 0x16b   : > { %v2353_v2 = vmul.f32 %v4308_v52, %v2314_v46  ;;  %v2312_v59 = vsel %vm2248_vm13, %v2133_v35, %v2280_v36  ;;  %vm2249_vm15 = vcmp.gt.f32.partialorder %v2136_v58, 0.0  ;;  %v2281_v30 = vmul.f32 0.01, %v2136_v58 }
 0x16c   : > { %v2351_v45 = vmul.f32 %v4308_v52, %v2312_v59  ;;  %v2315_v44 = vsel %vm2251_vm14, %v2898_v41, %v2283_v29 }
 0x16d   : > { %v2354_v4 = vmul.f32 %v4308_v52, %v2315_v44  ;;  %v2313_v48 = vsel %vm2249_vm15, %v2136_v58, %v2281_v30  ;;  %v2392_v50 = vadd.f32 %v4316_v15, %v2353_v2 }
 0x16e   : > { %v2352_v51 = vmul.f32 %v4308_v52, %v2313_v48  ;;  %v2390_v0 = vadd.f32 %v4316_v15, %v2351_v45 }
 0x16f   : > { %v2393_v3 = vadd.f32 %v4316_v15, %v2354_v4 }
 0x170   : > { %v2391_v57 = vadd.f32 %v4316_v15, %v2352_v51 }
 0x171   : > { %v2795_v43 = vpack.c.bf16 %v2393_v3, %v2392_v50 }
 0x172   : > { %v2790_v62 = vpack.c.bf16 %v2391_v57, %v2390_v0 }
 0x173   : > { %2859 = vst [vmem:[%s4329_s26 + $0x18] sm:$0xff] %v2795_v43  }
 0x174   : > { %2858 = vst [vmem:[%s4329_s26 + $0x10] sm:$0xff] %v2790_v62  }
 0x179   : > { %v2913_v8 = vpop.f32.mrb[4].mxu1 }
 0x17a   : > { %vm2266_vm0 = vcmp.gt.f32.partialorder %v2913_v8, 0.0  ;;  %v2298_v53 = vmul.f32 0.01, %v2913_v8  ;;  %v2197_v32 = vpop.f32.mrb[5].mxu1 }
 0x17b   : > { %vm2264_vm1 = vcmp.gt.f32.partialorder %v2197_v32, 0.0  ;;  %v2296_v20 = vmul.f32 0.01, %v2197_v32  ;;  %v2914_v10 = vpop.f32.mrb[6].mxu1 }
 0x17c   : > { %v2330_v25 = vsel %vm2266_vm0, %v2913_v8, %v2298_v53  ;;  %vm2267_vm2 = vcmp.gt.f32.partialorder %v2914_v10, 0.0  ;;  %v2299_v55 = vmul.f32 0.01, %v2914_v10  ;;  %v2200_v63 = vpop.f32.mrb[7].mxu1 }
 0x17d   : > { %v2369_v27 = vmul.f32 %v4308_v52, %v2330_v25  ;;  %v2328_v39 = vsel %vm2264_vm1, %v2197_v32, %v2296_v20  ;;  %vm2265_vm3 = vcmp.gt.f32.partialorder %v2200_v63, 0.0  ;;  %v2297_v60 = vmul.f32 0.01, %v2200_v63 }
 0x17e   : > { %v2367_v18 = vmul.f32 %v4308_v52, %v2328_v39  ;;  %v2331_v22 = vsel %vm2267_vm2, %v2914_v10, %v2299_v55 }
 0x17f   : > { %v2370_v14 = vmul.f32 %v4308_v52, %v2331_v22  ;;  %v2329_v61 = vsel %vm2265_vm3, %v2200_v63, %v2297_v60  ;;  %v2408_v5 = vadd.f32 %v4316_v15, %v2369_v27 }
 0x180   : > { %v2368_v9 = vmul.f32 %v4308_v52, %v2329_v61  ;;  %v2406_v1 = vadd.f32 %v4316_v15, %v2367_v18 }
 0x181   : > { %v2409_v17 = vadd.f32 %v4316_v15, %v2370_v14 }
 0x182   : > { %v2407_v7 = vadd.f32 %v4316_v15, %v2368_v9 }
 0x183   : > { %v2835_v12 = vpack.c.bf16 %v2409_v17, %v2408_v5 }
 0x184   : > { %v2830_v11 = vpack.c.bf16 %v2407_v7, %v2406_v1 }
 0x185   : > { %2867 = vst [vmem:[%s4329_s26 + $0x58] sm:$0xff] %v2835_v12  }
 0x186   : > { %2866 = vst [vmem:[%s4329_s26 + $0x50] sm:$0xff] %v2830_v11  }
 0x1ae   : > { %v2901_v47 = vpop.f32.mrb[8].mxu0 }
 0x1af   : > { %vm2254_vm4 = vcmp.gt.f32.partialorder %v2901_v47, 0.0  ;;  %v2286_v6 = vmul.f32 0.01, %v2901_v47  ;;  %v2149_v28 = vpop.f32.mrb[9].mxu0 }
 0x1b0   : > { %vm2252_vm5 = vcmp.gt.f32.partialorder %v2149_v28, 0.0  ;;  %v2284_v26 = vmul.f32 0.01, %v2149_v28  ;;  %v2902_v54 = vpop.f32.mrb[10].mxu0 }
 0x1b1   : > { %v2318_v16 = vsel %vm2254_vm4, %v2901_v47, %v2286_v6  ;;  %vm2255_vm6 = vcmp.gt.f32.partialorder %v2902_v54, 0.0  ;;  %v2287_v19 = vmul.f32 0.01, %v2902_v54  ;;  %v2152_v42 = vpop.f32.mrb[11].mxu0 }
 0x1b2   : > { %v2357_v34 = vmul.f32 %v4308_v52, %v2318_v16  ;;  %v2316_v40 = vsel %vm2252_vm5, %v2149_v28, %v2284_v26  ;;  %vm2253_vm7 = vcmp.gt.f32.partialorder %v2152_v42, 0.0  ;;  %v2285_v33 = vmul.f32 0.01, %v2152_v42 }
 0x1b3   : > { %v2355_v23 = vmul.f32 %v4308_v52, %v2316_v40  ;;  %v2319_v38 = vsel %vm2255_vm6, %v2902_v54, %v2287_v19 }
 0x1b4   : > { %v2358_v24 = vmul.f32 %v4308_v52, %v2319_v38  ;;  %v2317_v31 = vsel %vm2253_vm7, %v2152_v42, %v2285_v33  ;;  %v2396_v49 = vadd.f32 %v4316_v15, %v2357_v34 }
 0x1b5   : > { %v2356_v13 = vmul.f32 %v4308_v52, %v2317_v31  ;;  %v2394_v21 = vadd.f32 %v4316_v15, %v2355_v23 }
 0x1b6   : > { %v2397_v56 = vadd.f32 %v4316_v15, %v2358_v24 }
 0x1b7   : > { %v2395_v37 = vadd.f32 %v4316_v15, %v2356_v13 }
 0x1b8   : > { %v2805_v35 = vpack.c.bf16 %v2397_v56, %v2396_v49 }
 0x1b9   : > { %v2800_v36 = vpack.c.bf16 %v2395_v37, %v2394_v21 }
 0x1ba   : > { %2861 = vst [vmem:[%s4329_s26 + $0x28] sm:$0xff] %v2805_v35  }
 0x1bb   : > { %2860 = vst [vmem:[%s4329_s26 + $0x20] sm:$0xff] %v2800_v36  }
 0x1c0   : > { %v2917_v41 = vpop.f32.mrb[8].mxu1 }
 0x1c1   : > { %vm2270_vm8 = vcmp.gt.f32.partialorder %v2917_v41, 0.0  ;;  %v2302_v46 = vmul.f32 0.01, %v2917_v41  ;;  %v2213_v29 = vpop.f32.mrb[9].mxu1 }
 0x1c2   : > { %vm2268_vm9 = vcmp.gt.f32.partialorder %v2213_v29, 0.0  ;;  %v2300_v58 = vmul.f32 0.01, %v2213_v29  ;;  %v2918_v2 = vpop.f32.mrb[10].mxu1 }
 0x1c3   : > { %v2334_v59 = vsel %vm2270_vm8, %v2917_v41, %v2302_v46  ;;  %vm2271_vm10 = vcmp.gt.f32.partialorder %v2918_v2, 0.0  ;;  %v2303_v30 = vmul.f32 0.01, %v2918_v2  ;;  %v2216_v45 = vpop.f32.mrb[11].mxu1 }
 0x1c4   : > { %v2373_v44 = vmul.f32 %v4308_v52, %v2334_v59  ;;  %v2332_v4 = vsel %vm2268_vm9, %v2213_v29, %v2300_v58  ;;  %vm2269_vm11 = vcmp.gt.f32.partialorder %v2216_v45, 0.0  ;;  %v2301_v48 = vmul.f32 0.01, %v2216_v45 }
 0x1c5   : > { %v2371_v51 = vmul.f32 %v4308_v52, %v2332_v4  ;;  %v2335_v50 = vsel %vm2271_vm10, %v2918_v2, %v2303_v30 }
 0x1c6   : > { %v2374_v3 = vmul.f32 %v4308_v52, %v2335_v50  ;;  %v2333_v0 = vsel %vm2269_vm11, %v2216_v45, %v2301_v48  ;;  %v2412_v43 = vadd.f32 %v4316_v15, %v2373_v44 }
 0x1c7   : > { %v2372_v57 = vmul.f32 %v4308_v52, %v2333_v0  ;;  %v2410_v8 = vadd.f32 %v4316_v15, %v2371_v51 }
 0x1c8   : > { %v2413_v62 = vadd.f32 %v4316_v15, %v2374_v3 }
 0x1c9   : > { %v2411_v53 = vadd.f32 %v4316_v15, %v2372_v57 }
 0x1ca   : > { %v2845_v32 = vpack.c.bf16 %v2413_v62, %v2412_v43 }
 0x1cb   : > { %v2840_v20 = vpack.c.bf16 %v2411_v53, %v2410_v8 }
 0x1cc   : > { %2869 = vst [vmem:[%s4329_s26 + $0x68] sm:$0xff] %v2845_v32  }
 0x1cd   : > { %2868 = vst [vmem:[%s4329_s26 + $0x60] sm:$0xff] %v2840_v20  }
 0x1f5   : > { %v2905_v10 = vpop.f32.mrb[12].mxu0 }
 0x1f6   : > { %vm2258_vm12 = vcmp.gt.f32.partialorder %v2905_v10, 0.0  ;;  %v2290_v25 = vmul.f32 0.01, %v2905_v10  ;;  %v2165_v55 = vpop.f32.mrb[13].mxu0 }
 0x1f7   : > { %vm2256_vm13 = vcmp.gt.f32.partialorder %v2165_v55, 0.0  ;;  %v2288_v63 = vmul.f32 0.01, %v2165_v55  ;;  %v2906_v27 = vpop.f32.mrb[14].mxu0 }
 0x1f8   : > { %v2322_v39 = vsel %vm2258_vm12, %v2905_v10, %v2290_v25  ;;  %vm2259_vm14 = vcmp.gt.f32.partialorder %v2906_v27, 0.0  ;;  %v2291_v60 = vmul.f32 0.01, %v2906_v27  ;;  %v2168_v18 = vpop.f32.mrb[15].mxu0 }
 0x1f9   : > { %v2361_v22 = vmul.f32 %v4308_v52, %v2322_v39  ;;  %v2320_v14 = vsel %vm2256_vm13, %v2165_v55, %v2288_v63  ;;  %vm2257_vm15 = vcmp.gt.f32.partialorder %v2168_v18, 0.0  ;;  %v2289_v61 = vmul.f32 0.01, %v2168_v18 }
 0x1fa   : > { %v2359_v9 = vmul.f32 %v4308_v52, %v2320_v14  ;;  %v2323_v5 = vsel %vm2259_vm14, %v2906_v27, %v2291_v60 }
 0x1fb   : > { %v2362_v17 = vmul.f32 %v4308_v52, %v2323_v5  ;;  %v2321_v1 = vsel %vm2257_vm15, %v2168_v18, %v2289_v61  ;;  %v2400_v12 = vadd.f32 %v4316_v15, %v2361_v22 }
 0x1fc   : > { %v2360_v7 = vmul.f32 %v4308_v52, %v2321_v1  ;;  %v2398_v47 = vadd.f32 %v4316_v15, %v2359_v9 }
 0x1fd   : > { %v2401_v11 = vadd.f32 %v4316_v15, %v2362_v17 }
 0x1fe   : > { %v2399_v6 = vadd.f32 %v4316_v15, %v2360_v7 }
 0x1ff   : > { %v2815_v28 = vpack.c.bf16 %v2401_v11, %v2400_v12 }
 0x200   : > { %v2810_v26 = vpack.c.bf16 %v2399_v6, %v2398_v47 }
 0x201   : > { %2863 = vst [vmem:[%s4329_s26 + $0x38] sm:$0xff] %v2815_v28  }
 0x202   : > { %2862 = vst [vmem:[%s4329_s26 + $0x30] sm:$0xff] %v2810_v26  }
 0x207   : > { %v2921_v54 = vpop.f32.mrb[12].mxu1 }
 0x208   : > { %vm2274_vm0 = vcmp.gt.f32.partialorder %v2921_v54, 0.0  ;;  %v2306_v16 = vmul.f32 0.01, %v2921_v54  ;;  %v2229_v19 = vpop.f32.mrb[13].mxu1 }
 0x209   : > { %vm2272_vm1 = vcmp.gt.f32.partialorder %v2229_v19, 0.0  ;;  %v2304_v42 = vmul.f32 0.01, %v2229_v19  ;;  %v2922_v34 = vpop.f32.mrb[14].mxu1 }
 0x20a   : > { %v2338_v40 = vsel %vm2274_vm0, %v2921_v54, %v2306_v16  ;;  %vm2275_vm2 = vcmp.gt.f32.partialorder %v2922_v34, 0.0  ;;  %v2307_v33 = vmul.f32 0.01, %v2922_v34  ;;  %v2232_v23 = vpop.f32.mrb[15].mxu1 }
 0x20b   : > { %v2377_v38 = vmul.f32 %v4308_v52, %v2338_v40  ;;  %v2336_v24 = vsel %vm2272_vm1, %v2229_v19, %v2304_v42  ;;  %vm2273_vm3 = vcmp.gt.f32.partialorder %v2232_v23, 0.0  ;;  %v2305_v31 = vmul.f32 0.01, %v2232_v23 }
 0x20c   : > { %v2375_v13 = vmul.f32 %v4308_v52, %v2336_v24  ;;  %v2339_v49 = vsel %vm2275_vm2, %v2922_v34, %v2307_v33 }
 0x20d   : > { %v2378_v56 = vmul.f32 %v4308_v52, %v2339_v49  ;;  %v2337_v21 = vsel %vm2273_vm3, %v2232_v23, %v2305_v31  ;;  %v2416_v35 = vadd.f32 %v4316_v15, %v2377_v38 }
 0x20e   : > { %v2376_v37 = vmul.f32 %v4308_v52, %v2337_v21  ;;  %v2414_v41 = vadd.f32 %v4316_v15, %v2375_v13 }
 0x20f   : > { %v2417_v36 = vadd.f32 %v4316_v15, %v2378_v56 }
 0x210   : > { %v2415_v46 = vadd.f32 %v4316_v15, %v2376_v37 }
 0x211   : > { %v2855_v29 = vpack.c.bf16 %v2417_v36, %v2416_v35 }
 0x212   : > { %v2850_v58 = vpack.c.bf16 %v2415_v46, %v2414_v41 }
 0x213   : > { %2871 = vst [vmem:[%s4329_s26 + $0x78] sm:$0xff] %v2855_v29  }
 0x214   : > { %2870 = vst [vmem:[%s4329_s26 + $0x70] sm:$0xff] %v2850_v58  }
 0x215 PF: > { %s15_s20 = sadd.s32 1, %s2998_s20   ;;  %s4419_s18 = smov %s2994_s19 }
 0x216   : > { %p12_p5 = scmp.ge.s32.totalorder %s15_s20, 4   ;;  %s4420_s19 = smov %s4422_s21 }
 0x218   :  { %14 = sbr.rel (!%p12_p5) target bundleno = 2 (0x2), region = 79 }

</bundles_post_ra>
